<compile_context>
chip_gen: v7x
topology: tpu7x:2x2x1
jax: 0.10.0
libtpu: 0.0.40
codegen_flags: <defaults>
</compile_context>

<pallas_src>
import numpy as np
import jax
import jax.numpy as jnp
from jax import lax
from jax.experimental import pallas as pl
from jax.experimental.pallas import tpu as pltpu

# Exact powers of two 2^1 .. 2^16 (built with ldexp -> bit-exact f32).
_POWERS = np.ldexp(1.0, np.arange(1, 17)).astype(np.float32)
# Conv tap order k = (dy+1)*3 + (dx+1), matching a (3,3,cin,cout) weight reshape.
_TAPS = [(dy, dx) for dy in (-1, 0, 1) for dx in (-1, 0, 1)]
_BN_EPS = 1e-5


def _round_up(x, m):
    return ((x + m - 1) // m) * m


def _shift_pos(h, d):
    """Zero-fill shift along the 16-position axis: out[:, p] = h[:, p + d]."""
    if d == 0:
        return h
    TB, _, C = h.shape
    z = jnp.zeros((TB, abs(d), C), h.dtype)
    if d > 0:
        return jnp.concatenate([h[:, d:, :], z], axis=1)
    return jnp.concatenate([z, h[:, :d, :]], axis=1)


# -----------------------------------------------------------------------------
# The kernel: whole AlphaZeroNet forward for one batch tile
# -----------------------------------------------------------------------------
def alphazero_kernel(state_ref, powers_ref, cmask_ref,
                     w1_ref, w2_ref, w3_ref, stc_ref,
                     wh_ref, sth_ref, wfc_ref, bfc_ref, wv2_ref,
                     out_ref):
    TB = state_ref.shape[0]
    N = TB * 16

    # ---- one-hot board encoding: (TB, 16 positions, 16 channels) bf16 ----
    state = state_ref[...][:, :, None]                    # (TB,16,1) f32
    powers = powers_ref[...].reshape(1, 1, 16)            # (1,1,16)  f32
    x = (state == powers).astype(jnp.bfloat16)            # (TB,16,16)

    cm_left = cmask_ref[0]                                 # (16,1): zero src col==3
    cm_right = cmask_ref[1]                                # (16,1): zero src col==0

    def conv3x3(h, w_ref, scale, bias):
        """3x3 'same' conv (+ folded BN + ReLU): (TB,16,cin) bf16 -> (N,cout) f32.

        Zero-fill position shifts handle the top/bottom board edges, the two
        column pre-masks handle the left/right edges; 9 bf16 matmuls accumulate
        into one f32 accumulator.
        """
        cin = h.shape[-1]
        h_l = h * cm_left                                  # feeds dx = -1 taps
        h_r = h * cm_right                                 # feeds dx = +1 taps
        acc = None
        for k, (dy, dx) in enumerate(_TAPS):
            base = h_l if dx < 0 else (h_r if dx > 0 else h)
            src = _shift_pos(base, 4 * dy + dx)
            part = jnp.dot(src.reshape(N, cin), w_ref[k],
                           preferred_element_type=jnp.float32)
            acc = part if acc is None else acc + part
        return jnp.maximum(acc * scale + bias, 0.0)

    # ---- trunk: three conv + BN + ReLU blocks ----
    h = x
    for w_ref, si in ((w1_ref, 0), (w2_ref, 2), (w3_ref, 4)):
        y = conv3x3(h, w_ref, stc_ref[si], stc_ref[si + 1])      # (N,128) f32
        h = y.astype(jnp.bfloat16).reshape(TB, 16, 128)
    h3 = h.reshape(N, 128)                                        # (N,128) bf16

    # ---- fused policy|value 1x1 head conv (+ folded BN + ReLU) ----
    hh = jnp.dot(h3, wh_ref[...], preferred_element_type=jnp.float32)
    hh = jnp.maximum(hh * sth_ref[0] + sth_ref[1], 0.0)           # (N,64) f32
    hh3 = hh.astype(jnp.bfloat16).reshape(TB, 16, 64)

    # single position->lane flatten (feature index = pos*64 + fused_channel)
    feats = jnp.concatenate([hh3[:, p, :] for p in range(16)], axis=-1)  # (TB,1024)

    # ---- fused policy_fc | value_fc1 (single lane-dense matmul) ----
    fc = jnp.dot(feats, wfc_ref[...],
                 preferred_element_type=jnp.float32) + bfc_ref[...]      # (TB,384)
    logits = fc[:, 0:4]
    v1 = jnp.maximum(fc[:, 128:384], 0.0)                                # (TB,256)

    # policy softmax
    m = jnp.max(logits, axis=1, keepdims=True)
    e = jnp.exp(logits - m)
    policy = e / jnp.sum(e, axis=1, keepdims=True)                       # (TB,4)

    # value head: tanh(v1 @ wv2 + bv2) as a lane reduction
    v = jnp.tanh(jnp.sum(v1 * wv2_ref[0:1, :], axis=1, keepdims=True)
                 + wv2_ref[1:2, 0:1])                                    # (TB,1)

    # lane-dense output block: [policy(4) | value(1) | zeros(123)]
    out_ref[...] = jnp.concatenate(
        [policy, v, jnp.zeros((TB, 123), jnp.float32)], axis=1)


# -----------------------------------------------------------------------------
# Wrapper: batch tiling, BlockSpecs, pallas_call
# -----------------------------------------------------------------------------
def _const_spec(a):
    # Grid-invariant input: full-array block, constant index map (Pallas only
    # fetches it once since the block index never changes).
    return pl.BlockSpec(a.shape, lambda i, _nd=a.ndim: (0,) * _nd)


def alphazero_forward(state, kparams):
    """state: (B, 4, 4) float board values (0, 2, 4, ..., 2**16)."""
    B = state.shape[0]
    state = jnp.asarray(state).reshape(B, 16).astype(jnp.float32)

    TB = min(256, _round_up(B, 8))
    if TB >= 32 and _round_up(B, TB) == TB:
        TB = _round_up(B, 16) // 2      # keep >= 2 grid steps (both v7x cores)
    BP = _round_up(B, TB)
    if BP != B:
        state = jnp.pad(state, ((0, BP - B), (0, 0)))

    args = (state,) + tuple(kparams)
    in_specs = [pl.BlockSpec((TB, 16), lambda i: (i, 0))]
    in_specs += [_const_spec(a) for a in args[1:]]
    out_specs = pl.BlockSpec((TB, 128), lambda i: (i, 0))

    out = pl.pallas_call(
        alphazero_kernel,
        grid=(BP // TB,),
        in_specs=in_specs,
        out_specs=out_specs,
        out_shape=jax.ShapeDtypeStruct((BP, 128), jnp.float32),
        compiler_params=pltpu.CompilerParams(
            dimension_semantics=("parallel",),
            vmem_limit_bytes=48 * 1024 * 1024),
    )(*args)

    return out[:B, 0:4], out[:B, 4:5]


# -----------------------------------------------------------------------------
# Deterministic parameter construction (PyTorch layouts) and kernel packing
# -----------------------------------------------------------------------------
def init_raw_params(key):
    keys = jax.random.split(key, 16)
    ki = iter(keys)

    def normal(shape, std=0.05):
        return std * jax.random.normal(next(ki), shape, dtype=jnp.float32)

    return dict(
        conv1_w=normal((128, 16, 3, 3)), conv1_b=normal((128,)),
        conv2_w=normal((128, 128, 3, 3)), conv2_b=normal((128,)),
        conv3_w=normal((128, 128, 3, 3)), conv3_b=normal((128,)),
        pconv_w=normal((32, 128, 1, 1)), pconv_b=normal((32,)),
        pfc_w=normal((4, 512)), pfc_b=normal((4,)),
        vconv_w=normal((32, 128, 1, 1)), vconv_b=normal((32,)),
        vfc1_w=normal((256, 512)), vfc1_b=normal((256,)),
        vfc2_w=normal((1, 256)), vfc2_b=normal((1,)),
    )


def pack_params(raw):
    s = np.float32(1.0 / np.sqrt(1.0 + _BN_EPS))    # fresh eval-mode BN fold

    def conv3x3_w(w_oihw):
        cout, cin = w_oihw.shape[0], w_oihw.shape[1]
        return (jnp.transpose(w_oihw, (2, 3, 1, 0))
                .reshape(9, cin, cout).astype(jnp.bfloat16))

    w1 = conv3x3_w(raw['conv1_w'])
    w2 = conv3x3_w(raw['conv2_w'])
    w3 = conv3x3_w(raw['conv3_w'])

    ones128 = jnp.full((128,), s, jnp.float32)
    stc = jnp.stack([ones128, raw['conv1_b'] * s,
                     ones128, raw['conv2_b'] * s,
                     ones128, raw['conv3_b'] * s])                     # (6,128)

    # fused policy|value 1x1 head conv: channels 0:32 policy, 32:64 value
    wh = jnp.concatenate([raw['pconv_w'][:, :, 0, 0].T,
                          raw['vconv_w'][:, :, 0, 0].T], axis=1)       # (128,64)
    wh = wh.astype(jnp.bfloat16)
    sth = jnp.stack([jnp.full((64,), s, jnp.float32),
                     jnp.concatenate([raw['pconv_b'], raw['vconv_b']]) * s])

    # fused FC: rows = pos*64 + fused_channel; cols 0:4 policy, 128:384 value_fc1
    wpf = jnp.transpose(raw['pfc_w'].reshape(4, 32, 16), (2, 1, 0))     # (16,32,4)
    wv1 = jnp.transpose(raw['vfc1_w'].reshape(256, 32, 16), (2, 1, 0))  # (16,32,256)
    wfc = jnp.zeros((16, 64, 384), jnp.float32)
    wfc = wfc.at[:, 0:32, 0:4].set(wpf)
    wfc = wfc.at[:, 32:64, 128:384].set(wv1)
    wfc = wfc.reshape(1024, 384).astype(jnp.bfloat16)
    bfc = jnp.zeros((1, 384), jnp.float32)
    bfc = bfc.at[0, 0:4].set(raw['pfc_b'])
    bfc = bfc.at[0, 128:384].set(raw['vfc1_b'])

    # value_fc2 weight (row 0) and bias (row 1, lane 0), kept f32
    wv2 = jnp.zeros((2, 256), jnp.float32)
    wv2 = wv2.at[0, :].set(raw['vfc2_w'][0])
    wv2 = wv2.at[1, 0].set(raw['vfc2_b'][0])

    powers = jnp.asarray(_POWERS).reshape(1, 16)

    # column pre-masks for the dx = -1 / +1 conv taps (zero source col 3 / 0)
    cm = np.ones((2, 16, 1), np.float32)
    for p in range(16):
        if p % 4 == 3:
            cm[0, p, 0] = 0.0
        if p % 4 == 0:
            cm[1, p, 0] = 0.0
    cmask = jnp.asarray(cm).astype(jnp.bfloat16)

    return (powers, cmask, w1, w2, w3, stc, wh, sth, wfc, bfc, wv2)


# -----------------------------------------------------------------------------
# Pure-JAX reference (torch-layout params; weights rounded to bf16 like kernel)
# -----------------------------------------------------------------------------
def reference_forward(state, raw):
    B = state.shape[0]
    s = np.float32(1.0 / np.sqrt(1.0 + _BN_EPS))
    powers = jnp.asarray(_POWERS).reshape(1, 1, 1, 16)
    x = (jnp.asarray(state, jnp.float32).reshape(B, 4, 4, 1) == powers
         ).astype(jnp.float32)                                          # NHWC

    def rb(w):   # emulate the kernel's bf16 weight rounding
        return w.astype(jnp.bfloat16).astype(jnp.float32)

    def block(h, w_oihw, b):
        w = jnp.transpose(rb(w_oihw), (2, 3, 1, 0))                     # HWIO
        y = lax.conv_general_dilated(h, w, (1, 1), 'SAME',
                                     dimension_numbers=('NHWC', 'HWIO', 'NHWC'))
        return jax.nn.relu((y + b) * s)

    h = block(x, raw['conv1_w'], raw['conv1_b'])
    h = block(h, raw['conv2_w'], raw['conv2_b'])
    h = block(h, raw['conv3_w'], raw['conv3_b'])

    def head(h, w_oihw, b):
        w = rb(w_oihw)[:, :, 0, 0]                                      # (out,in)
        y = jnp.einsum('bhwc,oc->bhwo', h, w) + b
        return jax.nn.relu(y * s)

    ph = head(h, raw['pconv_w'], raw['pconv_b'])                        # (B,4,4,32)
    pflat = jnp.transpose(ph, (0, 3, 1, 2)).reshape(B, 512)             # c*16+p
    logits = pflat @ rb(raw['pfc_w']).T + raw['pfc_b']
    policy = jax.nn.softmax(logits, axis=1)

    vh = head(h, raw['vconv_w'], raw['vconv_b'])
    vflat = jnp.transpose(vh, (0, 3, 1, 2)).reshape(B, 512)
    v1 = jax.nn.relu(vflat @ rb(raw['vfc1_w']).T + raw['vfc1_b'])
    value = jnp.tanh(v1 @ raw['vfc2_w'].T + raw['vfc2_b'])
    return policy, value


if __name__ == "__main__":
    key = jax.random.PRNGKey(0)
    kp, ks = jax.random.split(key)
    raw = init_raw_params(kp)
    kparams = pack_params(raw)

    B = 2
    exps = np.asarray(jax.random.randint(ks, (B, 4, 4), 0, 12))
    state_np = np.where(exps == 0, 0.0, np.ldexp(1.0, exps)).astype(np.float32)
    state = jnp.asarray(state_np)                                       # (B,4,4)

    policy, value = alphazero_forward(state, kparams)
    jax.block_until_ready((policy, value))

    p_ref, v_ref = reference_forward(state, raw)
    assert policy.shape == (B, 4) and value.shape == (B, 1)
    assert bool(jnp.allclose(jnp.sum(policy, axis=1), 1.0, atol=1e-5))
    assert bool(jnp.allclose(policy, p_ref, atol=2e-2, rtol=2e-2))
    assert bool(jnp.allclose(value, v_ref, atol=2e-2, rtol=2e-2))

    print("KERNEL_OK")
</pallas_src>

<mosaic_0001>
module attributes {stable_mosaic.version = 11 : i64} {
  func.func @alphazero_kernel(%arg0: i32, %arg1: memref<8x16xf32, #tpu.memory_space<vmem>>, %arg2: memref<1x16xf32, #tpu.memory_space<vmem>>, %arg3: memref<2x16x1xbf16, #tpu.memory_space<vmem>>, %arg4: memref<9x16x128xbf16, #tpu.memory_space<vmem>>, %arg5: memref<9x128x128xbf16, #tpu.memory_space<vmem>>, %arg6: memref<9x128x128xbf16, #tpu.memory_space<vmem>>, %arg7: memref<6x128xf32, #tpu.memory_space<vmem>>, %arg8: memref<128x64xbf16, #tpu.memory_space<vmem>>, %arg9: memref<2x64xf32, #tpu.memory_space<vmem>>, %arg10: memref<1024x384xbf16, #tpu.memory_space<vmem>>, %arg11: memref<1x384xf32, #tpu.memory_space<vmem>>, %arg12: memref<2x256xf32, #tpu.memory_space<vmem>>, %arg13: memref<8x128xf32, #tpu.memory_space<vmem>>) attributes {dimension_semantics = [#tpu.dimension_semantics<parallel>], iteration_bounds = array<i64: 1>, scalar_prefetch = 0 : i64, scratch_operands = 0 : i64, tpu.core_type = #tpu.core_type<tc>, window_params = [{transform_indices = @transform_0, window_bounds = array<i64: 8, 16>}, {pipeline_mode = #tpu.pipeline_mode<synchronous>, transform_indices = @transform_1, window_bounds = array<i64: 1, 16>}, {pipeline_mode = #tpu.pipeline_mode<synchronous>, transform_indices = @transform_2, window_bounds = array<i64: 2, 16, 1>}, {pipeline_mode = #tpu.pipeline_mode<synchronous>, transform_indices = @transform_3, window_bounds = array<i64: 9, 16, 128>}, {pipeline_mode = #tpu.pipeline_mode<synchronous>, transform_indices = @transform_4, window_bounds = array<i64: 9, 128, 128>}, {pipeline_mode = #tpu.pipeline_mode<synchronous>, transform_indices = @transform_5, window_bounds = array<i64: 9, 128, 128>}, {pipeline_mode = #tpu.pipeline_mode<synchronous>, transform_indices = @transform_6, window_bounds = array<i64: 6, 128>}, {pipeline_mode = #tpu.pipeline_mode<synchronous>, transform_indices = @transform_7, window_bounds = array<i64: 128, 64>}, {pipeline_mode = #tpu.pipeline_mode<synchronous>, transform_indices = @transform_8, window_bounds = array<i64: 2, 64>}, {pipeline_mode = #tpu.pipeline_mode<synchronous>, transform_indices = @transform_9, window_bounds = array<i64: 1024, 384>}, {pipeline_mode = #tpu.pipeline_mode<synchronous>, transform_indices = @transform_10, window_bounds = array<i64: 1, 384>}, {pipeline_mode = #tpu.pipeline_mode<synchronous>, transform_indices = @transform_11, window_bounds = array<i64: 2, 256>}, {transform_indices = @transform_12, window_bounds = array<i64: 8, 128>}]} {
    %c0 = arith.constant 0 : index
    %c0_0 = arith.constant 0 : index
    %0 = vector.load %arg1[%c0, %c0_0] : memref<8x16xf32, #tpu.memory_space<vmem>>, vector<8x16xf32>
    %1 = vector.shape_cast %0 : vector<8x16xf32> to vector<8x16x1xf32>
    %c0_1 = arith.constant 0 : index
    %c0_2 = arith.constant 0 : index
    %2 = vector.load %arg2[%c0_1, %c0_2] : memref<1x16xf32, #tpu.memory_space<vmem>>, vector<1x16xf32>
    %3 = vector.shape_cast %2 : vector<1x16xf32> to vector<1x1x16xf32>
    %4 = vector.broadcast %1 : vector<8x16x1xf32> to vector<8x16x16xf32>
    %5 = vector.broadcast %3 : vector<1x1x16xf32> to vector<8x16x16xf32>
    %6 = arith.cmpf oeq, %4, %5 : vector<8x16x16xf32>
    %7 = arith.extui %6 : vector<8x16x16xi1> to vector<8x16x16xi32>
    %8 = arith.sitofp %7 : vector<8x16x16xi32> to vector<8x16x16xf32>
    %9 = arith.truncf %8 : vector<8x16x16xf32> to vector<8x16x16xbf16>
    %c0_3 = arith.constant 0 : index
    %c0_4 = arith.constant 0 : index
    %c0_5 = arith.constant 0 : index
    %10 = vector.load %arg3[%c0_3, %c0_4, %c0_5] : memref<2x16x1xbf16, #tpu.memory_space<vmem>>, vector<1x16x1xbf16>
    %11 = vector.shape_cast %10 : vector<1x16x1xbf16> to vector<16x1xbf16>
    %c1 = arith.constant 1 : index
    %c0_6 = arith.constant 0 : index
    %c0_7 = arith.constant 0 : index
    %12 = vector.load %arg3[%c1, %c0_6, %c0_7] : memref<2x16x1xbf16, #tpu.memory_space<vmem>>, vector<1x16x1xbf16>
    %13 = vector.shape_cast %12 : vector<1x16x1xbf16> to vector<16x1xbf16>
    %c0_8 = arith.constant 0 : index
    %c0_9 = arith.constant 0 : index
    %14 = vector.load %arg7[%c0_8, %c0_9] : memref<6x128xf32, #tpu.memory_space<vmem>>, vector<1x128xf32>
    %15 = vector.shape_cast %14 : vector<1x128xf32> to vector<128xf32>
    %c1_10 = arith.constant 1 : index
    %c0_11 = arith.constant 0 : index
    %16 = vector.load %arg7[%c1_10, %c0_11] : memref<6x128xf32, #tpu.memory_space<vmem>>, vector<1x128xf32>
    %17 = vector.shape_cast %16 : vector<1x128xf32> to vector<128xf32>
    %18 = vector.shape_cast %11 : vector<16x1xbf16> to vector<1x16x1xbf16>
    %19 = vector.broadcast %18 : vector<1x16x1xbf16> to vector<8x16x16xbf16>
    %20 = arith.mulf %9, %19 : vector<8x16x16xbf16>
    %21 = vector.shape_cast %13 : vector<16x1xbf16> to vector<1x16x1xbf16>
    %22 = vector.broadcast %21 : vector<1x16x1xbf16> to vector<8x16x16xbf16>
    %23 = arith.mulf %9, %22 : vector<8x16x16xbf16>
    %cst = arith.constant 0.000000e+00 : bf16
    %24 = vector.broadcast %cst : bf16 to vector<8x5x16xbf16>
    %25 = vector.extract_strided_slice %20 {offsets = [0, 0, 0], sizes = [8, 11, 16], strides = [1, 1, 1]} : vector<8x16x16xbf16> to vector<8x11x16xbf16>
    %26 = tpu.concatenate %24, %25 in 1 : vector<8x5x16xbf16>, vector<8x11x16xbf16> -> vector<8x16x16xbf16>
    %27 = vector.shape_cast %26 : vector<8x16x16xbf16> to vector<128x16xbf16>
    %c0_12 = arith.constant 0 : index
    %c0_13 = arith.constant 0 : index
    %c0_14 = arith.constant 0 : index
    %28 = vector.load %arg4[%c0_12, %c0_13, %c0_14] : memref<9x16x128xbf16, #tpu.memory_space<vmem>>, vector<1x16x128xbf16>
    %29 = vector.shape_cast %28 : vector<1x16x128xbf16> to vector<16x128xbf16>
    %cst_15 = arith.constant dense<0.000000e+00> : vector<128x128xf32>
    %30 = tpu.matmul %27, %29, %cst_15 {dimension_numbers = #tpu.dot_dimension_numbers<[1], [0], [0], [1], [0, 0, 1, 1], [], []>} : vector<128x16xbf16>, vector<16x128xbf16>, vector<128x128xf32> -> vector<128x128xf32>
    %cst_16 = arith.constant 0.000000e+00 : bf16
    %31 = vector.broadcast %cst_16 : bf16 to vector<8x4x16xbf16>
    %32 = vector.extract_strided_slice %9 {offsets = [0, 0, 0], sizes = [8, 12, 16], strides = [1, 1, 1]} : vector<8x16x16xbf16> to vector<8x12x16xbf16>
    %33 = tpu.concatenate %31, %32 in 1 : vector<8x4x16xbf16>, vector<8x12x16xbf16> -> vector<8x16x16xbf16>
    %34 = vector.shape_cast %33 : vector<8x16x16xbf16> to vector<128x16xbf16>
    %c1_17 = arith.constant 1 : index
    %c0_18 = arith.constant 0 : index
    %c0_19 = arith.constant 0 : index
    %35 = vector.load %arg4[%c1_17, %c0_18, %c0_19] : memref<9x16x128xbf16, #tpu.memory_space<vmem>>, vector<1x16x128xbf16>
    %36 = vector.shape_cast %35 : vector<1x16x128xbf16> to vector<16x128xbf16>
    %cst_20 = arith.constant dense<0.000000e+00> : vector<128x128xf32>
    %37 = tpu.matmul %34, %36, %cst_20 {dimension_numbers = #tpu.dot_dimension_numbers<[1], [0], [0], [1], [0, 0, 1, 1], [], []>} : vector<128x16xbf16>, vector<16x128xbf16>, vector<128x128xf32> -> vector<128x128xf32>
    %38 = arith.addf %30, %37 : vector<128x128xf32>
    %cst_21 = arith.constant 0.000000e+00 : bf16
    %39 = vector.broadcast %cst_21 : bf16 to vector<8x3x16xbf16>
    %40 = vector.extract_strided_slice %23 {offsets = [0, 0, 0], sizes = [8, 13, 16], strides = [1, 1, 1]} : vector<8x16x16xbf16> to vector<8x13x16xbf16>
    %41 = tpu.concatenate %39, %40 in 1 : vector<8x3x16xbf16>, vector<8x13x16xbf16> -> vector<8x16x16xbf16>
    %42 = vector.shape_cast %41 : vector<8x16x16xbf16> to vector<128x16xbf16>
    %c2 = arith.constant 2 : index
    %c0_22 = arith.constant 0 : index
    %c0_23 = arith.constant 0 : index
    %43 = vector.load %arg4[%c2, %c0_22, %c0_23] : memref<9x16x128xbf16, #tpu.memory_space<vmem>>, vector<1x16x128xbf16>
    %44 = vector.shape_cast %43 : vector<1x16x128xbf16> to vector<16x128xbf16>
    %cst_24 = arith.constant dense<0.000000e+00> : vector<128x128xf32>
    %45 = tpu.matmul %42, %44, %cst_24 {dimension_numbers = #tpu.dot_dimension_numbers<[1], [0], [0], [1], [0, 0, 1, 1], [], []>} : vector<128x16xbf16>, vector<16x128xbf16>, vector<128x128xf32> -> vector<128x128xf32>
    %46 = arith.addf %38, %45 : vector<128x128xf32>
    %cst_25 = arith.constant 0.000000e+00 : bf16
    %47 = vector.broadcast %cst_25 : bf16 to vector<8x1x16xbf16>
    %48 = vector.extract_strided_slice %20 {offsets = [0, 0, 0], sizes = [8, 15, 16], strides = [1, 1, 1]} : vector<8x16x16xbf16> to vector<8x15x16xbf16>
    %49 = tpu.concatenate %47, %48 in 1 : vector<8x1x16xbf16>, vector<8x15x16xbf16> -> vector<8x16x16xbf16>
    %50 = vector.shape_cast %49 : vector<8x16x16xbf16> to vector<128x16xbf16>
    %c3 = arith.constant 3 : index
    %c0_26 = arith.constant 0 : index
    %c0_27 = arith.constant 0 : index
    %51 = vector.load %arg4[%c3, %c0_26, %c0_27] : memref<9x16x128xbf16, #tpu.memory_space<vmem>>, vector<1x16x128xbf16>
    %52 = vector.shape_cast %51 : vector<1x16x128xbf16> to vector<16x128xbf16>
    %cst_28 = arith.constant dense<0.000000e+00> : vector<128x128xf32>
    %53 = tpu.matmul %50, %52, %cst_28 {dimension_numbers = #tpu.dot_dimension_numbers<[1], [0], [0], [1], [0, 0, 1, 1], [], []>} : vector<128x16xbf16>, vector<16x128xbf16>, vector<128x128xf32> -> vector<128x128xf32>
    %54 = arith.addf %46, %53 : vector<128x128xf32>
    %55 = vector.shape_cast %9 : vector<8x16x16xbf16> to vector<128x16xbf16>
    %c4 = arith.constant 4 : index
    %c0_29 = arith.constant 0 : index
    %c0_30 = arith.constant 0 : index
    %56 = vector.load %arg4[%c4, %c0_29, %c0_30] : memref<9x16x128xbf16, #tpu.memory_space<vmem>>, vector<1x16x128xbf16>
    %57 = vector.shape_cast %56 : vector<1x16x128xbf16> to vector<16x128xbf16>
    %cst_31 = arith.constant dense<0.000000e+00> : vector<128x128xf32>
    %58 = tpu.matmul %55, %57, %cst_31 {dimension_numbers = #tpu.dot_dimension_numbers<[1], [0], [0], [1], [0, 0, 1, 1], [], []>} : vector<128x16xbf16>, vector<16x128xbf16>, vector<128x128xf32> -> vector<128x128xf32>
    %59 = arith.addf %54, %58 : vector<128x128xf32>
    %cst_32 = arith.constant 0.000000e+00 : bf16
    %60 = vector.broadcast %cst_32 : bf16 to vector<8x1x16xbf16>
    %61 = vector.extract_strided_slice %23 {offsets = [0, 1, 0], sizes = [8, 15, 16], strides = [1, 1, 1]} : vector<8x16x16xbf16> to vector<8x15x16xbf16>
    %62 = tpu.concatenate %61, %60 in 1 : vector<8x15x16xbf16>, vector<8x1x16xbf16> -> vector<8x16x16xbf16>
    %63 = vector.shape_cast %62 : vector<8x16x16xbf16> to vector<128x16xbf16>
    %c5 = arith.constant 5 : index
    %c0_33 = arith.constant 0 : index
    %c0_34 = arith.constant 0 : index
    %64 = vector.load %arg4[%c5, %c0_33, %c0_34] : memref<9x16x128xbf16, #tpu.memory_space<vmem>>, vector<1x16x128xbf16>
    %65 = vector.shape_cast %64 : vector<1x16x128xbf16> to vector<16x128xbf16>
    %cst_35 = arith.constant dense<0.000000e+00> : vector<128x128xf32>
    %66 = tpu.matmul %63, %65, %cst_35 {dimension_numbers = #tpu.dot_dimension_numbers<[1], [0], [0], [1], [0, 0, 1, 1], [], []>} : vector<128x16xbf16>, vector<16x128xbf16>, vector<128x128xf32> -> vector<128x128xf32>
    %67 = arith.addf %59, %66 : vector<128x128xf32>
    %cst_36 = arith.constant 0.000000e+00 : bf16
    %68 = vector.broadcast %cst_36 : bf16 to vector<8x3x16xbf16>
    %69 = vector.extract_strided_slice %20 {offsets = [0, 3, 0], sizes = [8, 13, 16], strides = [1, 1, 1]} : vector<8x16x16xbf16> to vector<8x13x16xbf16>
    %70 = tpu.concatenate %69, %68 in 1 : vector<8x13x16xbf16>, vector<8x3x16xbf16> -> vector<8x16x16xbf16>
    %71 = vector.shape_cast %70 : vector<8x16x16xbf16> to vector<128x16xbf16>
    %c6 = arith.constant 6 : index
    %c0_37 = arith.constant 0 : index
    %c0_38 = arith.constant 0 : index
    %72 = vector.load %arg4[%c6, %c0_37, %c0_38] : memref<9x16x128xbf16, #tpu.memory_space<vmem>>, vector<1x16x128xbf16>
    %73 = vector.shape_cast %72 : vector<1x16x128xbf16> to vector<16x128xbf16>
    %cst_39 = arith.constant dense<0.000000e+00> : vector<128x128xf32>
    %74 = tpu.matmul %71, %73, %cst_39 {dimension_numbers = #tpu.dot_dimension_numbers<[1], [0], [0], [1], [0, 0, 1, 1], [], []>} : vector<128x16xbf16>, vector<16x128xbf16>, vector<128x128xf32> -> vector<128x128xf32>
    %75 = arith.addf %67, %74 : vector<128x128xf32>
    %cst_40 = arith.constant 0.000000e+00 : bf16
    %76 = vector.broadcast %cst_40 : bf16 to vector<8x4x16xbf16>
    %77 = vector.extract_strided_slice %9 {offsets = [0, 4, 0], sizes = [8, 12, 16], strides = [1, 1, 1]} : vector<8x16x16xbf16> to vector<8x12x16xbf16>
    %78 = tpu.concatenate %77, %76 in 1 : vector<8x12x16xbf16>, vector<8x4x16xbf16> -> vector<8x16x16xbf16>
    %79 = vector.shape_cast %78 : vector<8x16x16xbf16> to vector<128x16xbf16>
    %c7 = arith.constant 7 : index
    %c0_41 = arith.constant 0 : index
    %c0_42 = arith.constant 0 : index
    %80 = vector.load %arg4[%c7, %c0_41, %c0_42] : memref<9x16x128xbf16, #tpu.memory_space<vmem>>, vector<1x16x128xbf16>
    %81 = vector.shape_cast %80 : vector<1x16x128xbf16> to vector<16x128xbf16>
    %cst_43 = arith.constant dense<0.000000e+00> : vector<128x128xf32>
    %82 = tpu.matmul %79, %81, %cst_43 {dimension_numbers = #tpu.dot_dimension_numbers<[1], [0], [0], [1], [0, 0, 1, 1], [], []>} : vector<128x16xbf16>, vector<16x128xbf16>, vector<128x128xf32> -> vector<128x128xf32>
    %83 = arith.addf %75, %82 : vector<128x128xf32>
    %cst_44 = arith.constant 0.000000e+00 : bf16
    %84 = vector.broadcast %cst_44 : bf16 to vector<8x5x16xbf16>
    %85 = vector.extract_strided_slice %23 {offsets = [0, 5, 0], sizes = [8, 11, 16], strides = [1, 1, 1]} : vector<8x16x16xbf16> to vector<8x11x16xbf16>
    %86 = tpu.concatenate %85, %84 in 1 : vector<8x11x16xbf16>, vector<8x5x16xbf16> -> vector<8x16x16xbf16>
    %87 = vector.shape_cast %86 : vector<8x16x16xbf16> to vector<128x16xbf16>
    %c8 = arith.constant 8 : index
    %c0_45 = arith.constant 0 : index
    %c0_46 = arith.constant 0 : index
    %88 = vector.load %arg4[%c8, %c0_45, %c0_46] : memref<9x16x128xbf16, #tpu.memory_space<vmem>>, vector<1x16x128xbf16>
    %89 = vector.shape_cast %88 : vector<1x16x128xbf16> to vector<16x128xbf16>
    %cst_47 = arith.constant dense<0.000000e+00> : vector<128x128xf32>
    %90 = tpu.matmul %87, %89, %cst_47 {dimension_numbers = #tpu.dot_dimension_numbers<[1], [0], [0], [1], [0, 0, 1, 1], [], []>} : vector<128x16xbf16>, vector<16x128xbf16>, vector<128x128xf32> -> vector<128x128xf32>
    %91 = arith.addf %83, %90 : vector<128x128xf32>
    %92 = vector.shape_cast %15 : vector<128xf32> to vector<1x128xf32>
    %93 = vector.broadcast %92 : vector<1x128xf32> to vector<128x128xf32>
    %94 = arith.mulf %91, %93 : vector<128x128xf32>
    %95 = vector.shape_cast %17 : vector<128xf32> to vector<1x128xf32>
    %96 = vector.broadcast %95 : vector<1x128xf32> to vector<128x128xf32>
    %97 = arith.addf %94, %96 : vector<128x128xf32>
    %cst_48 = arith.constant 0.000000e+00 : f32
    %98 = vector.broadcast %cst_48 : f32 to vector<128x128xf32>
    %99 = arith.maximumf %97, %98 : vector<128x128xf32>
    %100 = arith.truncf %99 : vector<128x128xf32> to vector<128x128xbf16>
    %101 = vector.shape_cast %100 : vector<128x128xbf16> to vector<8x16x128xbf16>
    %c2_49 = arith.constant 2 : index
    %c0_50 = arith.constant 0 : index
    %102 = vector.load %arg7[%c2_49, %c0_50] : memref<6x128xf32, #tpu.memory_space<vmem>>, vector<1x128xf32>
    %103 = vector.shape_cast %102 : vector<1x128xf32> to vector<128xf32>
    %c3_51 = arith.constant 3 : index
    %c0_52 = arith.constant 0 : index
    %104 = vector.load %arg7[%c3_51, %c0_52] : memref<6x128xf32, #tpu.memory_space<vmem>>, vector<1x128xf32>
    %105 = vector.shape_cast %104 : vector<1x128xf32> to vector<128xf32>
    %106 = vector.shape_cast %11 : vector<16x1xbf16> to vector<1x16x1xbf16>
    %107 = vector.broadcast %106 : vector<1x16x1xbf16> to vector<8x16x128xbf16>
    %108 = arith.mulf %101, %107 : vector<8x16x128xbf16>
    %109 = vector.shape_cast %13 : vector<16x1xbf16> to vector<1x16x1xbf16>
    %110 = vector.broadcast %109 : vector<1x16x1xbf16> to vector<8x16x128xbf16>
    %111 = arith.mulf %101, %110 : vector<8x16x128xbf16>
    %cst_53 = arith.constant 0.000000e+00 : bf16
    %112 = vector.broadcast %cst_53 : bf16 to vector<8x5x128xbf16>
    %113 = vector.extract_strided_slice %108 {offsets = [0, 0, 0], sizes = [8, 11, 128], strides = [1, 1, 1]} : vector<8x16x128xbf16> to vector<8x11x128xbf16>
    %114 = tpu.concatenate %112, %113 in 1 : vector<8x5x128xbf16>, vector<8x11x128xbf16> -> vector<8x16x128xbf16>
    %115 = vector.shape_cast %114 : vector<8x16x128xbf16> to vector<128x128xbf16>
    %c0_54 = arith.constant 0 : index
    %c0_55 = arith.constant 0 : index
    %c0_56 = arith.constant 0 : index
    %116 = vector.load %arg5[%c0_54, %c0_55, %c0_56] : memref<9x128x128xbf16, #tpu.memory_space<vmem>>, vector<1x128x128xbf16>
    %117 = vector.shape_cast %116 : vector<1x128x128xbf16> to vector<128x128xbf16>
    %cst_57 = arith.constant dense<0.000000e+00> : vector<128x128xf32>
    %118 = tpu.matmul %115, %117, %cst_57 {dimension_numbers = #tpu.dot_dimension_numbers<[1], [0], [0], [1], [0, 0, 1, 1], [], []>} : vector<128x128xbf16>, vector<128x128xbf16>, vector<128x128xf32> -> vector<128x128xf32>
    %cst_58 = arith.constant 0.000000e+00 : bf16
    %119 = vector.broadcast %cst_58 : bf16 to vector<8x4x128xbf16>
    %120 = vector.extract_strided_slice %101 {offsets = [0, 0, 0], sizes = [8, 12, 128], strides = [1, 1, 1]} : vector<8x16x128xbf16> to vector<8x12x128xbf16>
    %121 = tpu.concatenate %119, %120 in 1 : vector<8x4x128xbf16>, vector<8x12x128xbf16> -> vector<8x16x128xbf16>
    %122 = vector.shape_cast %121 : vector<8x16x128xbf16> to vector<128x128xbf16>
    %c1_59 = arith.constant 1 : index
    %c0_60 = arith.constant 0 : index
    %c0_61 = arith.constant 0 : index
    %123 = vector.load %arg5[%c1_59, %c0_60, %c0_61] : memref<9x128x128xbf16, #tpu.memory_space<vmem>>, vector<1x128x128xbf16>
    %124 = vector.shape_cast %123 : vector<1x128x128xbf16> to vector<128x128xbf16>
    %cst_62 = arith.constant dense<0.000000e+00> : vector<128x128xf32>
    %125 = tpu.matmul %122, %124, %cst_62 {dimension_numbers = #tpu.dot_dimension_numbers<[1], [0], [0], [1], [0, 0, 1, 1], [], []>} : vector<128x128xbf16>, vector<128x128xbf16>, vector<128x128xf32> -> vector<128x128xf32>
    %126 = arith.addf %118, %125 : vector<128x128xf32>
    %cst_63 = arith.constant 0.000000e+00 : bf16
    %127 = vector.broadcast %cst_63 : bf16 to vector<8x3x128xbf16>
    %128 = vector.extract_strided_slice %111 {offsets = [0, 0, 0], sizes = [8, 13, 128], strides = [1, 1, 1]} : vector<8x16x128xbf16> to vector<8x13x128xbf16>
    %129 = tpu.concatenate %127, %128 in 1 : vector<8x3x128xbf16>, vector<8x13x128xbf16> -> vector<8x16x128xbf16>
    %130 = vector.shape_cast %129 : vector<8x16x128xbf16> to vector<128x128xbf16>
    %c2_64 = arith.constant 2 : index
    %c0_65 = arith.constant 0 : index
    %c0_66 = arith.constant 0 : index
    %131 = vector.load %arg5[%c2_64, %c0_65, %c0_66] : memref<9x128x128xbf16, #tpu.memory_space<vmem>>, vector<1x128x128xbf16>
    %132 = vector.shape_cast %131 : vector<1x128x128xbf16> to vector<128x128xbf16>
    %cst_67 = arith.constant dense<0.000000e+00> : vector<128x128xf32>
    %133 = tpu.matmul %130, %132, %cst_67 {dimension_numbers = #tpu.dot_dimension_numbers<[1], [0], [0], [1], [0, 0, 1, 1], [], []>} : vector<128x128xbf16>, vector<128x128xbf16>, vector<128x128xf32> -> vector<128x128xf32>
    %134 = arith.addf %126, %133 : vector<128x128xf32>
    %cst_68 = arith.constant 0.000000e+00 : bf16
    %135 = vector.broadcast %cst_68 : bf16 to vector<8x1x128xbf16>
    %136 = vector.extract_strided_slice %108 {offsets = [0, 0, 0], sizes = [8, 15, 128], strides = [1, 1, 1]} : vector<8x16x128xbf16> to vector<8x15x128xbf16>
    %137 = tpu.concatenate %135, %136 in 1 : vector<8x1x128xbf16>, vector<8x15x128xbf16> -> vector<8x16x128xbf16>
    %138 = vector.shape_cast %137 : vector<8x16x128xbf16> to vector<128x128xbf16>
    %c3_69 = arith.constant 3 : index
    %c0_70 = arith.constant 0 : index
    %c0_71 = arith.constant 0 : index
    %139 = vector.load %arg5[%c3_69, %c0_70, %c0_71] : memref<9x128x128xbf16, #tpu.memory_space<vmem>>, vector<1x128x128xbf16>
    %140 = vector.shape_cast %139 : vector<1x128x128xbf16> to vector<128x128xbf16>
    %cst_72 = arith.constant dense<0.000000e+00> : vector<128x128xf32>
    %141 = tpu.matmul %138, %140, %cst_72 {dimension_numbers = #tpu.dot_dimension_numbers<[1], [0], [0], [1], [0, 0, 1, 1], [], []>} : vector<128x128xbf16>, vector<128x128xbf16>, vector<128x128xf32> -> vector<128x128xf32>
    %142 = arith.addf %134, %141 : vector<128x128xf32>
    %143 = vector.shape_cast %101 : vector<8x16x128xbf16> to vector<128x128xbf16>
    %c4_73 = arith.constant 4 : index
    %c0_74 = arith.constant 0 : index
    %c0_75 = arith.constant 0 : index
    %144 = vector.load %arg5[%c4_73, %c0_74, %c0_75] : memref<9x128x128xbf16, #tpu.memory_space<vmem>>, vector<1x128x128xbf16>
    %145 = vector.shape_cast %144 : vector<1x128x128xbf16> to vector<128x128xbf16>
    %cst_76 = arith.constant dense<0.000000e+00> : vector<128x128xf32>
    %146 = tpu.matmul %143, %145, %cst_76 {dimension_numbers = #tpu.dot_dimension_numbers<[1], [0], [0], [1], [0, 0, 1, 1], [], []>} : vector<128x128xbf16>, vector<128x128xbf16>, vector<128x128xf32> -> vector<128x128xf32>
    %147 = arith.addf %142, %146 : vector<128x128xf32>
    %cst_77 = arith.constant 0.000000e+00 : bf16
    %148 = vector.broadcast %cst_77 : bf16 to vector<8x1x128xbf16>
    %149 = vector.extract_strided_slice %111 {offsets = [0, 1, 0], sizes = [8, 15, 128], strides = [1, 1, 1]} : vector<8x16x128xbf16> to vector<8x15x128xbf16>
    %150 = tpu.concatenate %149, %148 in 1 : vector<8x15x128xbf16>, vector<8x1x128xbf16> -> vector<8x16x128xbf16>
    %151 = vector.shape_cast %150 : vector<8x16x128xbf16> to vector<128x128xbf16>
    %c5_78 = arith.constant 5 : index
    %c0_79 = arith.constant 0 : index
    %c0_80 = arith.constant 0 : index
    %152 = vector.load %arg5[%c5_78, %c0_79, %c0_80] : memref<9x128x128xbf16, #tpu.memory_space<vmem>>, vector<1x128x128xbf16>
    %153 = vector.shape_cast %152 : vector<1x128x128xbf16> to vector<128x128xbf16>
    %cst_81 = arith.constant dense<0.000000e+00> : vector<128x128xf32>
    %154 = tpu.matmul %151, %153, %cst_81 {dimension_numbers = #tpu.dot_dimension_numbers<[1], [0], [0], [1], [0, 0, 1, 1], [], []>} : vector<128x128xbf16>, vector<128x128xbf16>, vector<128x128xf32> -> vector<128x128xf32>
    %155 = arith.addf %147, %154 : vector<128x128xf32>
    %cst_82 = arith.constant 0.000000e+00 : bf16
    %156 = vector.broadcast %cst_82 : bf16 to vector<8x3x128xbf16>
    %157 = vector.extract_strided_slice %108 {offsets = [0, 3, 0], sizes = [8, 13, 128], strides = [1, 1, 1]} : vector<8x16x128xbf16> to vector<8x13x128xbf16>
    %158 = tpu.concatenate %157, %156 in 1 : vector<8x13x128xbf16>, vector<8x3x128xbf16> -> vector<8x16x128xbf16>
    %159 = vector.shape_cast %158 : vector<8x16x128xbf16> to vector<128x128xbf16>
    %c6_83 = arith.constant 6 : index
    %c0_84 = arith.constant 0 : index
    %c0_85 = arith.constant 0 : index
    %160 = vector.load %arg5[%c6_83, %c0_84, %c0_85] : memref<9x128x128xbf16, #tpu.memory_space<vmem>>, vector<1x128x128xbf16>
    %161 = vector.shape_cast %160 : vector<1x128x128xbf16> to vector<128x128xbf16>
    %cst_86 = arith.constant dense<0.000000e+00> : vector<128x128xf32>
    %162 = tpu.matmul %159, %161, %cst_86 {dimension_numbers = #tpu.dot_dimension_numbers<[1], [0], [0], [1], [0, 0, 1, 1], [], []>} : vector<128x128xbf16>, vector<128x128xbf16>, vector<128x128xf32> -> vector<128x128xf32>
    %163 = arith.addf %155, %162 : vector<128x128xf32>
    %cst_87 = arith.constant 0.000000e+00 : bf16
    %164 = vector.broadcast %cst_87 : bf16 to vector<8x4x128xbf16>
    %165 = vector.extract_strided_slice %101 {offsets = [0, 4, 0], sizes = [8, 12, 128], strides = [1, 1, 1]} : vector<8x16x128xbf16> to vector<8x12x128xbf16>
    %166 = tpu.concatenate %165, %164 in 1 : vector<8x12x128xbf16>, vector<8x4x128xbf16> -> vector<8x16x128xbf16>
    %167 = vector.shape_cast %166 : vector<8x16x128xbf16> to vector<128x128xbf16>
    %c7_88 = arith.constant 7 : index
    %c0_89 = arith.constant 0 : index
    %c0_90 = arith.constant 0 : index
    %168 = vector.load %arg5[%c7_88, %c0_89, %c0_90] : memref<9x128x128xbf16, #tpu.memory_space<vmem>>, vector<1x128x128xbf16>
    %169 = vector.shape_cast %168 : vector<1x128x128xbf16> to vector<128x128xbf16>
    %cst_91 = arith.constant dense<0.000000e+00> : vector<128x128xf32>
    %170 = tpu.matmul %167, %169, %cst_91 {dimension_numbers = #tpu.dot_dimension_numbers<[1], [0], [0], [1], [0, 0, 1, 1], [], []>} : vector<128x128xbf16>, vector<128x128xbf16>, vector<128x128xf32> -> vector<128x128xf32>
    %171 = arith.addf %163, %170 : vector<128x128xf32>
    %cst_92 = arith.constant 0.000000e+00 : bf16
    %172 = vector.broadcast %cst_92 : bf16 to vector<8x5x128xbf16>
    %173 = vector.extract_strided_slice %111 {offsets = [0, 5, 0], sizes = [8, 11, 128], strides = [1, 1, 1]} : vector<8x16x128xbf16> to vector<8x11x128xbf16>
    %174 = tpu.concatenate %173, %172 in 1 : vector<8x11x128xbf16>, vector<8x5x128xbf16> -> vector<8x16x128xbf16>
    %175 = vector.shape_cast %174 : vector<8x16x128xbf16> to vector<128x128xbf16>
    %c8_93 = arith.constant 8 : index
    %c0_94 = arith.constant 0 : index
    %c0_95 = arith.constant 0 : index
    %176 = vector.load %arg5[%c8_93, %c0_94, %c0_95] : memref<9x128x128xbf16, #tpu.memory_space<vmem>>, vector<1x128x128xbf16>
    %177 = vector.shape_cast %176 : vector<1x128x128xbf16> to vector<128x128xbf16>
    %cst_96 = arith.constant dense<0.000000e+00> : vector<128x128xf32>
    %178 = tpu.matmul %175, %177, %cst_96 {dimension_numbers = #tpu.dot_dimension_numbers<[1], [0], [0], [1], [0, 0, 1, 1], [], []>} : vector<128x128xbf16>, vector<128x128xbf16>, vector<128x128xf32> -> vector<128x128xf32>
    %179 = arith.addf %171, %178 : vector<128x128xf32>
    %180 = vector.shape_cast %103 : vector<128xf32> to vector<1x128xf32>
    %181 = vector.broadcast %180 : vector<1x128xf32> to vector<128x128xf32>
    %182 = arith.mulf %179, %181 : vector<128x128xf32>
    %183 = vector.shape_cast %105 : vector<128xf32> to vector<1x128xf32>
    %184 = vector.broadcast %183 : vector<1x128xf32> to vector<128x128xf32>
    %185 = arith.addf %182, %184 : vector<128x128xf32>
    %cst_97 = arith.constant 0.000000e+00 : f32
    %186 = vector.broadcast %cst_97 : f32 to vector<128x128xf32>
    %187 = arith.maximumf %185, %186 : vector<128x128xf32>
    %188 = arith.truncf %187 : vector<128x128xf32> to vector<128x128xbf16>
    %189 = vector.shape_cast %188 : vector<128x128xbf16> to vector<8x16x128xbf16>
    %c4_98 = arith.constant 4 : index
    %c0_99 = arith.constant 0 : index
    %190 = vector.load %arg7[%c4_98, %c0_99] : memref<6x128xf32, #tpu.memory_space<vmem>>, vector<1x128xf32>
    %191 = vector.shape_cast %190 : vector<1x128xf32> to vector<128xf32>
    %c5_100 = arith.constant 5 : index
    %c0_101 = arith.constant 0 : index
    %192 = vector.load %arg7[%c5_100, %c0_101] : memref<6x128xf32, #tpu.memory_space<vmem>>, vector<1x128xf32>
    %193 = vector.shape_cast %192 : vector<1x128xf32> to vector<128xf32>
    %194 = vector.shape_cast %11 : vector<16x1xbf16> to vector<1x16x1xbf16>
    %195 = vector.broadcast %194 : vector<1x16x1xbf16> to vector<8x16x128xbf16>
    %196 = arith.mulf %189, %195 : vector<8x16x128xbf16>
    %197 = vector.shape_cast %13 : vector<16x1xbf16> to vector<1x16x1xbf16>
    %198 = vector.broadcast %197 : vector<1x16x1xbf16> to vector<8x16x128xbf16>
    %199 = arith.mulf %189, %198 : vector<8x16x128xbf16>
    %cst_102 = arith.constant 0.000000e+00 : bf16
    %200 = vector.broadcast %cst_102 : bf16 to vector<8x5x128xbf16>
    %201 = vector.extract_strided_slice %196 {offsets = [0, 0, 0], sizes = [8, 11, 128], strides = [1, 1, 1]} : vector<8x16x128xbf16> to vector<8x11x128xbf16>
    %202 = tpu.concatenate %200, %201 in 1 : vector<8x5x128xbf16>, vector<8x11x128xbf16> -> vector<8x16x128xbf16>
    %203 = vector.shape_cast %202 : vector<8x16x128xbf16> to vector<128x128xbf16>
    %c0_103 = arith.constant 0 : index
    %c0_104 = arith.constant 0 : index
    %c0_105 = arith.constant 0 : index
    %204 = vector.load %arg6[%c0_103, %c0_104, %c0_105] : memref<9x128x128xbf16, #tpu.memory_space<vmem>>, vector<1x128x128xbf16>
    %205 = vector.shape_cast %204 : vector<1x128x128xbf16> to vector<128x128xbf16>
    %cst_106 = arith.constant dense<0.000000e+00> : vector<128x128xf32>
    %206 = tpu.matmul %203, %205, %cst_106 {dimension_numbers = #tpu.dot_dimension_numbers<[1], [0], [0], [1], [0, 0, 1, 1], [], []>} : vector<128x128xbf16>, vector<128x128xbf16>, vector<128x128xf32> -> vector<128x128xf32>
    %cst_107 = arith.constant 0.000000e+00 : bf16
    %207 = vector.broadcast %cst_107 : bf16 to vector<8x4x128xbf16>
    %208 = vector.extract_strided_slice %189 {offsets = [0, 0, 0], sizes = [8, 12, 128], strides = [1, 1, 1]} : vector<8x16x128xbf16> to vector<8x12x128xbf16>
    %209 = tpu.concatenate %207, %208 in 1 : vector<8x4x128xbf16>, vector<8x12x128xbf16> -> vector<8x16x128xbf16>
    %210 = vector.shape_cast %209 : vector<8x16x128xbf16> to vector<128x128xbf16>
    %c1_108 = arith.constant 1 : index
    %c0_109 = arith.constant 0 : index
    %c0_110 = arith.constant 0 : index
    %211 = vector.load %arg6[%c1_108, %c0_109, %c0_110] : memref<9x128x128xbf16, #tpu.memory_space<vmem>>, vector<1x128x128xbf16>
    %212 = vector.shape_cast %211 : vector<1x128x128xbf16> to vector<128x128xbf16>
    %cst_111 = arith.constant dense<0.000000e+00> : vector<128x128xf32>
    %213 = tpu.matmul %210, %212, %cst_111 {dimension_numbers = #tpu.dot_dimension_numbers<[1], [0], [0], [1], [0, 0, 1, 1], [], []>} : vector<128x128xbf16>, vector<128x128xbf16>, vector<128x128xf32> -> vector<128x128xf32>
    %214 = arith.addf %206, %213 : vector<128x128xf32>
    %cst_112 = arith.constant 0.000000e+00 : bf16
    %215 = vector.broadcast %cst_112 : bf16 to vector<8x3x128xbf16>
    %216 = vector.extract_strided_slice %199 {offsets = [0, 0, 0], sizes = [8, 13, 128], strides = [1, 1, 1]} : vector<8x16x128xbf16> to vector<8x13x128xbf16>
    %217 = tpu.concatenate %215, %216 in 1 : vector<8x3x128xbf16>, vector<8x13x128xbf16> -> vector<8x16x128xbf16>
    %218 = vector.shape_cast %217 : vector<8x16x128xbf16> to vector<128x128xbf16>
    %c2_113 = arith.constant 2 : index
    %c0_114 = arith.constant 0 : index
    %c0_115 = arith.constant 0 : index
    %219 = vector.load %arg6[%c2_113, %c0_114, %c0_115] : memref<9x128x128xbf16, #tpu.memory_space<vmem>>, vector<1x128x128xbf16>
    %220 = vector.shape_cast %219 : vector<1x128x128xbf16> to vector<128x128xbf16>
    %cst_116 = arith.constant dense<0.000000e+00> : vector<128x128xf32>
    %221 = tpu.matmul %218, %220, %cst_116 {dimension_numbers = #tpu.dot_dimension_numbers<[1], [0], [0], [1], [0, 0, 1, 1], [], []>} : vector<128x128xbf16>, vector<128x128xbf16>, vector<128x128xf32> -> vector<128x128xf32>
    %222 = arith.addf %214, %221 : vector<128x128xf32>
    %cst_117 = arith.constant 0.000000e+00 : bf16
    %223 = vector.broadcast %cst_117 : bf16 to vector<8x1x128xbf16>
    %224 = vector.extract_strided_slice %196 {offsets = [0, 0, 0], sizes = [8, 15, 128], strides = [1, 1, 1]} : vector<8x16x128xbf16> to vector<8x15x128xbf16>
    %225 = tpu.concatenate %223, %224 in 1 : vector<8x1x128xbf16>, vector<8x15x128xbf16> -> vector<8x16x128xbf16>
    %226 = vector.shape_cast %225 : vector<8x16x128xbf16> to vector<128x128xbf16>
    %c3_118 = arith.constant 3 : index
    %c0_119 = arith.constant 0 : index
    %c0_120 = arith.constant 0 : index
    %227 = vector.load %arg6[%c3_118, %c0_119, %c0_120] : memref<9x128x128xbf16, #tpu.memory_space<vmem>>, vector<1x128x128xbf16>
    %228 = vector.shape_cast %227 : vector<1x128x128xbf16> to vector<128x128xbf16>
    %cst_121 = arith.constant dense<0.000000e+00> : vector<128x128xf32>
    %229 = tpu.matmul %226, %228, %cst_121 {dimension_numbers = #tpu.dot_dimension_numbers<[1], [0], [0], [1], [0, 0, 1, 1], [], []>} : vector<128x128xbf16>, vector<128x128xbf16>, vector<128x128xf32> -> vector<128x128xf32>
    %230 = arith.addf %222, %229 : vector<128x128xf32>
    %231 = vector.shape_cast %189 : vector<8x16x128xbf16> to vector<128x128xbf16>
    %c4_122 = arith.constant 4 : index
    %c0_123 = arith.constant 0 : index
    %c0_124 = arith.constant 0 : index
    %232 = vector.load %arg6[%c4_122, %c0_123, %c0_124] : memref<9x128x128xbf16, #tpu.memory_space<vmem>>, vector<1x128x128xbf16>
    %233 = vector.shape_cast %232 : vector<1x128x128xbf16> to vector<128x128xbf16>
    %cst_125 = arith.constant dense<0.000000e+00> : vector<128x128xf32>
    %234 = tpu.matmul %231, %233, %cst_125 {dimension_numbers = #tpu.dot_dimension_numbers<[1], [0], [0], [1], [0, 0, 1, 1], [], []>} : vector<128x128xbf16>, vector<128x128xbf16>, vector<128x128xf32> -> vector<128x128xf32>
    %235 = arith.addf %230, %234 : vector<128x128xf32>
    %cst_126 = arith.constant 0.000000e+00 : bf16
    %236 = vector.broadcast %cst_126 : bf16 to vector<8x1x128xbf16>
    %237 = vector.extract_strided_slice %199 {offsets = [0, 1, 0], sizes = [8, 15, 128], strides = [1, 1, 1]} : vector<8x16x128xbf16> to vector<8x15x128xbf16>
    %238 = tpu.concatenate %237, %236 in 1 : vector<8x15x128xbf16>, vector<8x1x128xbf16> -> vector<8x16x128xbf16>
    %239 = vector.shape_cast %238 : vector<8x16x128xbf16> to vector<128x128xbf16>
    %c5_127 = arith.constant 5 : index
    %c0_128 = arith.constant 0 : index
    %c0_129 = arith.constant 0 : index
    %240 = vector.load %arg6[%c5_127, %c0_128, %c0_129] : memref<9x128x128xbf16, #tpu.memory_space<vmem>>, vector<1x128x128xbf16>
    %241 = vector.shape_cast %240 : vector<1x128x128xbf16> to vector<128x128xbf16>
    %cst_130 = arith.constant dense<0.000000e+00> : vector<128x128xf32>
    %242 = tpu.matmul %239, %241, %cst_130 {dimension_numbers = #tpu.dot_dimension_numbers<[1], [0], [0], [1], [0, 0, 1, 1], [], []>} : vector<128x128xbf16>, vector<128x128xbf16>, vector<128x128xf32> -> vector<128x128xf32>
    %243 = arith.addf %235, %242 : vector<128x128xf32>
    %cst_131 = arith.constant 0.000000e+00 : bf16
    %244 = vector.broadcast %cst_131 : bf16 to vector<8x3x128xbf16>
    %245 = vector.extract_strided_slice %196 {offsets = [0, 3, 0], sizes = [8, 13, 128], strides = [1, 1, 1]} : vector<8x16x128xbf16> to vector<8x13x128xbf16>
    %246 = tpu.concatenate %245, %244 in 1 : vector<8x13x128xbf16>, vector<8x3x128xbf16> -> vector<8x16x128xbf16>
    %247 = vector.shape_cast %246 : vector<8x16x128xbf16> to vector<128x128xbf16>
    %c6_132 = arith.constant 6 : index
    %c0_133 = arith.constant 0 : index
    %c0_134 = arith.constant 0 : index
    %248 = vector.load %arg6[%c6_132, %c0_133, %c0_134] : memref<9x128x128xbf16, #tpu.memory_space<vmem>>, vector<1x128x128xbf16>
    %249 = vector.shape_cast %248 : vector<1x128x128xbf16> to vector<128x128xbf16>
    %cst_135 = arith.constant dense<0.000000e+00> : vector<128x128xf32>
    %250 = tpu.matmul %247, %249, %cst_135 {dimension_numbers = #tpu.dot_dimension_numbers<[1], [0], [0], [1], [0, 0, 1, 1], [], []>} : vector<128x128xbf16>, vector<128x128xbf16>, vector<128x128xf32> -> vector<128x128xf32>
    %251 = arith.addf %243, %250 : vector<128x128xf32>
    %cst_136 = arith.constant 0.000000e+00 : bf16
    %252 = vector.broadcast %cst_136 : bf16 to vector<8x4x128xbf16>
    %253 = vector.extract_strided_slice %189 {offsets = [0, 4, 0], sizes = [8, 12, 128], strides = [1, 1, 1]} : vector<8x16x128xbf16> to vector<8x12x128xbf16>
    %254 = tpu.concatenate %253, %252 in 1 : vector<8x12x128xbf16>, vector<8x4x128xbf16> -> vector<8x16x128xbf16>
    %255 = vector.shape_cast %254 : vector<8x16x128xbf16> to vector<128x128xbf16>
    %c7_137 = arith.constant 7 : index
    %c0_138 = arith.constant 0 : index
    %c0_139 = arith.constant 0 : index
    %256 = vector.load %arg6[%c7_137, %c0_138, %c0_139] : memref<9x128x128xbf16, #tpu.memory_space<vmem>>, vector<1x128x128xbf16>
    %257 = vector.shape_cast %256 : vector<1x128x128xbf16> to vector<128x128xbf16>
    %cst_140 = arith.constant dense<0.000000e+00> : vector<128x128xf32>
    %258 = tpu.matmul %255, %257, %cst_140 {dimension_numbers = #tpu.dot_dimension_numbers<[1], [0], [0], [1], [0, 0, 1, 1], [], []>} : vector<128x128xbf16>, vector<128x128xbf16>, vector<128x128xf32> -> vector<128x128xf32>
    %259 = arith.addf %251, %258 : vector<128x128xf32>
    %cst_141 = arith.constant 0.000000e+00 : bf16
    %260 = vector.broadcast %cst_141 : bf16 to vector<8x5x128xbf16>
    %261 = vector.extract_strided_slice %199 {offsets = [0, 5, 0], sizes = [8, 11, 128], strides = [1, 1, 1]} : vector<8x16x128xbf16> to vector<8x11x128xbf16>
    %262 = tpu.concatenate %261, %260 in 1 : vector<8x11x128xbf16>, vector<8x5x128xbf16> -> vector<8x16x128xbf16>
    %263 = vector.shape_cast %262 : vector<8x16x128xbf16> to vector<128x128xbf16>
    %c8_142 = arith.constant 8 : index
    %c0_143 = arith.constant 0 : index
    %c0_144 = arith.constant 0 : index
    %264 = vector.load %arg6[%c8_142, %c0_143, %c0_144] : memref<9x128x128xbf16, #tpu.memory_space<vmem>>, vector<1x128x128xbf16>
    %265 = vector.shape_cast %264 : vector<1x128x128xbf16> to vector<128x128xbf16>
    %cst_145 = arith.constant dense<0.000000e+00> : vector<128x128xf32>
    %266 = tpu.matmul %263, %265, %cst_145 {dimension_numbers = #tpu.dot_dimension_numbers<[1], [0], [0], [1], [0, 0, 1, 1], [], []>} : vector<128x128xbf16>, vector<128x128xbf16>, vector<128x128xf32> -> vector<128x128xf32>
    %267 = arith.addf %259, %266 : vector<128x128xf32>
    %268 = vector.shape_cast %191 : vector<128xf32> to vector<1x128xf32>
    %269 = vector.broadcast %268 : vector<1x128xf32> to vector<128x128xf32>
    %270 = arith.mulf %267, %269 : vector<128x128xf32>
    %271 = vector.shape_cast %193 : vector<128xf32> to vector<1x128xf32>
    %272 = vector.broadcast %271 : vector<1x128xf32> to vector<128x128xf32>
    %273 = arith.addf %270, %272 : vector<128x128xf32>
    %cst_146 = arith.constant 0.000000e+00 : f32
    %274 = vector.broadcast %cst_146 : f32 to vector<128x128xf32>
    %275 = arith.maximumf %273, %274 : vector<128x128xf32>
    %276 = arith.truncf %275 : vector<128x128xf32> to vector<128x128xbf16>
    %277 = vector.shape_cast %276 : vector<128x128xbf16> to vector<8x16x128xbf16>
    %278 = vector.shape_cast %277 : vector<8x16x128xbf16> to vector<128x128xbf16>
    %c0_147 = arith.constant 0 : index
    %c0_148 = arith.constant 0 : index
    %279 = vector.load %arg8[%c0_147, %c0_148] : memref<128x64xbf16, #tpu.memory_space<vmem>>, vector<128x64xbf16>
    %cst_149 = arith.constant dense<0.000000e+00> : vector<128x64xf32>
    %280 = tpu.matmul %278, %279, %cst_149 {dimension_numbers = #tpu.dot_dimension_numbers<[1], [0], [0], [1], [0, 0, 1, 1], [], []>} : vector<128x128xbf16>, vector<128x64xbf16>, vector<128x64xf32> -> vector<128x64xf32>
    %c0_150 = arith.constant 0 : index
    %c0_151 = arith.constant 0 : index
    %281 = vector.load %arg9[%c0_150, %c0_151] : memref<2x64xf32, #tpu.memory_space<vmem>>, vector<1x64xf32>
    %282 = vector.shape_cast %281 : vector<1x64xf32> to vector<64xf32>
    %283 = vector.shape_cast %282 : vector<64xf32> to vector<1x64xf32>
    %284 = vector.broadcast %283 : vector<1x64xf32> to vector<128x64xf32>
    %285 = arith.mulf %280, %284 : vector<128x64xf32>
    %c1_152 = arith.constant 1 : index
    %c0_153 = arith.constant 0 : index
    %286 = vector.load %arg9[%c1_152, %c0_153] : memref<2x64xf32, #tpu.memory_space<vmem>>, vector<1x64xf32>
    %287 = vector.shape_cast %286 : vector<1x64xf32> to vector<64xf32>
    %288 = vector.shape_cast %287 : vector<64xf32> to vector<1x64xf32>
    %289 = vector.broadcast %288 : vector<1x64xf32> to vector<128x64xf32>
    %290 = arith.addf %285, %289 : vector<128x64xf32>
    %cst_154 = arith.constant 0.000000e+00 : f32
    %291 = vector.broadcast %cst_154 : f32 to vector<128x64xf32>
    %292 = arith.maximumf %290, %291 : vector<128x64xf32>
    %293 = arith.truncf %292 : vector<128x64xf32> to vector<128x64xbf16>
    %294 = vector.shape_cast %293 : vector<128x64xbf16> to vector<8x16x64xbf16>
    %295 = vector.extract_strided_slice %294 {offsets = [0, 0, 0], sizes = [8, 1, 64], strides = [1, 1, 1]} : vector<8x16x64xbf16> to vector<8x1x64xbf16>
    %296 = vector.shape_cast %295 : vector<8x1x64xbf16> to vector<8x64xbf16>
    %297 = vector.extract_strided_slice %294 {offsets = [0, 1, 0], sizes = [8, 1, 64], strides = [1, 1, 1]} : vector<8x16x64xbf16> to vector<8x1x64xbf16>
    %298 = vector.shape_cast %297 : vector<8x1x64xbf16> to vector<8x64xbf16>
    %299 = vector.extract_strided_slice %294 {offsets = [0, 2, 0], sizes = [8, 1, 64], strides = [1, 1, 1]} : vector<8x16x64xbf16> to vector<8x1x64xbf16>
    %300 = vector.shape_cast %299 : vector<8x1x64xbf16> to vector<8x64xbf16>
    %301 = vector.extract_strided_slice %294 {offsets = [0, 3, 0], sizes = [8, 1, 64], strides = [1, 1, 1]} : vector<8x16x64xbf16> to vector<8x1x64xbf16>
    %302 = vector.shape_cast %301 : vector<8x1x64xbf16> to vector<8x64xbf16>
    %303 = vector.extract_strided_slice %294 {offsets = [0, 4, 0], sizes = [8, 1, 64], strides = [1, 1, 1]} : vector<8x16x64xbf16> to vector<8x1x64xbf16>
    %304 = vector.shape_cast %303 : vector<8x1x64xbf16> to vector<8x64xbf16>
    %305 = vector.extract_strided_slice %294 {offsets = [0, 5, 0], sizes = [8, 1, 64], strides = [1, 1, 1]} : vector<8x16x64xbf16> to vector<8x1x64xbf16>
    %306 = vector.shape_cast %305 : vector<8x1x64xbf16> to vector<8x64xbf16>
    %307 = vector.extract_strided_slice %294 {offsets = [0, 6, 0], sizes = [8, 1, 64], strides = [1, 1, 1]} : vector<8x16x64xbf16> to vector<8x1x64xbf16>
    %308 = vector.shape_cast %307 : vector<8x1x64xbf16> to vector<8x64xbf16>
    %309 = vector.extract_strided_slice %294 {offsets = [0, 7, 0], sizes = [8, 1, 64], strides = [1, 1, 1]} : vector<8x16x64xbf16> to vector<8x1x64xbf16>
    %310 = vector.shape_cast %309 : vector<8x1x64xbf16> to vector<8x64xbf16>
    %311 = vector.extract_strided_slice %294 {offsets = [0, 8, 0], sizes = [8, 1, 64], strides = [1, 1, 1]} : vector<8x16x64xbf16> to vector<8x1x64xbf16>
    %312 = vector.shape_cast %311 : vector<8x1x64xbf16> to vector<8x64xbf16>
    %313 = vector.extract_strided_slice %294 {offsets = [0, 9, 0], sizes = [8, 1, 64], strides = [1, 1, 1]} : vector<8x16x64xbf16> to vector<8x1x64xbf16>
    %314 = vector.shape_cast %313 : vector<8x1x64xbf16> to vector<8x64xbf16>
    %315 = vector.extract_strided_slice %294 {offsets = [0, 10, 0], sizes = [8, 1, 64], strides = [1, 1, 1]} : vector<8x16x64xbf16> to vector<8x1x64xbf16>
    %316 = vector.shape_cast %315 : vector<8x1x64xbf16> to vector<8x64xbf16>
    %317 = vector.extract_strided_slice %294 {offsets = [0, 11, 0], sizes = [8, 1, 64], strides = [1, 1, 1]} : vector<8x16x64xbf16> to vector<8x1x64xbf16>
    %318 = vector.shape_cast %317 : vector<8x1x64xbf16> to vector<8x64xbf16>
    %319 = vector.extract_strided_slice %294 {offsets = [0, 12, 0], sizes = [8, 1, 64], strides = [1, 1, 1]} : vector<8x16x64xbf16> to vector<8x1x64xbf16>
    %320 = vector.shape_cast %319 : vector<8x1x64xbf16> to vector<8x64xbf16>
    %321 = vector.extract_strided_slice %294 {offsets = [0, 13, 0], sizes = [8, 1, 64], strides = [1, 1, 1]} : vector<8x16x64xbf16> to vector<8x1x64xbf16>
    %322 = vector.shape_cast %321 : vector<8x1x64xbf16> to vector<8x64xbf16>
    %323 = vector.extract_strided_slice %294 {offsets = [0, 14, 0], sizes = [8, 1, 64], strides = [1, 1, 1]} : vector<8x16x64xbf16> to vector<8x1x64xbf16>
    %324 = vector.shape_cast %323 : vector<8x1x64xbf16> to vector<8x64xbf16>
    %325 = vector.extract_strided_slice %294 {offsets = [0, 15, 0], sizes = [8, 1, 64], strides = [1, 1, 1]} : vector<8x16x64xbf16> to vector<8x1x64xbf16>
    %326 = vector.shape_cast %325 : vector<8x1x64xbf16> to vector<8x64xbf16>
    %327 = tpu.concatenate %296, %298, %300, %302, %304, %306, %308, %310, %312, %314, %316, %318, %320, %322, %324, %326 in 1 : vector<8x64xbf16>, vector<8x64xbf16>, vector<8x64xbf16>, vector<8x64xbf16>, vector<8x64xbf16>, vector<8x64xbf16>, vector<8x64xbf16>, vector<8x64xbf16>, vector<8x64xbf16>, vector<8x64xbf16>, vector<8x64xbf16>, vector<8x64xbf16>, vector<8x64xbf16>, vector<8x64xbf16>, vector<8x64xbf16>, vector<8x64xbf16> -> vector<8x1024xbf16>
    %c0_155 = arith.constant 0 : index
    %c0_156 = arith.constant 0 : index
    %328 = vector.load %arg10[%c0_155, %c0_156] : memref<1024x384xbf16, #tpu.memory_space<vmem>>, vector<1024x384xbf16>
    %cst_157 = arith.constant dense<0.000000e+00> : vector<8x384xf32>
    %329 = tpu.matmul %327, %328, %cst_157 {dimension_numbers = #tpu.dot_dimension_numbers<[1], [0], [0], [1], [0, 0, 1, 1], [], []>} : vector<8x1024xbf16>, vector<1024x384xbf16>, vector<8x384xf32> -> vector<8x384xf32>
    %c0_158 = arith.constant 0 : index
    %c0_159 = arith.constant 0 : index
    %330 = vector.load %arg11[%c0_158, %c0_159] : memref<1x384xf32, #tpu.memory_space<vmem>>, vector<1x384xf32>
    %331 = vector.broadcast %330 : vector<1x384xf32> to vector<8x384xf32>
    %332 = arith.addf %329, %331 : vector<8x384xf32>
    %333 = vector.extract_strided_slice %332 {offsets = [0, 0], sizes = [8, 4], strides = [1, 1]} : vector<8x384xf32> to vector<8x4xf32>
    %334 = vector.extract_strided_slice %332 {offsets = [0, 128], sizes = [8, 256], strides = [1, 1]} : vector<8x384xf32> to vector<8x256xf32>
    %cst_160 = arith.constant 0.000000e+00 : f32
    %335 = vector.broadcast %cst_160 : f32 to vector<8x256xf32>
    %336 = arith.maximumf %334, %335 : vector<8x256xf32>
    %cst_161 = arith.constant dense<0xFF800000> : vector<8xf32>
    %337 = vector.multi_reduction <maximumf>, %333, %cst_161 [1] : vector<8x4xf32> to vector<8xf32>
    %338 = vector.shape_cast %337 : vector<8xf32> to vector<8x1xf32>
    %339 = vector.broadcast %338 : vector<8x1xf32> to vector<8x4xf32>
    %340 = arith.subf %333, %339 : vector<8x4xf32>
    %341 = math.exp %340 : vector<8x4xf32>
    %cst_162 = arith.constant dense<0.000000e+00> : vector<8xf32>
    %342 = vector.multi_reduction <add>, %341, %cst_162 [1] : vector<8x4xf32> to vector<8xf32>
    %343 = vector.shape_cast %342 : vector<8xf32> to vector<8x1xf32>
    %344 = vector.broadcast %343 : vector<8x1xf32> to vector<8x4xf32>
    %345 = arith.divf %341, %344 : vector<8x4xf32>
    %c0_163 = arith.constant 0 : index
    %c0_164 = arith.constant 0 : index
    %346 = vector.load %arg12[%c0_163, %c0_164] : memref<2x256xf32, #tpu.memory_space<vmem>>, vector<1x256xf32>
    %347 = vector.broadcast %346 : vector<1x256xf32> to vector<8x256xf32>
    %348 = arith.mulf %336, %347 : vector<8x256xf32>
    %cst_165 = arith.constant dense<0.000000e+00> : vector<8xf32>
    %349 = vector.multi_reduction <add>, %348, %cst_165 [1] : vector<8x256xf32> to vector<8xf32>
    %350 = vector.shape_cast %349 : vector<8xf32> to vector<8x1xf32>
    %c1_166 = arith.constant 1 : index
    %c0_167 = arith.constant 0 : index
    %351 = vector.load %arg12[%c1_166, %c0_167] : memref<2x256xf32, #tpu.memory_space<vmem>>, vector<1x1xf32>
    %352 = vector.broadcast %351 : vector<1x1xf32> to vector<8x1xf32>
    %353 = arith.addf %350, %352 : vector<8x1xf32>
    %354 = math.tanh %353 : vector<8x1xf32>
    %cst_168 = arith.constant 0.000000e+00 : f32
    %355 = vector.broadcast %cst_168 : f32 to vector<8x123xf32>
    %356 = tpu.concatenate %345, %354, %355 in 1 : vector<8x4xf32>, vector<8x1xf32>, vector<8x123xf32> -> vector<8x128xf32>
    %c0_169 = arith.constant 0 : index
    %c0_170 = arith.constant 0 : index
    %357 = vector.load %arg13[%c0_169, %c0_170] : memref<8x128xf32, #tpu.memory_space<vmem>>, vector<8x128xf32>
    tpu.vector_store %arg13[%c0_169, %c0_170], %356 {strides = array<i32>} : memref<8x128xf32, #tpu.memory_space<vmem>>, vector<8x128xf32>,
    return
  }
  func.func @transform_0(%arg0: i32) -> (i32, i32) {
    %c0_i32 = arith.constant 0 : i32
    %c0_i32_0 = arith.constant 0 : i32
    return %arg0, %c0_i32 : i32, i32
  }
  func.func @transform_1(%arg0: i32) -> (i32, i32) {
    %c0_i32 = arith.constant 0 : i32
    %c0_i32_0 = arith.constant 0 : i32
    %c0_i32_1 = arith.constant 0 : i32
    return %c0_i32, %c0_i32_0 : i32, i32
  }
  func.func @transform_2(%arg0: i32) -> (i32, i32, i32) {
    %c0_i32 = arith.constant 0 : i32
    %c0_i32_0 = arith.constant 0 : i32
    %c0_i32_1 = arith.constant 0 : i32
    %c0_i32_2 = arith.constant 0 : i32
    return %c0_i32, %c0_i32_0, %c0_i32_1 : i32, i32, i32
  }
  func.func @transform_3(%arg0: i32) -> (i32, i32, i32) {
    %c0_i32 = arith.constant 0 : i32
    %c0_i32_0 = arith.constant 0 : i32
    %c0_i32_1 = arith.constant 0 : i32
    %c0_i32_2 = arith.constant 0 : i32
    return %c0_i32, %c0_i32_0, %c0_i32_1 : i32, i32, i32
  }
  func.func @transform_4(%arg0: i32) -> (i32, i32, i32) {
    %c0_i32 = arith.constant 0 : i32
    %c0_i32_0 = arith.constant 0 : i32
    %c0_i32_1 = arith.constant 0 : i32
    %c0_i32_2 = arith.constant 0 : i32
    return %c0_i32, %c0_i32_0, %c0_i32_1 : i32, i32, i32
  }
  func.func @transform_5(%arg0: i32) -> (i32, i32, i32) {
    %c0_i32 = arith.constant 0 : i32
    %c0_i32_0 = arith.constant 0 : i32
    %c0_i32_1 = arith.constant 0 : i32
    %c0_i32_2 = arith.constant 0 : i32
    return %c0_i32, %c0_i32_0, %c0_i32_1 : i32, i32, i32
  }
  func.func @transform_6(%arg0: i32) -> (i32, i32) {
    %c0_i32 = arith.constant 0 : i32
    %c0_i32_0 = arith.constant 0 : i32
    %c0_i32_1 = arith.constant 0 : i32
    return %c0_i32, %c0_i32_0 : i32, i32
  }
  func.func @transform_7(%arg0: i32) -> (i32, i32) {
    %c0_i32 = arith.constant 0 : i32
    %c0_i32_0 = arith.constant 0 : i32
    %c0_i32_1 = arith.constant 0 : i32
    return %c0_i32, %c0_i32_0 : i32, i32
  }
  func.func @transform_8(%arg0: i32) -> (i32, i32) {
    %c0_i32 = arith.constant 0 : i32
    %c0_i32_0 = arith.constant 0 : i32
    %c0_i32_1 = arith.constant 0 : i32
    return %c0_i32, %c0_i32_0 : i32, i32
  }
  func.func @transform_9(%arg0: i32) -> (i32, i32) {
    %c0_i32 = arith.constant 0 : i32
    %c0_i32_0 = arith.constant 0 : i32
    %c0_i32_1 = arith.constant 0 : i32
    return %c0_i32, %c0_i32_0 : i32, i32
  }
  func.func @transform_10(%arg0: i32) -> (i32, i32) {
    %c0_i32 = arith.constant 0 : i32
    %c0_i32_0 = arith.constant 0 : i32
    %c0_i32_1 = arith.constant 0 : i32
    return %c0_i32, %c0_i32_0 : i32, i32
  }
  func.func @transform_11(%arg0: i32) -> (i32, i32) {
    %c0_i32 = arith.constant 0 : i32
    %c0_i32_0 = arith.constant 0 : i32
    %c0_i32_1 = arith.constant 0 : i32
    return %c0_i32, %c0_i32_0 : i32, i32
  }
  func.func @transform_12(%arg0: i32) -> (i32, i32) {
    %c0_i32 = arith.constant 0 : i32
    %c0_i32_0 = arith.constant 0 : i32
    return %arg0, %c0_i32 : i32, i32
  }
}

</mosaic_0001>

<bundles_post_ra>
// kernel: tpu_custom_call.1
= control target key start
LH: loop header
LB: loop body
LE: loop exit
PB: predicated region body
PF: predicated region fallthrough
CT: control target
= control target key end

     0   :  { %17 = vsyncpa [#allocation3], 0  ;;  %s13276_s0 = inlined_call_operand.vmem [shape: f32[8,16], index: 0, kind: input, shape index: {}]   ;;  %s13277_s1 = inlined_call_operand.vmem [shape: f32[1,16], index: 1, kind: input, shape index: {}]   ;;  %s13278_s2 = inlined_call_operand.vmem [shape: bf16[2,16,1], index: 2, kind: input, shape index: {}]   ;;  %s13279_s3 = inlined_call_operand.vmem [shape: bf16[9,16,128], index: 3, kind: input, shape index: {}]   ;;  %s13280_s4 = inlined_call_operand.hbm [shape: bf16[9,128,128], index: 4, kind: input, shape index: {}]   ;;  %s13281_s5 = inlined_call_operand.hbm [shape: bf16[9,128,128], index: 5, kind: input, shape index: {}]   ;;  %s13282_s6 = inlined_call_operand.vmem [shape: f32[6,128], index: 6, kind: input, shape index: {}]   ;;  %s13283_s7 = inlined_call_operand.vmem [shape: bf16[128,64], index: 7, kind: input, shape index: {}]   ;;  %s13284_s8 = inlined_call_operand.vmem [shape: f32[2,64], index: 8, kind: input, shape index: {}]   ;;  %s13285_s9 = inlined_call_operand.hbm [shape: bf16[1024,384], index: 9, kind: input, shape index: {}]   ;;  %s13286_s10 = inlined_call_operand.vmem [shape: f32[1,384], index: 10, kind: input, shape index: {}]   ;;  %s13287_s11 = inlined_call_operand.vmem [shape: f32[2,256], index: 11, kind: input, shape index: {}]   ;;  %s13288_s12 = inlined_call_operand.hbm [shape: f32[8,128], index: 12, kind: output, shape index: {}]  }
   0x1   :  { %18 = vsyncpa [#allocation6], 0 }
   0x2   :  { %19 = vsyncpa [#allocation4], 0  ;;  %s11004_s21 = smov [#allocation5]   ;;  %s11005_s23 = smov [#allocation2]  }
   0x3   :  { %s45_s22 = sshll.u32 %s11004_s21, 4  ;;  %s33_s24 = sshll.u32 %s11005_s23, 4  ;;  %s46_s22 = int_to_ptr.vmem [resolvable:$true] %s45_s22  ;;  %s11080_s24 = int_to_ptr.vmem [resolvable:$true] %s33_s24 }
   0x4   :  { %s10910_s27 = scalar_lea.hbm %s13281_s5, 9216 }
   0x5   :  { %p10911_p0 = scmp.ne.s32.totalorder %s13281_s5, %s10910_s27  ;;  %p10914_p1 = scmp.lt.u32.totalorder %s10910_s27, %s13281_s5 }
   0x7   :  { %p10916_p2 = pnand %p10914_p1, %p10911_p0 }
   0x9   :  { %10919 = shalt.err (!%p10916_p2)
}
   0xa   :  { %s10920_s14 = scalar_lea.vmem %s46_s22, 9216  ;;  %p10925_p4 = scmp.lt.s32.totalorder %s46_s22, %s46_s22 }
   0xb   :  { %p10921_p3 = scmp.ne.s32.totalorder %s46_s22, %s10920_s14  ;;  %p10926_p5 = scmp.lt.s32.totalorder %s10920_s14, %s10920_s14 }
   0xd   :  { %p10927_p6 = por %p10926_p5, %p10925_p4 }
   0xf   :  { %p10928_p7 = pnand %p10927_p6, %p10921_p3 }
  0x11   :  { %10931 = shalt.err (!%p10928_p7)
}
  0x12   :  { %s11006_s15 = smov 64   ;;  %s11007_s16 = smov 4  }
  0x13   :  { %51 = dma.hbm_to_vmem [thread:$0]  %s13281_s5, 9216, %s46_s22, [#allocation6], %s11006_s15, %s11006_s15, %s11007_s16  }
  0x14   :  { %s10932_s21 = scalar_lea.hbm %s13280_s4, 9216 }
  0x15   :  { %p10933_p8 = scmp.ne.s32.totalorder %s13280_s4, %s10932_s21  ;;  %p10936_p9 = scmp.lt.u32.totalorder %s10932_s21, %s13280_s4 }
  0x17   :  { %p10938_p10 = pnand %p10936_p9, %p10933_p8 }
  0x19   :  { %10941 = shalt.err (!%p10938_p10)
}
  0x1a   :  { %s10942_s28 = scalar_lea.vmem %s11080_s24, 9216  ;;  %p10947_p12 = scmp.lt.s32.totalorder %s11080_s24, %s11080_s24 }
  0x1b   :  { %p10943_p11 = scmp.ne.s32.totalorder %s11080_s24, %s10942_s28  ;;  %p10948_p13 = scmp.lt.s32.totalorder %s10942_s28, %s10942_s28 }
  0x1d   :  { %p10949_p0 = por %p10948_p13, %p10947_p12 }
  0x1f   :  { %p10950_p1 = pnand %p10949_p0, %p10943_p11 }
  0x21   :  { %10953 = shalt.err (!%p10950_p1)
}
  0x22   :  { %39 = dma.hbm_to_vmem [thread:$0]  %s13280_s4, 9216, %s11080_s24, [#allocation3], %s11006_s15, %s11006_s15, %s11007_s16  }
  0x23   :  { %s11008_s29 = smov [#allocation7]   ;;  %s10954_s17 = scalar_lea.hbm %s13285_s9, 24576 }
  0x24   :  { %s63_s30 = sshll.u32 %s11008_s29, 4  ;;  %p10955_p2 = scmp.ne.s32.totalorder %s13285_s9, %s10954_s17  ;;  %s64_s30 = int_to_ptr.vmem [resolvable:$true] %s63_s30 }
  0x25   :  { %p10958_p3 = scmp.lt.u32.totalorder %s10954_s17, %s13285_s9 }
  0x27   :  { %p10960_p4 = pnand %p10958_p3, %p10955_p2 }
  0x29   :  { %10963 = shalt.err (!%p10960_p4)
}
  0x2a   :  { %s10964_s23 = scalar_lea.vmem %s64_s30, 24576  ;;  %p10969_p6 = scmp.lt.s32.totalorder %s64_s30, %s64_s30 }
  0x2b   :  { %p10965_p5 = scmp.ne.s32.totalorder %s64_s30, %s10964_s23  ;;  %p10970_p7 = scmp.lt.s32.totalorder %s10964_s23, %s10964_s23 }
  0x2d   :  { %p10971_p8 = por %p10970_p7, %p10969_p6 }
  0x2f   :  { %p10972_p9 = pnand %p10971_p8, %p10965_p5 }
  0x31   :  { %10975 = shalt.err (!%p10972_p9)
}
  0x32   :  { %s11009_s4 = smov 192   ;;  %s11010_s24 = smov 12  }
  0x33   :  { %69 = dma.hbm_to_vmem [thread:$0]  %s13285_s9, 24576, %s64_s30, [#allocation6], %s11009_s4, %s11009_s4, %s11010_s24  }
  0x34   :  { %10998 = dma.done.wait [#allocation3], 9216  }
  0x35   :  { %10999 = vsyncadd [#allocation3], 4294958080 }
  0x36   :  { %11000 = dma.done.wait [#allocation6], 33792  }
  0x37   :  { %11001 = vsyncadd [#allocation6], 4294933504  ;;  %v85_v0 = vlaneseq  ;;  %v11011_v1 = vmov 0   ;;  %v84_v5 = vld [vmem:[%s13276_s0] sm:$0xff]  ;;  %v10487_v8 = vld [vmem:[%s13279_s3 + $0x8] sm:$0xff]   ;;  %v11012_v31 = vmov 0.0  }
  0x38   :  { %10486 = vset.pattern.permute.xlu1 %v11011_v1  ;;  %10485 = vset.pattern.permute.xlu0 %v11011_v1  ;;  %v11154_v15 = vld [vmem:[%s13279_s3] sm:$0xff]   ;;  %v8331_v24 = vld [vmem:[%s13278_s2 + $0x8] sm:$0xf]  ;;  %v8332_v25 = vld [vmem:[%s13278_s2 + $0xc] sm:$0xf]  ;;  %vm420_vm4 = vcmask 1041408  }
  0x39   :  { %v11129_v2 = vshrl.u32 %v85_v0, 7  ;;  %9306 = vmatprep.subr.bf16.mxu0 %v10487_v8  ;;  %v237_v20 = vld [vmem:[%s13278_s2 + $0x4] sm:$0xf]  ;;  %v236_v21 = vld [vmem:[%s13278_s2] sm:$0xf]  ;;  %vm447_vm5 = vcmask 130048  }
  0x3a   :  { %9307 = vmatpush3.bf16.msra.mxu0 %v10487_v8  ;;  %v11174_v26 = vld [vmem:[%s13277_s1] ss:$0 sm:$0xff]  ;;  %v11197_v44 = vld [vmem:[%s13279_s3 + $0x10] sm:$0xff]   ;;  %s11014_s2 = smov [#allocation8]  }
  0x3b   :  { %13330 = vst [vmem:[#allocation12_spill] sm:$0xff] %v11129_v2  ;;  %v11132_v3 = vsub.s32 1, %v11129_v2  ;;  %v11135_v4 = vsub.s32 0, %v11129_v2  ;;  %v13289_v9 = vsub.s32 2, %v11129_v2  ;;  %v120_v10 = vsub.s32 3, %v11129_v2  ;;  %9324 = vmatprep.subr.bf16.mxu0 %v11154_v15  ;;  %s8304_s4 = sshll.u32 %s11014_s2, 4  ;;  %s8305_s4 = int_to_ptr.vmem [resolvable:$true] %s8304_s4 }
  0x3c   :  { %v131_v11 = vsub.s32 4, %v11129_v2  ;;  %v142_v14 = vsub.s32 5, %v11129_v2  ;;  %v153_v17 = vsub.s32 6, %v11129_v2  ;;  %v164_v18 = vsub.s32 7, %v11129_v2  ;;  %p10981_p11 = scmp.lt.s32.totalorder %s8305_s4, %s8305_s4 }
  0x3d   :  { %13331 = vst [vmem:[#allocation13_spill] sm:$0xff] %v11132_v3  ;;  %13332 = vst [vmem:[#allocation14_spill] sm:$0xff] %v11135_v4  ;;  %v99_v6 = vrot.slane %v84_v5, %v11132_v3  ;;  %v88_v7 = vrot.slane %v84_v5, %v11135_v4  ;;  %v110_v12 = vrot.slane %v84_v5, %v13289_v9 }
  0x3e   :  { %v121_v13 = vrot.slane %v84_v5, %v120_v10  ;;  %v132_v16 = vrot.slane %v84_v5, %v131_v11  ;;  %v143_v19 = vrot.slane %v84_v5, %v142_v14  ;;  %v154_v22 = vrot.slane %v84_v5, %v153_v17 }
  0x3f   :  { %101 = vbcast.lane.b32.xlu1 %v99_v6, 256  ;;  %90 = vbcast.lane.b32.xlu0 %v88_v7, 256  ;;  %v165_v23 = vrot.slane %v84_v5, %v164_v18  ;;  %v11013_v10 = vmov 839922192  }
  0x40   :  { %v249_v11 = vunpack.c.l.s4 %v11013_v10 }
  0x43   :  { %105 = vbcast.lane.b32.xlu1 %v99_v6, 264  ;;  %94 = vbcast.lane.b32.xlu0 %v88_v7, 264 }
  0x47   :  { %116 = vbcast.lane.b32.xlu1 %v110_v12, 264  ;;  %112 = vbcast.lane.b32.xlu0 %v110_v12, 256 }
  0x4b   :  { %127 = vbcast.lane.b32.xlu1 %v121_v13, 264  ;;  %123 = vbcast.lane.b32.xlu0 %v121_v13, 256  ;;  %v250_v13 = vunpack.c.0.s8 %v249_v11 }
  0x4d   :  { %v11238_v14 = vsub.s32 %v250_v13, %v11129_v2 }
  0x4f   :  { %138 = vbcast.lane.b32.xlu1 %v132_v16, 264  ;;  %134 = vbcast.lane.b32.xlu0 %v132_v16, 256 }
  0x53   :  { %149 = vbcast.lane.b32.xlu1 %v143_v19, 264  ;;  %145 = vbcast.lane.b32.xlu0 %v143_v19, 256 }
  0x57   :  { %257 = vperm.xlu1 %10486, %v237_v20   ;;  %245 = vperm.xlu0 %10485, %v236_v21  }
  0x5b   :  { %156 = vbcast.lane.b32.xlu1 %v154_v22, 256  ;;  %160 = vbcast.lane.b32.xlu0 %v154_v22, 264 }
  0x5f   :  { %167 = vbcast.lane.b32.xlu1 %v165_v23, 256  ;;  %171 = vbcast.lane.b32.xlu0 %v165_v23, 264 }
  0x63   :  { %283 = vperm.xlu1 %10486, %v8331_v24   ;;  %295 = vperm.xlu0 %10485, %v8332_v25  }
  0xb1   :  { %v102_v27 = vpop.permute.xlu1 %101  ;;  %v91_v28 = vpop.permute.xlu0 %90 }
  0xb2   :  { %vm182_vm0 = vcmp.eq.f32.partialorder %v102_v27, %v11174_v26  ;;  %vm180_vm1 = vcmp.eq.f32.partialorder %v91_v28, %v11174_v26 }
  0xb3   :  { %v8317_v32 = vsel %vm182_vm0, 1.0, %v11012_v31  ;;  %v8315_v33 = vsel %vm180_vm1, 1.0, %v11012_v31  ;;  %vm392_vm0 = vsmask.f32 2304  ;;  %vm391_vm1 = vcmask 1042432  }
  0xb5   :  { %v106_v29 = vpop.permute.xlu1 %105  ;;  %v95_v30 = vpop.permute.xlu0 %94 }
  0xb6   :  { %vm183_vm2 = vcmp.eq.f32.partialorder %v106_v29, %v11174_v26  ;;  %vm181_vm3 = vcmp.eq.f32.partialorder %v95_v30, %v11174_v26 }
  0xb7   :  { %v8318_v34 = vsel %vm183_vm2, 1.0, %v11012_v31  ;;  %v8316_v35 = vsel %vm181_vm3, 1.0, %v11012_v31 }
  0xb8   :  { %v11184_v36 = vpack.c.bf16 %v8318_v34, %v8317_v32  ;;  %v11186_v37 = vpack.c.bf16 %v8316_v35, %v8315_v33 }
  0xb9   :  { %v117_v38 = vpop.permute.xlu1 %116  ;;  %v113_v39 = vpop.permute.xlu0 %112 }
  0xba   :  { %vm185_vm6 = vcmp.eq.f32.partialorder %v117_v38, %v11174_v26  ;;  %vm184_vm7 = vcmp.eq.f32.partialorder %v113_v39, %v11174_v26  ;;  %v412_v40 = vrot.slane %v11186_v37, 6  ;;  %v413_v41 = vrot.slane %v11184_v36, 6 }
  0xbb   :  { %v8320_v42 = vsel %vm185_vm6, 1.0, %v11012_v31  ;;  %v8319_v43 = vsel %vm184_vm7, 1.0, %v11012_v31  ;;  %vm11269_vm6 = vmand %vm391_vm1, %vm392_vm0  ;;  %vm761_vm7 = vsmask.f32 1280  ;;  %vm1458_vm0 = vsmask.f32 6400 }
  0xbc   :  { %v11199_v45 = vpack.c.bf16 %v8320_v42, %v8319_v43  ;;  %v423_v46 = vsel %vm420_vm4, 0, %v412_v40  ;;  %v425_v47 = vsel %vm420_vm4, 0, %v413_v41  ;;  %v13335_v41 = vmov 0 }
  0xbd   :  { %v128_v48 = vpop.permute.xlu1 %127  ;;  %9308 = vmatprep.mubr.msk.bf16.mxu0 %vm447_vm5, %v423_v46  ;;  %v124_v49 = vpop.permute.xlu0 %123  ;;  %v13336_v41 = vsel %vm11269_vm6, 4294967295, %v13335_v41 }
  0xbe   :  { %vm187_vm8 = vcmp.eq.f32.partialorder %v128_v48, %v11174_v26  ;;  %vm186_vm9 = vcmp.eq.f32.partialorder %v124_v49, %v11174_v26  ;;  %9309 = vmatmul.mubr.msk.bf16.vlgmr.msra.gmra.mrb[0].mxu0 %vm447_vm5, %v425_v47  ;;  %v414_v50 = vrot.slane %v11199_v45, 6  ;;  %13337 = vst [vmem:[#allocation17_spill] sm:$0xff] %v13336_v41 }
  0xbf   :  { %v8322_v51 = vsel %vm187_vm8, 1.0, %v11012_v31  ;;  %v8321_v52 = vsel %vm186_vm9, 1.0, %v11012_v31  ;;  %9325 = vmatpush3.bf16.msra.mxu0 %v11154_v15  ;;  %vm11432_vm8 = vmand %vm420_vm4, %vm761_vm7  ;;  %vm941_vm9 = vcmask 1040384  }
  0xc0   :  { %v11211_v53 = vpack.c.bf16 %v8322_v51, %v8321_v52  ;;  %v427_v54 = vsel %vm420_vm4, 0, %v414_v50  ;;  %9342 = vmatprep.subr.bf16.mxu0 %v11197_v44 }
  0xc1   :  { %v139_v55 = vpop.permute.xlu1 %138  ;;  %9312 = vmatprep.mubr.msk.bf16.mxu0 %vm447_vm5, %v427_v54  ;;  %v135_v56 = vpop.permute.xlu0 %134 }
  0xc2   :  { %vm189_vm10 = vcmp.eq.f32.partialorder %v139_v55, %v11174_v26  ;;  %vm188_vm11 = vcmp.eq.f32.partialorder %v135_v56, %v11174_v26  ;;  %v415_v57 = vrot.slane %v11211_v53, 6 }
  0xc3   :  { %v8324_v58 = vsel %vm189_vm10, 1.0, %v11012_v31  ;;  %v8323_v59 = vsel %vm188_vm11, 1.0, %v11012_v31  ;;  %vm942_vm10 = vsmask.f32 256 }
  0xc4   :  { %v11221_v60 = vpack.c.bf16 %v8324_v58, %v8323_v59  ;;  %v429_v61 = vsel %vm420_vm4, 0, %v415_v57  ;;  %vm11596_vm11 = vmand %vm941_vm9, %vm942_vm10  ;;  %vm6337_vm9 = vcmask 1044484   ;;  %vm6340_vm10 = vcmask 1045509  }
  0xc5   :  { %v150_v62 = vpop.permute.xlu1 %149  ;;  %v146_v63 = vpop.permute.xlu0 %145 }
  0xc6   :  { %vm191_vm12 = vcmp.eq.f32.partialorder %v150_v62, %v11174_v26  ;;  %vm190_vm13 = vcmp.eq.f32.partialorder %v146_v63, %v11174_v26  ;;  %9313 = vmatmul.mubr.msk.bf16.gmra.mrb[4].mxu0 %vm447_vm5, %v429_v61  ;;  %v416_v0 = vrot.slane %v11221_v60, 6 }
  0xc7   :  { %v8326_v1 = vsel %vm191_vm12, 1.0, %v11012_v31  ;;  %v8325_v5 = vsel %vm190_vm13, 1.0, %v11012_v31  ;;  %vm1268_vm12 = vcmask 1047552   ;;  %vm1269_vm13 = vsmask.f32 7424 }
  0xc8   :  { %v11230_v6 = vpack.c.bf16 %v8326_v1, %v8325_v5  ;;  %v431_v7 = vsel %vm420_vm4, 0, %v416_v0 }
  0xc9   :  { %9316 = vmatprep.mubr.msk.bf16.mxu0 %vm447_vm5, %v431_v7 }
  0xca   :  { %v417_v8 = vrot.slane %v11230_v6, 6 }
  0xcc   :  { %v433_v12 = vsel %vm420_vm4, 0, %v417_v8 }
  0xce   :  { %9317 = vmatmul.mubr.msk.bf16.gmra.mrb[8].mxu0 %vm447_vm5, %v433_v12 }
  0xd6   :  { %v258_v15 = vpop.permute.xlu1 %257  ;;  %v246_v16 = vpop.permute.xlu0 %245 }
  0xd7   :  { %v266_v17 = vrot.slane %v258_v15, %v11238_v14  ;;  %v254_v18 = vrot.slane %v246_v16, %v11238_v14 }
  0xd9   :  { %v11242_v19 = vcombine.low %v254_v18, %v266_v17 }
  0xda   :  { %v157_v20 = vpop.permute.xlu1 %156  ;;  %v161_v21 = vpop.permute.xlu0 %160 }
  0xdb   :  { %13333 = vst [vmem:[#allocation15_spill] sm:$0xff] %v11242_v19  ;;  %vm192_vm14 = vcmp.eq.f32.partialorder %v157_v20, %v11174_v26  ;;  %vm193_vm15 = vcmp.eq.f32.partialorder %v161_v21, %v11174_v26  ;;  %v273_v22 = vmul.bf16 %v11242_v19, %v11186_v37  ;;  %v274_v29 = vmul.bf16 %v11242_v19, %v11184_v36 }
  0xdc   :  { %v8327_v23 = vsel %vm192_vm14, 1.0, %v11012_v31  ;;  %v8328_v24 = vsel %vm193_vm15, 1.0, %v11012_v31  ;;  %v275_v33 = vmul.bf16 %v11242_v19, %v11199_v45  ;;  %v276_v52 = vmul.bf16 %v11242_v19, %v11211_v53  ;;  %vm11656_vm14 = vmand %vm1268_vm12, %vm1269_vm13 }
  0xdd   :  { %v11250_v25 = vpack.c.bf16 %v8328_v24, %v8327_v23  ;;  %v11252_v27 = vshrl.u32 %v273_v22, 16  ;;  %v11254_v28 = vshll.u32 %v273_v22, 16  ;;  %v11276_v43 = vshrl.u32 %v274_v29, 16 }
  0xde   :  { %v168_v30 = vpop.permute.xlu1 %167  ;;  %v172_v32 = vpop.permute.xlu0 %171  ;;  %v11278_v46 = vshll.u32 %v274_v29, 16  ;;  %v11283_v48 = vshll.u32 %v275_v33, 16  ;;  %v277_v61 = vmul.bf16 %v11242_v19, %v11221_v60  ;;  %v278_v0 = vmul.bf16 %v11242_v19, %v11230_v6 }
  0xdf   :  { %13334 = vst [vmem:[#allocation16_spill] sm:$0xff] %v11250_v25  ;;  %vm194_vm2 = vcmp.eq.f32.partialorder %v168_v30, %v11174_v26  ;;  %vm195_vm3 = vcmp.eq.f32.partialorder %v172_v32, %v11174_v26  ;;  %v418_v34 = vrot.slane %v11250_v25, 6  ;;  %v322_v35 = vrot.slane %v11252_v27, 5 }
  0xe0   :  { %v8329_v38 = vsel %vm194_vm2, 1.0, %v11012_v31  ;;  %v8330_v39 = vsel %vm195_vm3, 1.0, %v11012_v31  ;;  %v325_v40 = vrot.slane %v11254_v28, 6  ;;  %v11281_v31 = vshrl.u32 %v275_v33, 16 }
  0xe1   :  { %v11273_v42 = vpack.c.bf16 %v8330_v39, %v8329_v38  ;;  %v435_v26 = vsel %vm420_vm4, 0, %v418_v34  ;;  %v330_v55 = vrot.slane %v11276_v43, 5  ;;  %v333_v56 = vrot.slane %v11278_v46, 6 }
  0xe2   :  { %9320 = vmatprep.mubr.msk.bf16.mxu0 %vm447_vm5, %v435_v26  ;;  %v326_v47 = vor.u32 %v325_v40, %v322_v35  ;;  %v284_v50 = vpop.permute.xlu1 %283  ;;  %v296_v51 = vpop.permute.xlu0 %295  ;;  %v338_v58 = vrot.slane %v11281_v31, 5  ;;  %v341_v59 = vrot.slane %v11283_v48, 6  ;;  %v11303_v1 = vshrl.u32 %v276_v52, 16 }
  0xe3   :  { %13338 = vst [vmem:[#allocation18_spill] sm:$0xff] %v11273_v42  ;;  %v419_v49 = vrot.slane %v11273_v42, 6  ;;  %v292_v62 = vrot.slane %v284_v50, %v11238_v14  ;;  %v304_v63 = vrot.slane %v296_v51, %v11238_v14  ;;  %v11305_v5 = vshll.u32 %v276_v52, 16  ;;  %v11318_v14 = vld [vmem:[%s13279_s3 + $0x18] sm:$0xff]  }
  0xe4   :  { %v394_v57 = vsel %vm11269_vm6, 0, %v326_v47  ;;  %v279_v7 = vmul.bf16 %v11242_v19, %v11250_v25  ;;  %v334_v8 = vor.u32 %v333_v56, %v330_v55  ;;  %v280_v10 = vmul.bf16 %v11242_v19, %v11273_v42 }
  0xe5   :  { %v437_v54 = vsel %vm420_vm4, 0, %v419_v49  ;;  %v342_v11 = vor.u32 %v341_v59, %v338_v58  ;;  %v11311_v12 = vshrl.u32 %v277_v61, 16  ;;  %v11313_v13 = vshll.u32 %v277_v61, 16 }
  0xe6   :  { %9321 = vmatmul.mubr.msk.bf16.gmra.mrb[12].mxu0 %vm447_vm5, %v437_v54  ;;  %v11320_v15 = vcombine.low %v292_v62, %v304_v63  ;;  %v11322_v16 = vshrl.u32 %v278_v0, 16  ;;  %v11324_v17 = vshll.u32 %v278_v0, 16  ;;  %v346_v18 = vrot.slane %v11303_v1, 5 }
  0xe7   :  { %9326 = vmatprep.mubr.msk.bf16.mxu0 %vm447_vm5, %v394_v57  ;;  %v349_v20 = vrot.slane %v11305_v5, 6  ;;  %v11328_v21 = vshrl.u32 %v279_v7, 16  ;;  %v11330_v22 = vshll.u32 %v279_v7, 16  ;;  %v395_v23 = vsel %vm11269_vm6, 0, %v334_v8 }
  0xe8   :  { %13339 = vst [vmem:[#allocation19_spill] sm:$0xff] %v11320_v15  ;;  %v11334_v24 = vshrl.u32 %v280_v10, 16  ;;  %v11336_v29 = vshll.u32 %v280_v10, 16  ;;  %v396_v30 = vsel %vm11269_vm6, 0, %v342_v11  ;;  %v354_v32 = vrot.slane %v11311_v12, 5 }
  0xe9   :  { %v357_v33 = vrot.slane %v11313_v13, 6  ;;  %v362_v34 = vrot.slane %v11322_v16, 5  ;;  %v365_v35 = vrot.slane %v11324_v17, 6  ;;  %v311_v38 = vmul.bf16 %v11320_v15, %v11186_v37 }
  0xea   :  { %v370_v39 = vrot.slane %v11328_v21, 5  ;;  %v373_v40 = vrot.slane %v11330_v22, 6  ;;  %v350_v26 = vor.u32 %v349_v20, %v346_v18  ;;  %v378_v47 = vrot.slane %v11334_v24, 5 }
  0xeb   :  { %v358_v49 = vor.u32 %v357_v33, %v354_v32  ;;  %v366_v50 = vor.u32 %v365_v35, %v362_v34  ;;  %v11354_v51 = vshrl.u32 %v311_v38, 16  ;;  %v11356_v52 = vshll.u32 %v311_v38, 16 }
  0xec   :  { %v374_v54 = vor.u32 %v373_v40, %v370_v39  ;;  %v312_v55 = vmul.bf16 %v11320_v15, %v11184_v36  ;;  %v397_v56 = vsel %vm11269_vm6, 0, %v350_v26  ;;  %v313_v58 = vmul.bf16 %v11320_v15, %v11199_v45 }
  0xed   :  { %v398_v59 = vsel %vm11269_vm6, 0, %v358_v49  ;;  %v399_v61 = vsel %vm11269_vm6, 0, %v366_v50  ;;  %v691_v62 = vrot.slane %v11354_v51, 6  ;;  %v694_v63 = vrot.slane %v11356_v52, 7 }
  0xee   :  { %9327 = vmatmul.mubr.msk.bf16.vlgmr.msra.gmra.mrb[0].mxu0 %vm447_vm5, %v395_v23  ;;  %v314_v0 = vmul.bf16 %v11320_v15, %v11211_v53  ;;  %v400_v7 = vsel %vm11269_vm6, 0, %v374_v54  ;;  %v11378_v8 = vshrl.u32 %v312_v55, 16  ;;  %v11380_v10 = vshll.u32 %v312_v55, 16 }
  0xef   :  { %9343 = vmatpush3.bf16.msra.mxu0 %v11197_v44  ;;  %9330 = vmatprep.mubr.msk.bf16.mxu0 %vm447_vm5, %v396_v30  ;;  %v381_v44 = vrot.slane %v11336_v29, 6  ;;  %v315_v11 = vmul.bf16 %v11320_v15, %v11221_v60  ;;  %v11387_v20 = vshrl.u32 %v313_v58, 16  ;;  %v917_v23 = vrot.slane %v11252_v27, 7 }
  0xf0   :  { %9360 = vmatprep.subr.bf16.mxu0 %v11318_v14  ;;  %v919_v30 = vrot.slane %v11276_v43, 7  ;;  %v316_v32 = vmul.bf16 %v11320_v15, %v11230_v6  ;;  %v317_v33 = vmul.bf16 %v11320_v15, %v11250_v25  ;;  %v318_v34 = vmul.bf16 %v11320_v15, %v11273_v42 }
  0xf1   :  { %v11362_v57 = vor.u32 %v381_v44, %v378_v47  ;;  %v921_v35 = vrot.slane %v11281_v31, 7  ;;  %v11399_v38 = vor.u32 %v917_v23, %v11254_v28  ;;  %v923_v40 = vrot.slane %v11303_v1, 7 }
  0xf2   :  { %v11402_v39 = vor.u32 %v919_v30, %v11278_v46  ;;  %v925_v26 = vrot.slane %v11311_v12, 7  ;;  %v695_v47 = vor.u32 %v694_v63, %v691_v62  ;;  %v11406_v44 = vshll.u32 %v313_v58, 16 }
  0xf3   :  { %v401_v18 = vsel %vm11269_vm6, 0, %v11362_v57  ;;  %v11408_v49 = vshrl.u32 %v314_v0, 16  ;;  %v11411_v50 = vor.u32 %v921_v35, %v11283_v48  ;;  %v11413_v54 = vshll.u32 %v314_v0, 16 }
  0xf4   :  { %v11415_v55 = vshll.u32 %v315_v11, 16  ;;  %v11421_v57 = vor.u32 %v925_v26, %v11313_v13  ;;  %v11426_v58 = vshll.u32 %v316_v32, 16  ;;  %v927_v62 = vrot.slane %v11322_v16, 7 }
  0xf5   :  { %v929_v63 = vrot.slane %v11328_v21, 7  ;;  %v11437_v23 = vshll.u32 %v317_v33, 16  ;;  %v11439_v30 = vshll.u32 %v318_v34, 16  ;;  %v1246_v26 = vrot.slane %v11380_v10, 1 }
  0xf6   :  { %9331 = vmatmul.mubr.msk.bf16.gmra.mrb[4].mxu0 %vm447_vm5, %v397_v56  ;;  %v11418_v56 = vor.u32 %v923_v40, %v11305_v5  ;;  %v11444_v35 = vor.u32 %v927_v62, %v11324_v17  ;;  %v1248_v9 = vrot.slane %v11406_v44, 1  ;;  %v1250_v2 = vrot.slane %v11413_v54, 1 }
  0xf7   :  { %9334 = vmatprep.mubr.msk.bf16.mxu0 %vm447_vm5, %v398_v59  ;;  %v11424_v59 = vshrl.u32 %v315_v11, 16  ;;  %v1244_v11 = vrot.slane %v11356_v52, 1  ;;  %v11447_v40 = vor.u32 %v929_v63, %v11330_v22  ;;  %v1252_v4 = vrot.slane %v11415_v55, 1 }
  0xf8   :  { %v763_v62 = vsel %vm11432_vm8, 0, %v695_v47  ;;  %v699_v63 = vrot.slane %v11378_v8, 6  ;;  %v11463_v41 = vor.u32 %v1246_v26, %v11378_v8  ;;  %v11466_v15 = vor.u32 %v1248_v9, %v11387_v20 }
  0xf9   :  { %v11455_v3 = vor.u32 %v1244_v11, %v11354_v51  ;;  %v707_v11 = vrot.slane %v11387_v20, 6  ;;  %v11471_v19 = vor.u32 %v1250_v2, %v11408_v49  ;;  %v11476_v42 = vshrl.u32 %v316_v32, 16 }
  0xfa   :  { %13343 = vst [vmem:[#allocation21_spill] sm:$0xff] %v11463_v41  ;;  %13344 = vst [vmem:[#allocation22_spill] sm:$0xff] %v11466_v15  ;;  %v11478_v47 = vshrl.u32 %v317_v33, 16  ;;  %v1254_v26 = vrot.slane %v11426_v58, 1  ;;  %v1256_v41 = vrot.slane %v11437_v23, 1  ;;  %v710_v9 = vrot.slane %v11406_v44, 7 }
  0xfb   :  { %13342 = vst [vmem:[#allocation20_spill] sm:$0xff] %v11455_v3  ;;  %13345 = vst [vmem:[#allocation23_spill] sm:$0xff] %v11471_v19  ;;  %v11474_v3 = vor.u32 %v1252_v4, %v11424_v59  ;;  %v11483_v15 = vshrl.u32 %v318_v34, 16  ;;  %v1258_v25 = vrot.slane %v11439_v30, 1  ;;  %v1425_v2 = vrot.slane %v11252_v27, 1 }
  0xfc   :  { %v11489_v4 = vor.u32 %v1254_v26, %v11476_v42  ;;  %v11492_v32 = vor.u32 %v1256_v41, %v11478_v47  ;;  %v1426_v33 = vrot.slane %v11254_v28, 2  ;;  %v1429_v19 = vrot.slane %v11278_v46, 2 }
  0xfd   :  { %13346 = vst [vmem:[#allocation24_spill] sm:$0xff] %v11474_v3  ;;  %v1428_v3 = vrot.slane %v11276_v43, 1  ;;  %v11498_v34 = vor.u32 %v1258_v25, %v11483_v15  ;;  %v1431_v27 = vrot.slane %v11281_v31, 1  ;;  %v1434_v28 = vrot.slane %v11303_v1, 1 }
  0xfe   :  { %9335 = vmatmul.mubr.msk.bf16.gmra.mrb[8].mxu0 %vm447_vm5, %v399_v61  ;;  %v931_v61 = vrot.slane %v11334_v24, 7  ;;  %13347 = vst [vmem:[#allocation25_spill] sm:$0xff] %v11489_v4  ;;  %13348 = vst [vmem:[#allocation26_spill] sm:$0xff] %v11492_v32  ;;  %v715_v4 = vrot.slane %v11408_v49, 6  ;;  %v11504_v41 = vor.u32 %v1426_v33, %v1425_v2  ;;  %v718_v43 = vrot.slane %v11413_v54, 7 }
  0xff   :  { %9338 = vmatprep.mubr.msk.bf16.mxu0 %vm447_vm5, %v400_v7  ;;  %v11508_v32 = vor.u32 %v1429_v19, %v1428_v3  ;;  %v1435_v25 = vrot.slane %v11305_v5, 2  ;;  %v711_v46 = vor.u32 %v710_v9, %v707_v11  ;;  %v1437_v31 = vrot.slane %v11311_v12, 1  ;;  %v11524_v19 = vld [vmem:[%s13279_s3 + $0x20] sm:$0xff]  }
 0x100   :  { %v11452_v7 = vor.u32 %v931_v61, %v11336_v29  ;;  %v702_v61 = vrot.slane %v11380_v10, 7  ;;  %v726_v2 = vrot.slane %v11415_v55, 7  ;;  %v1441_v3 = vrot.slane %v11324_v17, 2 }
 0x101   :  { %v11518_v1 = vor.u32 %v1435_v25, %v1434_v28  ;;  %v1443_v12 = vrot.slane %v11328_v21, 1  ;;  %v1447_v17 = vrot.slane %v11336_v29, 2  ;;  %v765_v33 = vsel %vm11432_vm8, 0, %v711_v46 }
 0x102   :  { %v703_v26 = vor.u32 %v702_v61, %v699_v63  ;;  %v1440_v63 = vrot.slane %v11322_v16, 1  ;;  %v723_v61 = vrot.slane %v11424_v59, 6  ;;  %v1446_v16 = vrot.slane %v11334_v24, 1 }
 0x103   :  { %v1777_v21 = vrot.slane %v11354_v51, 2  ;;  %v731_v24 = vrot.slane %v11476_v42, 6  ;;  %v1778_v29 = vrot.slane %v11356_v52, 3  ;;  %v734_v28 = vrot.slane %v11426_v58, 7 }
 0x104   :  { %v764_v11 = vsel %vm11432_vm8, 0, %v703_v26  ;;  %v11533_v9 = vor.u32 %v1441_v3, %v1440_v63  ;;  %v11545_v26 = vor.u32 %v1447_v17, %v1446_v16  ;;  %v739_v25 = vrot.slane %v11478_v47, 6 }
 0x105   :  { %v1781_v51 = vrot.slane %v11380_v10, 3  ;;  %v1783_v46 = vrot.slane %v11387_v20, 2  ;;  %v1786_v52 = vrot.slane %v11408_v49, 2  ;;  %v1787_v63 = vrot.slane %v11413_v54, 3 }
 0x106   :  { %9339 = vmatmul.mubr.msk.bf16.gmra.mrb[12].mxu0 %vm447_vm5, %v401_v18  ;;  %v1432_v18 = vrot.slane %v11283_v48, 2  ;;  %v1438_v48 = vrot.slane %v11313_v13, 2  ;;  %v1444_v13 = vrot.slane %v11330_v22, 2  ;;  %v727_v22 = vor.u32 %v726_v2, %v723_v61 }
 0x107   :  { %9344 = vmatprep.mubr.msk.bf16.mxu0 %vm447_vm5, %v763_v62  ;;  %v1789_v61 = vrot.slane %v11424_v59, 2  ;;  %v1792_v10 = vrot.slane %v11476_v42, 2  ;;  %v11569_v20 = vor.u32 %v1787_v63, %v1786_v52  ;;  %v1796_v59 = vrot.slane %v11437_v23, 3  ;;  %v13357_v52 = vld [vmem:[#allocation21_spill] sm:$0xff] }
 0x108   :  { %v11510_v62 = vor.u32 %v1432_v18, %v1431_v27  ;;  %v11526_v5 = vor.u32 %v1438_v48, %v1437_v31  ;;  %v719_v27 = vor.u32 %v718_v43, %v715_v4  ;;  %v11539_v18 = vor.u32 %v1444_v13, %v1443_v12 }
 0x109   :  { %v1780_v4 = vrot.slane %v11378_v8, 2  ;;  %v11554_v43 = vor.u32 %v1778_v29, %v1777_v21  ;;  %v1784_v31 = vrot.slane %v11406_v44, 3  ;;  %v1790_v8 = vrot.slane %v11415_v55, 3 }
 0x10a   :  { %v766_v3 = vsel %vm11432_vm8, 0, %v719_v27  ;;  %v1793_v44 = vrot.slane %v11426_v58, 3  ;;  %v1795_v12 = vrot.slane %v11478_v47, 2  ;;  %v767_v49 = vsel %vm11432_vm8, 0, %v727_v22  ;;  %v10611_v22 = vld [vmem:[#allocation5 + $0x158] sm:$0xff]  }
 0x10b   :  { %v11558_v48 = vor.u32 %v1781_v51, %v1780_v4  ;;  %v11563_v2 = vor.u32 %v1784_v31, %v1783_v46  ;;  %v11575_v54 = vor.u32 %v1790_v8, %v1789_v61  ;;  %v1798_v55 = vrot.slane %v11483_v15, 2  ;;  %v10496_v51 = vld [vmem:[#allocation2 + $0x40] sm:$0xff]   ;;  %v10498_v46 = vld [vmem:[#allocation2 + $0x50] sm:$0xff]   ;;  %v10494_v31 = vld [vmem:[%s13279_s3 + $0x38] sm:$0xff]  }
 0x10c   :  { %v735_v42 = vor.u32 %v734_v28, %v731_v24  ;;  %v11580_v16 = vor.u32 %v1793_v44, %v1792_v10  ;;  %v11584_v58 = vor.u32 %v1796_v59, %v1795_v12  ;;  %v747_v17 = vrot.slane %v11483_v15, 6  ;;  %v10492_v24 = vld [vmem:[%s13279_s3 + $0x28] sm:$0xff]   ;;  %9468 = vmatprep.subr.bf16.mxu1 %v10496_v51  ;;  %v13358_v61 = vld [vmem:[#allocation22_spill] sm:$0xff]  ;;  %v13359_v44 = vld [vmem:[#allocation23_spill] sm:$0xff] }
 0x10d   :  { %v945_v29 = vsel %vm11596_vm11, 0, %v11402_v39  ;;  %v946_v28 = vsel %vm11596_vm11, 0, %v11411_v50  ;;  %v948_v39 = vsel %vm11596_vm11, 0, %v11421_v57  ;;  %v949_v50 = vsel %vm11596_vm11, 0, %v11444_v35  ;;  %v10493_v57 = vld [vmem:[%s13279_s3 + $0x30] sm:$0xff]   ;;  %v13351_v35 = vld [vmem:[#allocation16_spill] sm:$0xff]  ;;  %9469 = vmatpush3.bf16.msra.mxu1 %v10496_v51 }
 0x10e   :  { %9345 = vmatmul.mubr.msk.bf16.vlgmr.msra.gmra.mrb[0].mxu0 %vm447_vm5, %v764_v11  ;;  %v1799_v11 = vrot.slane %v11439_v30, 3  ;;  %v1272_v63 = vsel %vm11656_vm14, %v13357_v52, 0  ;;  %v1273_v8 = vsel %vm11656_vm14, %v13358_v61, 0  ;;  %v10499_v10 = vld [vmem:[#allocation2 + $0x58] sm:$0xff]   ;;  %v1274_v12 = vsel %vm11656_vm14, %v13359_v44, 0 }
 0x10f   :  { %9361 = vmatpush3.bf16.msra.mxu0 %v11318_v14  ;;  %9348 = vmatprep.mubr.msk.bf16.mxu0 %vm447_vm5, %v765_v33  ;;  %v742_v14 = vrot.slane %v11437_v23, 7  ;;  %v750_v23 = vrot.slane %v11439_v30, 7  ;;  %v768_v33 = vsel %vm11432_vm8, 0, %v735_v42  ;;  %v944_v30 = vsel %vm11596_vm11, 0, %v11399_v38 }
 0x110   :  { %9378 = vmatprep.subr.bf16.mxu0 %v11524_v19  ;;  %v11586_v47 = vor.u32 %v1799_v11, %v1798_v55  ;;  %v947_v38 = vsel %vm11596_vm11, 0, %v11418_v56  ;;  %v951_v56 = vsel %vm11596_vm11, 0, %v11452_v7  ;;  %v13355_v7 = vld [vmem:[#allocation18_spill] sm:$0xff]  ;;  %v13361_v55 = vld [vmem:[#allocation25_spill] sm:$0xff]  ;;  %vm1457_vm15 = vcmask 1046528  }
 0x111   :  { %v743_v13 = vor.u32 %v742_v14, %v739_v25  ;;  %v751_v21 = vor.u32 %v750_v23, %v747_v17  ;;  %v13356_v25 = vld [vmem:[#allocation20_spill] sm:$0xff]  ;;  %v1276_v42 = vsel %vm11656_vm14, %v13361_v55, 0  ;;  %vm11693_vm1 = vmand %vm1457_vm15, %vm1458_vm0  ;;  %v13363_v17 = vmov 0 }
 0x112   :  { %v1271_v4 = vsel %vm11656_vm14, %v13356_v25, 0  ;;  %v10497_v14 = vld [vmem:[#allocation2 + $0x48] sm:$0xff]   ;;  %v13364_v17 = vsel %vm11693_vm1, 4294967295, %v13363_v17  ;;  %v1278_v23 = vsel %vm11656_vm14, %v11498_v34, 0  ;;  %v1462_v34 = vsel %vm11693_vm1, %v11510_v62, 0  ;;  %v10504_v25 = vld [vmem:[#allocation2] sm:$0xff]  }
 0x113   :  { %v769_v27 = vsel %vm11432_vm8, 0, %v743_v13  ;;  %v770_v15 = vsel %vm11432_vm8, 0, %v751_v21  ;;  %9470 = vmatprep.subr.bf16.mxu1 %v10497_v14  ;;  %v13362_v13 = vld [vmem:[#allocation26_spill] sm:$0xff]  ;;  %13365 = vst [vmem:[#allocation18_spill] sm:$0xff] %v13364_v17  ;;  %v1461_v21 = vsel %vm11693_vm1, %v11508_v32, 0  ;;  %v1464_v32 = vsel %vm11693_vm1, %v11526_v5, 0 }
 0x114   :  { %9471 = vmatpush3.bf16.msra.mxu1 %v10497_v14  ;;  %v1277_v11 = vsel %vm11656_vm14, %v13362_v13, 0  ;;  %v1465_v62 = vsel %vm11693_vm1, %v11533_v9, 0  ;;  %vm1622_vm2 = vcmask 1045504   ;;  %v1467_v5 = vsel %vm11693_vm1, %v11545_v26, 0  ;;  %v10516_v17 = vld [vmem:[#allocation2 + $0xa0] sm:$0xff]  }
 0x115   :  { %9472 = vmatprep.subr.bf16.mxu1 %v10498_v46  ;;  %v1615_v9 = vrot.slane %v11184_v36, 2  ;;  %v1617_v26 = vrot.slane %v11211_v53, 2  ;;  %vm1810_vm3 = vsmask.f32 5376  ;;  %vm6346_vm12 = vcmask 1047559  }
 0x116   :  { %9349 = vmatmul.mubr.msk.bf16.gmra.mrb[4].mxu0 %vm447_vm5, %v766_v3  ;;  %v10500_v3 = vld [vmem:[#allocation2 + $0x60] sm:$0xff]   ;;  %vm11759_vm7 = vmand %vm1622_vm2, %vm1810_vm3  ;;  %vm6598_vm13 = vcmask 523264   ;;  %vm8295_vm15 = vcmask 39936  }
 0x117   :  { %9352 = vmatprep.mubr.msk.bf16.mxu0 %vm447_vm5, %v767_v49  ;;  %v13360_v49 = vld [vmem:[#allocation24_spill] sm:$0xff] }
 0x118   :  { %9473 = vmatpush3.bf16.msra.mxu1 %v10498_v46  ;;  %v1275_v59 = vsel %vm11656_vm14, %v13360_v49, 0 }
 0x119   :  { %9474 = vmatprep.subr.bf16.mxu1 %v10499_v10 }
 0x11c   :  { %9475 = vmatpush3.bf16.msra.mxu1 %v10499_v10 }
 0x11d   :  { %9476 = vmatprep.subr.bf16.mxu1 %v10500_v3 }
 0x11e   :  { %9353 = vmatmul.mubr.msk.bf16.gmra.mrb[8].mxu0 %vm447_vm5, %v768_v33  ;;  %v1460_v33 = vsel %vm11693_vm1, %v11504_v41, 0  ;;  %v1463_v41 = vsel %vm11693_vm1, %v11518_v1, 0  ;;  %v1614_v1 = vrot.slane %v11186_v37, 2 }
 0x11f   :  { %9356 = vmatprep.mubr.msk.bf16.mxu0 %vm447_vm5, %v769_v27  ;;  %v10495_v27 = vld [vmem:[%s13279_s3 + $0x40] sm:$0xff]  }
 0x120   :  { %9477 = vmatpush3.bf16.msra.mxu1 %v10500_v3 }
 0x126   :  { %9357 = vmatmul.mubr.msk.bf16.gmra.mrb[12].mxu0 %vm447_vm5, %v770_v15  ;;  %v1466_v15 = vsel %vm11693_vm1, %v11539_v18, 0  ;;  %v1626_v18 = vsel %vm1622_vm2, %v1615_v9, 0 }
 0x127   :  { %9362 = vmatprep.mubr.msk.bf16.mxu0 %vm447_vm5, %v944_v30  ;;  %v1624_v30 = vsel %vm1622_vm2, %v1614_v1, 0 }
 0x12e   :  { %9363 = vmatmul.mubr.msk.bf16.vlgmr.msra.gmra.mrb[0].mxu0 %vm447_vm5, %v945_v29  ;;  %v1618_v29 = vrot.slane %v11221_v60, 2 }
 0x12f   :  { %9379 = vmatpush3.bf16.msra.mxu0 %v11524_v19  ;;  %9366 = vmatprep.mubr.msk.bf16.mxu0 %vm447_vm5, %v946_v28  ;;  %v950_v19 = vsel %vm11596_vm11, 0, %v11447_v40  ;;  %v13352_v40 = vmov 0  ;;  %v1630_v28 = vsel %vm1622_vm2, %v1617_v26, 0 }
 0x130   :  { %9396 = vmatprep.subr.bf16.mxu0 %v10492_v24  ;;  %v13353_v40 = vsel %vm11656_vm14, 4294967295, %v13352_v40 }
 0x131   :  { %13354 = vst [vmem:[#allocation16_spill] sm:$0xff] %v13353_v40 }
 0x136   :  { %9367 = vmatmul.mubr.msk.bf16.gmra.mrb[4].mxu0 %vm447_vm5, %v947_v38  ;;  %v1620_v38 = vrot.slane %v13351_v35, 2 }
 0x137   :  { %9370 = vmatprep.mubr.msk.bf16.mxu0 %vm447_vm5, %v948_v39 }
 0x13e   :  { %9371 = vmatmul.mubr.msk.bf16.gmra.mrb[8].mxu0 %vm447_vm5, %v949_v50  ;;  %v13366_v50 = vmov 0 }
 0x13f   :  { %9374 = vmatprep.mubr.msk.bf16.mxu0 %vm447_vm5, %v950_v19  ;;  %v13367_v50 = vsel %vm11759_vm7, 4294967295, %v13366_v50  ;;  %v1812_v19 = vsel %vm11759_vm7, %v11554_v43, 0  ;;  %v1816_v43 = vsel %vm11759_vm7, %v11575_v54, 0  ;;  %v10501_v54 = vld [vmem:[#allocation2 + $0x68] sm:$0xff]  }
 0x140   :  { %13368 = vst [vmem:[#allocation20_spill] sm:$0xff] %v13367_v50  ;;  %9478 = vmatprep.subr.bf16.mxu1 %v10501_v54 }
 0x141   :  { %9479 = vmatpush3.bf16.msra.mxu1 %v10501_v54 }
 0x146   :  { %9375 = vmatmul.mubr.msk.bf16.gmra.mrb[12].mxu0 %vm447_vm5, %v951_v56  ;;  %v1813_v56 = vsel %vm11759_vm7, %v11558_v48, 0  ;;  %v1817_v48 = vsel %vm11759_vm7, %v11580_v16, 0  ;;  %v10503_v16 = vld [vmem:[#allocation2 + $0x78] sm:$0xff]  }
 0x147   :  { %9380 = vmatprep.mubr.msk.bf16.mxu0 %vm447_vm5, %v11186_v37 }
 0x14e   :  { %9381 = vmatmul.mubr.msk.bf16.vlgmr.msra.gmra.mrb[0].mxu0 %vm447_vm5, %v11184_v36  ;;  %v1632_v36 = vsel %vm1622_vm2, %v1618_v29, 0 }
 0x14f   :  { %9397 = vmatpush3.bf16.msra.mxu0 %v10492_v24  ;;  %9384 = vmatprep.mubr.msk.bf16.mxu0 %vm447_vm5, %v11199_v45  ;;  %v1616_v24 = vrot.slane %v11199_v45, 2  ;;  %v1619_v45 = vrot.slane %v11230_v6, 2 }
 0x150   :  { %9414 = vmatprep.subr.bf16.mxu0 %v10493_v57 }
 0x151   :  { %v1628_v37 = vsel %vm1622_vm2, %v1616_v24, 0  ;;  %v1634_v39 = vsel %vm1622_vm2, %v1619_v45, 0  ;;  %v10505_v24 = vld [vmem:[#allocation2 + $0x8] sm:$0xff]  }
 0x156   :  { %9385 = vmatmul.mubr.msk.bf16.gmra.mrb[4].mxu0 %vm447_vm5, %v11211_v53  ;;  %v1636_v53 = vsel %vm1622_vm2, %v1620_v38, 0 }
 0x157   :  { %9388 = vmatprep.mubr.msk.bf16.mxu0 %vm447_vm5, %v11221_v60  ;;  %v1621_v60 = vrot.slane %v13355_v7, 2 }
 0x15e   :  { %9389 = vmatmul.mubr.msk.bf16.gmra.mrb[8].mxu0 %vm447_vm5, %v11230_v6  ;;  %v1638_v6 = vsel %vm1622_vm2, %v1621_v60, 0 }
 0x15f   :  { %9392 = vmatprep.mubr.msk.bf16.mxu0 %vm447_vm5, %v13351_v35  ;;  %v1815_v35 = vsel %vm11759_vm7, %v11569_v20, 0  ;;  %v1819_v20 = vsel %vm11759_vm7, %v11586_v47, 0  ;;  %v11805_v47 = vld [vmem:[%s13282_s6 + $0x1] ss:$0 sm:$0xff] }
 0x166   :  { %9393 = vmatmul.mubr.msk.bf16.gmra.mrb[12].mxu0 %vm447_vm5, %v13355_v7  ;;  %v10502_v7 = vld [vmem:[#allocation2 + $0x70] sm:$0xff]  }
 0x167   :  { %9398 = vmatprep.mubr.msk.bf16.mxu0 %vm447_vm5, %v1271_v4  ;;  %9480 = vmatprep.subr.bf16.mxu1 %v10502_v7 }
 0x168   :  { %9481 = vmatpush3.bf16.msra.mxu1 %v10502_v7  ;;  %v10507_v7 = vld [vmem:[#allocation2 + $0x18] sm:$0xff]  }
 0x169   :  { %9482 = vmatprep.subr.bf16.mxu1 %v10503_v16 }
 0x16c   :  { %9483 = vmatpush3.bf16.msra.mxu1 %v10503_v16 }
 0x16d   :  { %9500 = vmatprep.subr.bf16.mxu1 %v10504_v25 }
 0x16e   :  { %9399 = vmatmul.mubr.msk.bf16.vlgmr.msra.gmra.mrb[0].mxu0 %vm447_vm5, %v1272_v63 }
 0x16f   :  { %9415 = vmatpush3.bf16.msra.mxu0 %v10493_v57  ;;  %9402 = vmatprep.mubr.msk.bf16.mxu0 %vm447_vm5, %v1273_v8  ;;  %v1814_v57 = vsel %vm11759_vm7, %v11563_v2, 0  ;;  %v1818_v2 = vsel %vm11759_vm7, %v11584_v58, 0  ;;  %v11800_v58 = vld [vmem:[%s13282_s6] ss:$0 sm:$0xff] }
 0x170   :  { %9432 = vmatprep.subr.bf16.mxu0 %v10494_v31 }
 0x176   :  { %9403 = vmatmul.mubr.msk.bf16.gmra.mrb[4].mxu0 %vm447_vm5, %v1274_v12 }
 0x177   :  { %9406 = vmatprep.mubr.msk.bf16.mxu0 %vm447_vm5, %v1275_v59 }
 0x17e   :  { %9407 = vmatmul.mubr.msk.bf16.gmra.mrb[8].mxu0 %vm447_vm5, %v1276_v42 }
 0x17f   :  { %9410 = vmatprep.mubr.msk.bf16.mxu0 %vm447_vm5, %v1277_v11 }
 0x186   :  { %9411 = vmatmul.mubr.msk.bf16.gmra.mrb[12].mxu0 %vm447_vm5, %v1278_v23 }
 0x187   :  { %9416 = vmatprep.mubr.msk.bf16.mxu0 %vm447_vm5, %v1460_v33 }
 0x18e   :  { %9417 = vmatmul.mubr.msk.bf16.vlgmr.msra.gmra.mrb[0].mxu0 %vm447_vm5, %v1461_v21 }
 0x18f   :  { %9433 = vmatpush3.bf16.msra.mxu0 %v10494_v31  ;;  %9420 = vmatprep.mubr.msk.bf16.mxu0 %vm447_vm5, %v1462_v34  ;;  %v13369_v34 = vmov 0 }
 0x190   :  { %9450 = vmatprep.subr.bf16.mxu0 %v10495_v27 }
 0x196   :  { %9421 = vmatmul.mubr.msk.bf16.gmra.mrb[4].mxu0 %vm447_vm5, %v1463_v41 }
 0x197   :  { %9424 = vmatprep.mubr.msk.bf16.mxu0 %vm447_vm5, %v1464_v32 }
 0x19e   :  { %9425 = vmatmul.mubr.msk.bf16.gmra.mrb[8].mxu0 %vm447_vm5, %v1465_v62 }
 0x19f   :  { %9428 = vmatprep.mubr.msk.bf16.mxu0 %vm447_vm5, %v1466_v15 }
 0x1a6   :  { %9429 = vmatmul.mubr.msk.bf16.gmra.mrb[12].mxu0 %vm447_vm5, %v1467_v5 }
 0x1a7   :  { %9434 = vmatprep.mubr.msk.bf16.mxu0 %vm447_vm5, %v1624_v30 }
 0x1ae   :  { %9435 = vmatmul.mubr.msk.bf16.vlgmr.msra.gmra.mrb[0].mxu0 %vm447_vm5, %v1626_v18 }
 0x1af   :  { %9451 = vmatpush3.bf16.msra.mxu0 %v10495_v27  ;;  %9438 = vmatprep.mubr.msk.bf16.mxu0 %vm447_vm5, %v1628_v37 }
 0x1b6   :  { %9439 = vmatmul.mubr.msk.bf16.gmra.mrb[4].mxu0 %vm447_vm5, %v1630_v28 }
 0x1b7   :  { %9442 = vmatprep.mubr.msk.bf16.mxu0 %vm447_vm5, %v1632_v36 }
 0x1be   :  { %9443 = vmatmul.mubr.msk.bf16.gmra.mrb[8].mxu0 %vm447_vm5, %v1634_v39 }
 0x1bf   :  { %9446 = vmatprep.mubr.msk.bf16.mxu0 %vm447_vm5, %v1636_v53  ;;  %v10506_v53 = vld [vmem:[#allocation2 + $0x10] sm:$0xff]  }
 0x1c6   :  { %9447 = vmatmul.mubr.msk.bf16.gmra.mrb[12].mxu0 %vm447_vm5, %v1638_v6 }
 0x1c7   :  { %9452 = vmatprep.mubr.msk.bf16.mxu0 %vm447_vm5, %v1812_v19 }
 0x1ce   :  { %9453 = vmatmul.mubr.msk.bf16.vlgmr.msra.gmra.mrb[0].mxu0 %vm447_vm5, %v1813_v56 }
 0x1cf   :  { %9456 = vmatprep.mubr.msk.bf16.mxu0 %vm447_vm5, %v1814_v57 }
 0x1d6   :  { %9457 = vmatmul.mubr.msk.bf16.gmra.mrb[4].mxu0 %vm447_vm5, %v1815_v35 }
 0x1d7   :  { %9460 = vmatprep.mubr.msk.bf16.mxu0 %vm447_vm5, %v1816_v43 }
 0x1de   :  { %9461 = vmatmul.mubr.msk.bf16.gmra.mrb[8].mxu0 %vm447_vm5, %v1817_v48 }
 0x1df   :  { %9464 = vmatprep.mubr.msk.bf16.mxu0 %vm447_vm5, %v1818_v2 }
 0x1e6   :  { %9465 = vmatmul.mubr.msk.bf16.gmra.mrb[12].mxu0 %vm447_vm5, %v1819_v20  ;;  %vm11822_vm5 = vmneg %vm420_vm4  ;;  %vm6328_vm4 = vcmask 1041409  }
 0x1e7   :  { %v13370_v34 = vsel %vm11822_vm5, 4294967295, %v13369_v34 }
 0x1e8   :  { %13371 = vst [vmem:[#allocation21_spill] sm:$0xff] %v13370_v34 }
 0x2a1   :  { %v9454_v4 = vpop.f32.mrb[0].mxu0 }
 0x2a2   :  { %v1972_v51 = vmul.f32 %v9454_v4, %v11800_v58  ;;  %v1887_v14 = vpop.f32.mrb[1].mxu0 }
 0x2a3   :  { %v1970_v46 = vmul.f32 %v11800_v58, %v1887_v14  ;;  %v9455_v31 = vpop.f32.mrb[2].mxu0 }
 0x2a4   :  { %v1992_v52 = vadd.f32 %v11805_v47, %v1972_v51  ;;  %v1973_v63 = vmul.f32 %v9455_v31, %v11800_v58  ;;  %v1890_v61 = vpop.f32.mrb[3].mxu0 }
 0x2a5   :  { %v1990_v8 = vadd.f32 %v11805_v47, %v1970_v46  ;;  %v1971_v10 = vmul.f32 %v11800_v58, %v1890_v61 }
 0x2a6   :  { %v1993_v3 = vadd.f32 %v11805_v47, %v1973_v63  ;;  %v2008_v12 = vmax.f32 %v1992_v52, 0.0 }
 0x2a7   :  { %v1991_v44 = vadd.f32 %v11805_v47, %v1971_v10  ;;  %v2006_v59 = vmax.f32 %v1990_v8, 0.0  ;;  %v10508_v10 = vld [vmem:[#allocation2 + $0x20] sm:$0xff]  }
 0x2a8   :  { %v2009_v49 = vmax.f32 %v1993_v3, 0.0 }
 0x2a9   :  { %v2007_v55 = vmax.f32 %v1991_v44, 0.0  ;;  %v9458_v42 = vpop.f32.mrb[4].mxu0 }
 0x2aa   :  { %v11815_v13 = vpack.c.bf16 %v2009_v49, %v2008_v12  ;;  %v1976_v11 = vmul.f32 %v9458_v42, %v11800_v58  ;;  %v1903_v23 = vpop.f32.mrb[5].mxu0 }
 0x2ab   :  { %v11818_v33 = vpack.c.bf16 %v2007_v55, %v2006_v59  ;;  %v1974_v27 = vmul.f32 %v11800_v58, %v1903_v23  ;;  %v9459_v21 = vpop.f32.mrb[6].mxu0 }
 0x2ac   :  { %v1996_v41 = vadd.f32 %v11805_v47, %v1976_v11  ;;  %v1977_v32 = vmul.f32 %v9459_v21, %v11800_v58  ;;  %v1906_v62 = vpop.f32.mrb[7].mxu0  ;;  %v2153_v9 = vrot.slane %v11815_v13, 6 }
 0x2ad   :  { %v1994_v15 = vadd.f32 %v11805_v47, %v1974_v27  ;;  %v1975_v1 = vmul.f32 %v11800_v58, %v1906_v62  ;;  %v2152_v5 = vrot.slane %v11818_v33, 6 }
 0x2ae   :  { %v1997_v30 = vadd.f32 %v11805_v47, %v1977_v32  ;;  %v2012_v37 = vmax.f32 %v1996_v41, 0.0 }
 0x2af   :  { %v1995_v18 = vadd.f32 %v11805_v47, %v1975_v1  ;;  %9484 = vmatprep.mubr.msk.bf16.mxu1 %vm11822_vm5, %v2152_v5  ;;  %v2010_v29 = vmax.f32 %v1994_v15, 0.0  ;;  %v10509_v15 = vld [vmem:[#allocation2 + $0x28] sm:$0xff]  }
 0x2b0   :  { %v2013_v26 = vmax.f32 %v1997_v30, 0.0  ;;  %9485 = vmatmul.mubr.msk.bf16.vlgmr.msra.gmra.mrb[0].mxu1 %vm11822_vm5, %v2153_v9 }
 0x2b1   :  { %v2011_v28 = vmax.f32 %v1995_v18, 0.0  ;;  %9501 = vmatpush3.bf16.msra.mxu1 %v10504_v25  ;;  %v9462_v36 = vpop.f32.mrb[8].mxu0  ;;  %v13372_v25 = vld [vmem:[#allocation15_spill] sm:$0xff] }
 0x2b2   :  { %v11838_v45 = vpack.c.bf16 %v2013_v26, %v2012_v37  ;;  %v1980_v38 = vmul.f32 %v9462_v36, %v11800_v58  ;;  %v1919_v39 = vpop.f32.mrb[9].mxu0  ;;  %9502 = vmatprep.subr.bf16.mxu1 %v10505_v24  ;;  %v2032_v4 = vmul.bf16 %v13372_v25, %v11818_v33  ;;  %v2033_v41 = vmul.bf16 %v13372_v25, %v11815_v13 }
 0x2b3   :  { %v11841_v60 = vpack.c.bf16 %v2011_v28, %v2010_v29  ;;  %v1978_v6 = vmul.f32 %v11800_v58, %v1919_v39  ;;  %v9463_v19 = vpop.f32.mrb[10].mxu0  ;;  %v10510_v28 = vld [vmem:[#allocation2 + $0x30] sm:$0xff]  }
 0x2b4   :  { %v2000_v56 = vadd.f32 %v11805_v47, %v1980_v38  ;;  %v1981_v57 = vmul.f32 %v9463_v19, %v11800_v58  ;;  %v1922_v35 = vpop.f32.mrb[11].mxu0  ;;  %v2155_v54 = vrot.slane %v11838_v45, 6  ;;  %v11864_v49 = vshrl.u32 %v2032_v4, 16 }
 0x2b5   :  { %v1998_v43 = vadd.f32 %v11805_v47, %v1978_v6  ;;  %v1979_v48 = vmul.f32 %v11800_v58, %v1922_v35  ;;  %9503 = vmatpush3.bf16.msra.mxu1 %v10505_v24  ;;  %v2154_v2 = vrot.slane %v11841_v60, 6  ;;  %v11868_v11 = vshll.u32 %v2032_v4, 16 }
 0x2b6   :  { %v2001_v20 = vadd.f32 %v11805_v47, %v1981_v57  ;;  %9504 = vmatprep.subr.bf16.mxu1 %v10506_v53  ;;  %v2016_v51 = vmax.f32 %v2000_v56, 0.0  ;;  %v2051_v5 = vrot.slane %v11864_v49, 5  ;;  %v2035_v18 = vmul.bf16 %v13372_v25, %v11838_v45 }
 0x2b7   :  { %v1999_v16 = vadd.f32 %v11805_v47, %v1979_v48  ;;  %9488 = vmatprep.mubr.msk.bf16.mxu1 %vm11822_vm5, %v2154_v2  ;;  %v2014_v46 = vmax.f32 %v1998_v43, 0.0  ;;  %v2054_v24 = vrot.slane %v11868_v11, 6  ;;  %v11888_v26 = vshrl.u32 %v2033_v41, 16 }
 0x2b8   :  { %v2017_v14 = vmax.f32 %v2001_v20, 0.0  ;;  %9489 = vmatmul.mubr.msk.bf16.gmra.mrb[4].mxu1 %vm11822_vm5, %v2155_v54  ;;  %v11892_v36 = vshll.u32 %v2033_v41, 16  ;;  %v11902_v56 = vshrl.u32 %v2035_v18, 16  ;;  %v11904_v57 = vshll.u32 %v2035_v18, 16  ;;  %v10511_v20 = vld [vmem:[#allocation2 + $0x38] sm:$0xff]  }
 0x2b9   :  { %v2015_v31 = vmax.f32 %v1999_v16, 0.0  ;;  %9505 = vmatpush3.bf16.msra.mxu1 %v10506_v53  ;;  %v9466_v52 = vpop.f32.mrb[12].mxu0  ;;  %v2055_v19 = vor.u32 %v2054_v24, %v2051_v5  ;;  %v2059_v48 = vrot.slane %v11888_v26, 5  ;;  %v10513_v24 = vld [vmem:[#allocation2 + $0x88] sm:$0xff]  }
 0x2ba   :  { %v11858_v63 = vpack.c.bf16 %v2017_v14, %v2016_v51  ;;  %v1984_v61 = vmul.f32 %v9466_v52, %v11800_v58  ;;  %v1935_v8 = vpop.f32.mrb[13].mxu0  ;;  %9506 = vmatprep.subr.bf16.mxu1 %v10507_v7  ;;  %v2062_v54 = vrot.slane %v11892_v36, 6  ;;  %v13376_v14 = vld [vmem:[#allocation19_spill] sm:$0xff] }
 0x2bb   :  { %v11861_v3 = vpack.c.bf16 %v2015_v31, %v2014_v46  ;;  %v1982_v44 = vmul.f32 %v11800_v58, %v1935_v8  ;;  %v9467_v12 = vpop.f32.mrb[14].mxu0  ;;  %v2040_v46 = vmul.bf16 %v13376_v14, %v11818_v33  ;;  %v2120_v52 = vsel %vm11269_vm6, 0, %v2055_v19 }
 0x2bc   :  { %13373 = vst [vmem:[#allocation22_spill] sm:$0xff] %v11858_v63  ;;  %v2004_v59 = vadd.f32 %v11805_v47, %v1984_v61  ;;  %v1985_v55 = vmul.f32 %v9467_v12, %v11800_v58  ;;  %v1938_v42 = vpop.f32.mrb[15].mxu0  ;;  %v2157_v62 = vrot.slane %v11858_v63, 6  ;;  %v2037_v35 = vmul.bf16 %v13372_v25, %v11858_v63 }
 0x2bd   :  { %v2002_v23 = vadd.f32 %v11805_v47, %v1982_v44  ;;  %v1983_v27 = vmul.f32 %v11800_v58, %v1938_v42  ;;  %9507 = vmatpush3.bf16.msra.mxu1 %v10507_v7  ;;  %v2156_v21 = vrot.slane %v11861_v3, 6  ;;  %v2034_v58 = vmul.bf16 %v13372_v25, %v11841_v60 }
 0x2be   :  { %v2005_v32 = vadd.f32 %v11805_v47, %v1985_v55  ;;  %9508 = vmatprep.subr.bf16.mxu1 %v10508_v10  ;;  %v2020_v30 = vmax.f32 %v2004_v59, 0.0  ;;  %v2036_v38 = vmul.bf16 %v13372_v25, %v11861_v3  ;;  %v2075_v61 = vrot.slane %v11902_v56, 5  ;;  %v10512_v59 = vld [vmem:[#allocation2 + $0x80] sm:$0xff]  }
 0x2bf   :  { %v2003_v1 = vadd.f32 %v11805_v47, %v1983_v27  ;;  %9492 = vmatprep.mubr.msk.bf16.mxu1 %vm11822_vm5, %v2156_v21  ;;  %v2018_v37 = vmax.f32 %v2002_v23, 0.0  ;;  %v11898_v53 = vshrl.u32 %v2034_v58, 16  ;;  %v11900_v6 = vshll.u32 %v2034_v58, 16 }
 0x2c0   :  { %v2021_v9 = vmax.f32 %v2005_v32, 0.0  ;;  %9493 = vmatmul.mubr.msk.bf16.gmra.mrb[8].mxu1 %vm11822_vm5, %v2157_v62  ;;  %v11912_v7 = vshrl.u32 %v2036_v38, 16  ;;  %v11914_v16 = vshll.u32 %v2036_v38, 16  ;;  %v2078_v8 = vrot.slane %v11904_v57, 6 }
 0x2c1   :  { %v2019_v47 = vmax.f32 %v2003_v1, 0.0  ;;  %9509 = vmatpush3.bf16.msra.mxu1 %v10508_v10  ;;  %v2067_v4 = vrot.slane %v11898_v53, 5  ;;  %v2070_v51 = vrot.slane %v11900_v6, 6  ;;  %v11928_v10 = vshrl.u32 %v2037_v35, 16 }
 0x2c2   :  { %v11890_v29 = vpack.c.bf16 %v2021_v9, %v2020_v30  ;;  %9510 = vmatprep.subr.bf16.mxu1 %v10509_v15  ;;  %v11930_v44 = vshll.u32 %v2037_v35, 16  ;;  %v2063_v55 = vor.u32 %v2062_v54, %v2059_v48  ;;  %v2083_v42 = vrot.slane %v11912_v7, 5 }
 0x2c3   :  { %v11896_v39 = vpack.c.bf16 %v2019_v47, %v2018_v37  ;;  %v2086_v23 = vrot.slane %v11914_v16, 6  ;;  %v2071_v27 = vor.u32 %v2070_v51, %v2067_v4  ;;  %v11936_v21 = vshrl.u32 %v2040_v46, 16 }
 0x2c4   :  { %13374 = vst [vmem:[#allocation23_spill] sm:$0xff] %v11890_v29  ;;  %v2159_v2 = vrot.slane %v11890_v29, 6  ;;  %v11938_v41 = vshll.u32 %v2040_v46, 16  ;;  %v2041_v32 = vmul.bf16 %v13376_v14, %v11815_v13  ;;  %v2079_v62 = vor.u32 %v2078_v8, %v2075_v61  ;;  %v10514_v46 = vld [vmem:[#allocation2 + $0x90] sm:$0xff]  }
 0x2c5   :  { %13375 = vst [vmem:[#allocation24_spill] sm:$0xff] %v11896_v39  ;;  %9511 = vmatpush3.bf16.msra.mxu1 %v10509_v15  ;;  %v2158_v43 = vrot.slane %v11896_v39, 6  ;;  %v2038_v12 = vmul.bf16 %v13372_v25, %v11896_v39  ;;  %v2091_v15 = vrot.slane %v11928_v10, 5  ;;  %v2094_v1 = vrot.slane %v11930_v44, 6 }
 0x2c6   :  { %9512 = vmatprep.subr.bf16.mxu1 %v10510_v28  ;;  %v2042_v30 = vmul.bf16 %v13376_v14, %v11841_v60  ;;  %v2121_v9 = vsel %vm11269_vm6, 0, %v2063_v55  ;;  %v2087_v18 = vor.u32 %v2086_v23, %v2083_v42  ;;  %v2039_v37 = vmul.bf16 %v13372_v25, %v11890_v29 }
 0x2c7   :  { %9496 = vmatprep.mubr.msk.bf16.mxu1 %vm11822_vm5, %v2158_v43  ;;  %v11944_v5 = vshrl.u32 %v2038_v12, 16  ;;  %v11946_v58 = vshll.u32 %v2038_v12, 16  ;;  %v2122_v47 = vsel %vm11269_vm6, 0, %v2071_v27  ;;  %v11958_v19 = vshrl.u32 %v2041_v32, 16 }
 0x2c8   :  { %9497 = vmatmul.mubr.msk.bf16.gmra.mrb[12].mxu1 %vm11822_vm5, %v2159_v2  ;;  %v2123_v35 = vsel %vm11269_vm6, 0, %v2079_v62  ;;  %v11962_v43 = vshll.u32 %v2041_v32, 16  ;;  %v2749_v48 = vrot.slane %v11864_v49, 7  ;;  %v2751_v2 = vrot.slane %v11888_v26, 7 }
 0x2c9   :  { %9513 = vmatpush3.bf16.msra.mxu1 %v10510_v28  ;;  %9516 = vmatprep.mubr.bf16.mxu1 %v2120_v52  ;;  %v2099_v54 = vrot.slane %v11944_v5, 5  ;;  %v2102_v4 = vrot.slane %v11946_v58, 6  ;;  %v11970_v51 = vshrl.u32 %v2042_v30, 16  ;;  %v2124_v52 = vsel %vm11269_vm6, 0, %v2087_v18 }
 0x2ca   :  { %9514 = vmatprep.subr.bf16.mxu1 %v10511_v20  ;;  %v11974_v61 = vshrl.u32 %v2039_v37, 16  ;;  %v2043_v8 = vmul.bf16 %v13376_v14, %v11838_v45  ;;  %v11979_v12 = vor.u32 %v2749_v48, %v11868_v11  ;;  %v2044_v55 = vmul.bf16 %v13376_v14, %v11861_v3 }
 0x2cb   :  { %v11986_v42 = vor.u32 %v2751_v2, %v11892_v36  ;;  %v2753_v23 = vrot.slane %v11898_v53, 7  ;;  %v11989_v27 = vshll.u32 %v2042_v30, 16  ;;  %v2045_v32 = vmul.bf16 %v13376_v14, %v11858_v63  ;;  %v10515_v30 = vld [vmem:[#allocation2 + $0x98] sm:$0xff]  }
 0x2cc   :  { %v2046_v62 = vmul.bf16 %v13376_v14, %v11896_v39  ;;  %v2759_v2 = vrot.slane %v11928_v10, 7  ;;  %v3137_v38 = vrot.slane %v11938_v41, 1  ;;  %v12035_v40 = vshrl.u32 %v2043_v8, 16 }
 0x2cd   :  { %9515 = vmatpush3.bf16.msra.mxu1 %v10511_v20  ;;  %v11966_v20 = vor.u32 %v2094_v1, %v2091_v15  ;;  %v2755_v15 = vrot.slane %v11902_v56, 7  ;;  %v2103_v1 = vor.u32 %v2102_v4, %v2099_v54  ;;  %v11999_v18 = vor.u32 %v2753_v23, %v11900_v6 }
 0x2ce   :  { %9532 = vmatprep.subr.bf16.mxu1 %v10512_v59  ;;  %v12009_v54 = vshll.u32 %v2044_v55, 16  ;;  %v2763_v23 = vrot.slane %v11974_v61, 7  ;;  %v12016_v28 = vshll.u32 %v2045_v32, 16  ;;  %v12032_v50 = vor.u32 %v3137_v38, %v11936_v21 }
 0x2cf   :  { %v12005_v48 = vor.u32 %v2755_v15, %v11904_v57  ;;  %v12021_v15 = vor.u32 %v2759_v2, %v11930_v44  ;;  %v12037_v2 = vshrl.u32 %v2044_v55, 16  ;;  %v3351_v63 = vrot.slane %v11892_v36, 2 }
 0x2d0   :  { %9517 = vmatmul.mubr.bf16.vlgmr.msra.gmra.mrb[0].mxu1 %v2121_v9  ;;  %v2047_v9 = vmul.bf16 %v13376_v14, %v11890_v29  ;;  %v12018_v14 = vshll.u32 %v2046_v62, 16  ;;  %13378 = vst [vmem:[#allocation25_spill] sm:$0xff] %v12032_v50  ;;  %v12043_v29 = vshrl.u32 %v2046_v62, 16  ;;  %v3145_v38 = vrot.slane %v12009_v54, 1 }
 0x2d1   :  { %9533 = vmatpush3.bf16.msra.mxu1 %v10512_v59  ;;  %9520 = vmatprep.mubr.bf16.mxu1 %v2122_v47  ;;  %v11981_v59 = vshll.u32 %v2039_v37, 16  ;;  %v2757_v37 = vrot.slane %v11912_v7, 7  ;;  %v12002_v47 = vshll.u32 %v2043_v8, 16  ;;  %v3147_v55 = vrot.slane %v12016_v28, 1 }
 0x2d2   :  { %9534 = vmatprep.subr.bf16.mxu1 %v10513_v24  ;;  %v12026_v34 = vshll.u32 %v2047_v9, 16  ;;  %v3149_v39 = vrot.slane %v12018_v14, 1  ;;  %v12060_v62 = vor.u32 %v3145_v38, %v12037_v2  ;;  %v3357_v36 = vrot.slane %v11904_v57, 2 }
 0x2d3   :  { %v12012_v4 = vor.u32 %v2757_v37, %v11914_v16  ;;  %v12029_v37 = vor.u32 %v2763_v23, %v11981_v59  ;;  %v2505_v57 = vrot.slane %v11962_v43, 7 }
 0x2d4   :  { %13382 = vst [vmem:[#allocation28_spill] sm:$0xff] %v12060_v62  ;;  %v3350_v62 = vrot.slane %v11888_v26, 1  ;;  %v3356_v26 = vrot.slane %v11902_v56, 1 }
 0x2d5   :  { %9535 = vmatpush3.bf16.msra.mxu1 %v10513_v24  ;;  %v2761_v24 = vrot.slane %v11944_v5, 7 }
 0x2d6   :  { %9536 = vmatprep.subr.bf16.mxu1 %v10514_v46  ;;  %v12102_v56 = vor.u32 %v3357_v36, %v3356_v26  ;;  %v3778_v36 = vrot.slane %v11958_v19, 2 }
 0x2d7   :  { %v12024_v25 = vor.u32 %v2761_v24, %v11946_v58  ;;  %v3141_v24 = vrot.slane %v11989_v27, 1 }
 0x2d8   :  { %9521 = vmatmul.mubr.bf16.gmra.mrb[4].mxu1 %v2123_v35  ;;  %v3139_v35 = vrot.slane %v11962_v43, 1 }
 0x2d9   :  { %9537 = vmatpush3.bf16.msra.mxu1 %v10514_v46  ;;  %9524 = vmatprep.mubr.bf16.mxu1 %v2124_v52  ;;  %v3143_v46 = vrot.slane %v12002_v47, 1  ;;  %v12041_v52 = vshrl.u32 %v2045_v32, 16  ;;  %v12050_v50 = vor.u32 %v3141_v24, %v11970_v51  ;;  %v12057_v32 = vshrl.u32 %v2047_v9, 16 }
 0x2da   :  { %9538 = vmatprep.subr.bf16.mxu1 %v10515_v30  ;;  %v12046_v23 = vor.u32 %v3139_v35, %v11958_v19  ;;  %v3151_v35 = vrot.slane %v12026_v34, 1  ;;  %v2125_v24 = vsel %vm11269_vm6, 0, %v11966_v20  ;;  %v12072_v9 = vor.u32 %v3149_v39, %v12043_v29 }
 0x2db   :  { %13380 = vst [vmem:[#allocation17_spill] sm:$0xff] %v12050_v50  ;;  %v12053_v8 = vor.u32 %v3143_v46, %v12035_v40  ;;  %v10517_v46 = vld [vmem:[#allocation2 + $0xa8] sm:$0xff]   ;;  %v12069_v50 = vor.u32 %v3147_v55, %v12041_v52  ;;  %v2126_v20 = vsel %vm11269_vm6, 0, %v2103_v1  ;;  %v3353_v55 = vrot.slane %v11898_v53, 1 }
 0x2dc   :  { %13379 = vst [vmem:[#allocation26_spill] sm:$0xff] %v12046_v23  ;;  %v3347_v23 = vrot.slane %v11864_v49, 1  ;;  %13384 = vst [vmem:[#allocation30_spill] sm:$0xff] %v12072_v9  ;;  %v12076_v38 = vor.u32 %v3151_v35, %v12057_v32  ;;  %v3348_v49 = vrot.slane %v11868_v11, 2  ;;  %v13386_v39 = vrot.slane %v11936_v21, 6 }
 0x2dd   :  { %13381 = vst [vmem:[#allocation27_spill] sm:$0xff] %v12053_v8  ;;  %9539 = vmatpush3.bf16.msra.mxu1 %v10515_v30  ;;  %v2107_v8 = vrot.slane %v11974_v61, 5  ;;  %13383 = vst [vmem:[#allocation29_spill] sm:$0xff] %v12069_v50  ;;  %v2110_v30 = vrot.slane %v11981_v59, 6  ;;  %v13387_v9 = vrot.slane %v11938_v41, 7  ;;  %v3354_v11 = vrot.slane %v11900_v6, 2 }
 0x2de   :  { %9540 = vmatprep.subr.bf16.mxu1 %v10516_v17  ;;  %13385 = vst [vmem:[#allocation31_spill] sm:$0xff] %v12076_v38  ;;  %v12088_v38 = vor.u32 %v3348_v49, %v3347_v23  ;;  %v12092_v1 = vor.u32 %v3351_v63, %v3350_v62  ;;  %v3360_v53 = vrot.slane %v11914_v16, 2  ;;  %v3362_v23 = vrot.slane %v11928_v10, 1  ;;  %v10519_v10 = vld [vmem:[#allocation2 + $0xb8] sm:$0xff]  }
 0x2df   :  { %v2498_v35 = vor.u32 %v13387_v9, %v13386_v39  ;;  %v12097_v50 = vor.u32 %v3354_v11, %v3353_v55  ;;  %v3363_v9 = vrot.slane %v11930_v44, 2  ;;  %v2502_v6 = vrot.slane %v11958_v19, 6  ;;  %v10520_v11 = vld [vmem:[#allocation2 + $0xc0] sm:$0xff]  }
 0x2e0   :  { %9525 = vmatmul.mubr.bf16.gmra.mrb[8].mxu1 %v2125_v24  ;;  %v10518_v24 = vld [vmem:[#allocation2 + $0xb0] sm:$0xff]   ;;  %v3365_v63 = vrot.slane %v11944_v5, 1  ;;  %v3366_v16 = vrot.slane %v11946_v58, 2  ;;  %v2510_v44 = vrot.slane %v11970_v51, 6  ;;  %v2513_v62 = vrot.slane %v11989_v27, 7 }
 0x2e1   :  { %9541 = vmatpush3.bf16.msra.mxu1 %v10516_v17  ;;  %9528 = vmatprep.mubr.bf16.mxu1 %v2126_v20  ;;  %v3359_v17 = vrot.slane %v11912_v7, 1  ;;  %v2111_v20 = vor.u32 %v2110_v30, %v2107_v8  ;;  %v12108_v7 = vor.u32 %v3363_v9, %v3362_v23  ;;  %v3368_v8 = vrot.slane %v11974_v61, 1 }
 0x2e2   :  { %9542 = vmatprep.subr.bf16.mxu1 %v10517_v46  ;;  %v3369_v30 = vrot.slane %v11981_v59, 2  ;;  %v2563_v55 = vsel %vm11432_vm8, 0, %v2498_v35  ;;  %v2506_v61 = vor.u32 %v2505_v57, %v2502_v6  ;;  %v3775_v39 = vrot.slane %v11936_v21, 2 }
 0x2e3   :  { %v12104_v49 = vor.u32 %v3360_v53, %v3359_v17  ;;  %v2127_v5 = vsel %vm11269_vm6, 0, %v2111_v20  ;;  %v2514_v26 = vor.u32 %v2513_v62, %v2510_v44  ;;  %v3776_v59 = vrot.slane %v11938_v41, 3 }
 0x2e4   :  { %v12121_v58 = vor.u32 %v3369_v30, %v3368_v8  ;;  %v3779_v17 = vrot.slane %v11962_v43, 3  ;;  %v3781_v53 = vrot.slane %v11970_v51, 2  ;;  %v3782_v35 = vrot.slane %v11989_v27, 3 }
 0x2e5   :  { %9543 = vmatpush3.bf16.msra.mxu1 %v10517_v46  ;;  %v12117_v46 = vor.u32 %v3366_v16, %v3365_v63  ;;  %v3784_v20 = vrot.slane %v12035_v40, 2  ;;  %v12131_v23 = vor.u32 %v3776_v59, %v3775_v39  ;;  %v3787_v9 = vrot.slane %v12037_v2, 2  ;;  %v10521_v63 = vld [vmem:[#allocation2 + $0xc8] sm:$0xff]  }
 0x2e6   :  { %9544 = vmatprep.subr.bf16.mxu1 %v10518_v24  ;;  %v12133_v21 = vor.u32 %v3779_v17, %v3778_v36  ;;  %v3788_v41 = vrot.slane %v12009_v54, 3  ;;  %v12137_v19 = vor.u32 %v3782_v35, %v3781_v53  ;;  %v3790_v51 = vrot.slane %v12041_v52, 2  ;;  %v10523_v17 = vld [vmem:[#allocation2 + $0xd8] sm:$0xff]  }
 0x2e7   :  { %v3791_v27 = vrot.slane %v12016_v28, 3  ;;  %v2564_v6 = vsel %vm11432_vm8, 0, %v2506_v61  ;;  %v2518_v57 = vrot.slane %v12035_v40, 6  ;;  %v3793_v8 = vrot.slane %v12043_v29, 2 }
 0x2e8   :  { %9529 = vmatmul.mubr.bf16.gmra.mrb[12].mxu1 %v2127_v5  ;;  %v12146_v16 = vor.u32 %v3788_v41, %v3787_v9  ;;  %v2526_v44 = vrot.slane %v12037_v2, 6  ;;  %v3794_v30 = vrot.slane %v12018_v14, 3  ;;  %v2565_v5 = vsel %vm11432_vm8, 0, %v2514_v26 }
 0x2e9   :  { %9545 = vmatpush3.bf16.msra.mxu1 %v10518_v24  ;;  %9548 = vmatprep.mubr.bf16.mxu1 %v2563_v55  ;;  %v3785_v24 = vrot.slane %v12002_v47, 3  ;;  %v12151_v62 = vor.u32 %v3791_v27, %v3790_v51  ;;  %v2529_v55 = vrot.slane %v12009_v54, 7  ;;  %v3796_v40 = vrot.slane %v12057_v32, 2  ;;  %v10525_v51 = vld [vmem:[#allocation2 + $0xe8] sm:$0xff]  }
 0x2ea   :  { %9546 = vmatprep.subr.bf16.mxu1 %v10519_v10  ;;  %v3797_v61 = vrot.slane %v12026_v34, 3  ;;  %v12159_v39 = vor.u32 %v3794_v30, %v3793_v8  ;;  %v2534_v26 = vrot.slane %v12041_v52, 6  ;;  %v2537_v53 = vrot.slane %v12016_v28, 7  ;;  %v10529_v8 = vld [vmem:[#allocation2 + $0x108] sm:$0xff]   ;;  %v10531_v30 = vld [vmem:[#allocation2 + $0x118] sm:$0xff]  }
 0x2eb   :  { %v12139_v43 = vor.u32 %v3785_v24, %v3784_v20  ;;  %v2530_v36 = vor.u32 %v2529_v55, %v2526_v44  ;;  %v2542_v35 = vrot.slane %v12043_v29, 6  ;;  %v2545_v20 = vrot.slane %v12018_v14, 7  ;;  %v10524_v24 = vld [vmem:[#allocation2 + $0xe0] sm:$0xff]   ;;  %v10526_v14 = vld [vmem:[#allocation2 + $0xf0] sm:$0xff]   ;;  %v10533_v55 = vld [vmem:[#allocation2 + $0x128] sm:$0xff]  }
 0x2ec   :  { %v12161_v2 = vor.u32 %v3797_v61, %v3796_v40  ;;  %v2538_v9 = vor.u32 %v2537_v53, %v2534_v26  ;;  %v2550_v52 = vrot.slane %v12057_v32, 6  ;;  %v2553_v27 = vrot.slane %v12026_v34, 7  ;;  %v10528_v32 = vld [vmem:[#allocation2 + $0x100] sm:$0xff]   ;;  %v10535_v61 = vld [vmem:[#allocation2 + $0x138] sm:$0xff]   ;;  %v13389_v26 = vld [vmem:[#allocation24_spill] sm:$0xff] }
 0x2ed   :  { %9547 = vmatpush3.bf16.msra.mxu1 %v10519_v10  ;;  %v2521_v10 = vrot.slane %v12002_v47, 7  ;;  %v10522_v47 = vld [vmem:[#allocation2 + $0xd0] sm:$0xff]   ;;  %v2546_v41 = vor.u32 %v2545_v20, %v2542_v35  ;;  %v2773_v34 = vsel %vm11596_vm11, 0, %v11979_v12  ;;  %v2775_v44 = vsel %vm11596_vm11, 0, %v11999_v18  ;;  %v10532_v18 = vld [vmem:[#allocation2 + $0x120] sm:$0xff]  }
 0x2ee   :  { %9564 = vmatprep.subr.bf16.mxu1 %v10520_v11  ;;  %v2568_v28 = vsel %vm11432_vm8, 0, %v2538_v9  ;;  %v10530_v12 = vld [vmem:[#allocation2 + $0x110] sm:$0xff]   ;;  %v2778_v40 = vsel %vm11596_vm11, 0, %v12021_v15  ;;  %v10536_v15 = vld [vmem:[#allocation2 + $0x140] sm:$0xff]  }
 0x2ef   :  { %v2522_v59 = vor.u32 %v2521_v10, %v2518_v57  ;;  %v2569_v29 = vsel %vm11432_vm8, 0, %v2546_v41  ;;  %v2774_v10 = vsel %vm11596_vm11, 0, %v11986_v42  ;;  %v2777_v42 = vsel %vm11596_vm11, 0, %v12012_v4  ;;  %v10534_v4 = vld [vmem:[#allocation2 + $0x130] sm:$0xff]   ;;  %v13390_v35 = vld [vmem:[#allocation23_spill] sm:$0xff] }
 0x2f0   :  { %9549 = vmatmul.mubr.bf16.vlgmr.msra.gmra.mrb[0].mxu1 %v2564_v6  ;;  %v2554_v6 = vor.u32 %v2553_v27, %v2550_v52  ;;  %v10542_v53 = vld [vmem:[#allocation2 + $0x170] sm:$0xff]   ;;  %v10568_v41 = vld [vmem:[#allocation5 + $0x40] sm:$0xff]   ;;  %v10545_v27 = vld [vmem:[#allocation2 + $0x188] sm:$0xff]  }
 0x2f1   :  { %9565 = vmatpush3.bf16.msra.mxu1 %v10520_v11  ;;  %9552 = vmatprep.mubr.bf16.mxu1 %v2565_v5  ;;  %v2566_v54 = vsel %vm11432_vm8, 0, %v2522_v59  ;;  %v2567_v11 = vsel %vm11432_vm8, 0, %v2530_v36  ;;  %v2776_v5 = vsel %vm11596_vm11, 0, %v12005_v48  ;;  %v2779_v48 = vsel %vm11596_vm11, 0, %v12024_v25  ;;  %v10537_v25 = vld [vmem:[#allocation2 + $0x148] sm:$0xff]   ;;  %v10538_v59 = vld [vmem:[#allocation2 + $0x150] sm:$0xff]  }
 0x2f2   :  { %9566 = vmatprep.subr.bf16.mxu1 %v10521_v63  ;;  %v2570_v57 = vsel %vm11432_vm8, 0, %v2554_v6  ;;  %v10539_v36 = vld [vmem:[#allocation2 + $0x158] sm:$0xff]   ;;  %v13391_v20 = vld [vmem:[#allocation25_spill] sm:$0xff]  ;;  %9756 = vmatprep.subr.bf16.mxu0 %v10568_v41 }
 0x2f3   :  { %v3161_v9 = vsel %vm11656_vm14, %v13391_v20, 0  ;;  %9757 = vmatpush3.bf16.msra.mxu0 %v10568_v41  ;;  %v10570_v52 = vld [vmem:[#allocation5 + $0x50] sm:$0xff]   ;;  %v3382_v20 = vsel %vm11693_vm1, %v12102_v56, 0  ;;  %v3384_v41 = vsel %vm11693_vm1, %v12108_v7, 0  ;;  %v3385_v56 = vsel %vm11693_vm1, %v12117_v46, 0  ;;  %v10560_v7 = vld [vmem:[#allocation2 + $0x200] sm:$0xff]  }
 0x2f4   :  { %v13394_v6 = vld [vmem:[#allocation17_spill] sm:$0xff]  ;;  %v3566_v46 = vrot.slane %v11815_v13, 2 }
 0x2f5   :  { %9567 = vmatpush3.bf16.msra.mxu1 %v10521_v63  ;;  %v10527_v63 = vld [vmem:[#allocation2 + $0xf8] sm:$0xff]  }
 0x2f6   :  { %9568 = vmatprep.subr.bf16.mxu1 %v10522_v47 }
 0x2f8   :  { %9553 = vmatmul.mubr.bf16.gmra.mrb[4].mxu1 %v2566_v54  ;;  %v13388_v54 = vld [vmem:[#allocation22_spill] sm:$0xff] }
 0x2f9   :  { %9569 = vmatpush3.bf16.msra.mxu1 %v10522_v47  ;;  %9556 = vmatprep.mubr.bf16.mxu1 %v2567_v11  ;;  %v2780_v47 = vsel %vm11596_vm11, 0, %v12029_v37  ;;  %v10540_v37 = vld [vmem:[#allocation2 + $0x160] sm:$0xff]   ;;  %v10543_v11 = vld [vmem:[#allocation2 + $0x178] sm:$0xff]  }
 0x2fa   :  { %9570 = vmatprep.subr.bf16.mxu1 %v10523_v17 }
 0x2fd   :  { %9571 = vmatpush3.bf16.msra.mxu1 %v10523_v17  ;;  %v10541_v17 = vld [vmem:[#allocation2 + $0x168] sm:$0xff]  }
 0x2fe   :  { %9572 = vmatprep.subr.bf16.mxu1 %v10524_v24 }
 0x300   :  { %9557 = vmatmul.mubr.bf16.gmra.mrb[8].mxu1 %v2568_v28  ;;  %v10544_v28 = vld [vmem:[#allocation2 + $0x180] sm:$0xff]  }
 0x301   :  { %9573 = vmatpush3.bf16.msra.mxu1 %v10524_v24  ;;  %9560 = vmatprep.mubr.bf16.mxu1 %v2569_v29  ;;  %v13393_v29 = vld [vmem:[#allocation26_spill] sm:$0xff] }
 0x302   :  { %9574 = vmatprep.subr.bf16.mxu1 %v10525_v51 }
 0x305   :  { %9575 = vmatpush3.bf16.msra.mxu1 %v10525_v51  ;;  %v10569_v51 = vld [vmem:[#allocation5 + $0x48] sm:$0xff]  }
 0x306   :  { %9576 = vmatprep.subr.bf16.mxu1 %v10526_v14  ;;  %9758 = vmatprep.subr.bf16.mxu0 %v10569_v51 }
 0x307   :  { %9759 = vmatpush3.bf16.msra.mxu0 %v10569_v51  ;;  %v10559_v51 = vld [vmem:[#allocation2 + $0x1f8] sm:$0xff]  }
 0x308   :  { %9561 = vmatmul.mubr.bf16.gmra.mrb[12].mxu1 %v2570_v57  ;;  %9760 = vmatprep.subr.bf16.mxu0 %v10570_v52  ;;  %v10571_v57 = vld [vmem:[#allocation5 + $0x58] sm:$0xff]  }
 0x309   :  { %9577 = vmatpush3.bf16.msra.mxu1 %v10526_v14  ;;  %9580 = vmatprep.mubr.bf16.mxu1 %v2773_v34  ;;  %v3162_v14 = vsel %vm11656_vm14, %v13393_v29, 0  ;;  %v10546_v34 = vld [vmem:[#allocation2 + $0x190] sm:$0xff]   ;;  %v3567_v29 = vrot.slane %v11841_v60, 2 }
 0x30a   :  { %9578 = vmatprep.subr.bf16.mxu1 %v10527_v63 }
 0x30b   :  { %9761 = vmatpush3.bf16.msra.mxu0 %v10570_v52  ;;  %v3565_v52 = vrot.slane %v11818_v33, 2 }
 0x30c   :  { %9762 = vmatprep.subr.bf16.mxu0 %v10571_v57 }
 0x30d   :  { %9579 = vmatpush3.bf16.msra.mxu1 %v10527_v63  ;;  %v3163_v63 = vsel %vm11656_vm14, %v13394_v6, 0  ;;  %v3569_v6 = vrot.slane %v11861_v3, 2 }
 0x30e   :  { %9596 = vmatprep.subr.bf16.mxu1 %v10528_v32 }
 0x30f   :  { %9763 = vmatpush3.bf16.msra.mxu0 %v10571_v57  ;;  %v3571_v57 = vrot.slane %v13389_v26, 2 }
 0x310   :  { %9581 = vmatmul.mubr.bf16.vlgmr.msra.gmra.mrb[0].mxu1 %v2774_v10  ;;  %v13395_v10 = vld [vmem:[#allocation27_spill] sm:$0xff] }
 0x311   :  { %9597 = vmatpush3.bf16.msra.mxu1 %v10528_v32  ;;  %9584 = vmatprep.mubr.bf16.mxu1 %v2775_v44  ;;  %v10572_v32 = vld [vmem:[#allocation5 + $0x60] sm:$0xff]   ;;  %v3164_v44 = vsel %vm11656_vm14, %v13395_v10, 0  ;;  %v10573_v10 = vld [vmem:[#allocation5 + $0x68] sm:$0xff]  }
 0x312   :  { %9598 = vmatprep.subr.bf16.mxu1 %v10529_v8  ;;  %9764 = vmatprep.subr.bf16.mxu0 %v10572_v32 }
 0x313   :  { %9765 = vmatpush3.bf16.msra.mxu0 %v10572_v32 }
 0x314   :  { %9766 = vmatprep.subr.bf16.mxu0 %v10573_v10 }
 0x315   :  { %9599 = vmatpush3.bf16.msra.mxu1 %v10529_v8  ;;  %v10547_v8 = vld [vmem:[#allocation2 + $0x198] sm:$0xff]  }
 0x316   :  { %9600 = vmatprep.subr.bf16.mxu1 %v10530_v12 }
 0x317   :  { %9767 = vmatpush3.bf16.msra.mxu0 %v10573_v10 }
 0x318   :  { %9585 = vmatmul.mubr.bf16.gmra.mrb[4].mxu1 %v2776_v5  ;;  %v10548_v5 = vld [vmem:[#allocation2 + $0x1a0] sm:$0xff]  }
 0x319   :  { %9601 = vmatpush3.bf16.msra.mxu1 %v10530_v12  ;;  %9588 = vmatprep.mubr.bf16.mxu1 %v2777_v42  ;;  %v13396_v12 = vld [vmem:[#allocation28_spill] sm:$0xff] }
 0x31a   :  { %9602 = vmatprep.subr.bf16.mxu1 %v10531_v30  ;;  %v10549_v42 = vld [vmem:[#allocation2 + $0x1a8] sm:$0xff]  }
 0x31d   :  { %9603 = vmatpush3.bf16.msra.mxu1 %v10531_v30  ;;  %v3165_v30 = vsel %vm11656_vm14, %v13396_v12, 0  ;;  %v10576_v12 = vld [vmem:[#allocation5] sm:$0xff]  }
 0x31e   :  { %9604 = vmatprep.subr.bf16.mxu1 %v10532_v18 }
 0x320   :  { %9589 = vmatmul.mubr.bf16.gmra.mrb[8].mxu1 %v2778_v40  ;;  %v13398_v40 = vld [vmem:[#allocation30_spill] sm:$0xff] }
 0x321   :  { %9605 = vmatpush3.bf16.msra.mxu1 %v10532_v18  ;;  %9592 = vmatprep.mubr.bf16.mxu1 %v2779_v48  ;;  %v13397_v18 = vld [vmem:[#allocation29_spill] sm:$0xff]  ;;  %v3167_v48 = vsel %vm11656_vm14, %v13398_v40, 0 }
 0x322   :  { %9606 = vmatprep.subr.bf16.mxu1 %v10533_v55 }
 0x325   :  { %9607 = vmatpush3.bf16.msra.mxu1 %v10533_v55  ;;  %v3166_v55 = vsel %vm11656_vm14, %v13397_v18, 0 }
 0x326   :  { %9608 = vmatprep.subr.bf16.mxu1 %v10534_v4 }
 0x328   :  { %9593 = vmatmul.mubr.bf16.gmra.mrb[12].mxu1 %v2780_v47  ;;  %v13399_v47 = vld [vmem:[#allocation31_spill] sm:$0xff] }
 0x329   :  { %9609 = vmatpush3.bf16.msra.mxu1 %v10534_v4  ;;  %9612 = vmatprep.mubr.bf16.mxu1 %v11818_v33  ;;  %v10550_v4 = vld [vmem:[#allocation2 + $0x1b0] sm:$0xff]  }
 0x32a   :  { %9610 = vmatprep.subr.bf16.mxu1 %v10535_v61  ;;  %v10562_v33 = vld [vmem:[#allocation2 + $0x210] sm:$0xff]  }
 0x32d   :  { %9611 = vmatpush3.bf16.msra.mxu1 %v10535_v61  ;;  %v10551_v61 = vld [vmem:[#allocation2 + $0x1b8] sm:$0xff]  }
 0x32e   :  { %9628 = vmatprep.subr.bf16.mxu1 %v10536_v15 }
 0x330   :  { %9613 = vmatmul.mubr.bf16.vlgmr.msra.gmra.mrb[0].mxu1 %v11815_v13  ;;  %v10564_v13 = vld [vmem:[#allocation2 + $0x220] sm:$0xff]  }
 0x331   :  { %9629 = vmatpush3.bf16.msra.mxu1 %v10536_v15  ;;  %9616 = vmatprep.mubr.bf16.mxu1 %v11841_v60  ;;  %v3168_v15 = vsel %vm11656_vm14, %v13399_v47, 0  ;;  %v3570_v60 = vrot.slane %v13388_v54, 2 }
 0x332   :  { %9630 = vmatprep.subr.bf16.mxu1 %v10537_v25 }
 0x335   :  { %9631 = vmatpush3.bf16.msra.mxu1 %v10537_v25  ;;  %v10588_v25 = vld [vmem:[#allocation5 + $0xa0] sm:$0xff]  }
 0x336   :  { %9632 = vmatprep.subr.bf16.mxu1 %v10538_v59 }
 0x338   :  { %9617 = vmatmul.mubr.bf16.gmra.mrb[4].mxu1 %v11838_v45 }
 0x339   :  { %9633 = vmatpush3.bf16.msra.mxu1 %v10538_v59  ;;  %9620 = vmatprep.mubr.bf16.mxu1 %v11861_v3  ;;  %v3379_v59 = vsel %vm11693_vm1, %v12088_v38, 0  ;;  %v10554_v38 = vld [vmem:[#allocation2 + $0x1d0] sm:$0xff]   ;;  %v3572_v3 = vrot.slane %v13390_v35, 2 }
 0x33a   :  { %9634 = vmatprep.subr.bf16.mxu1 %v10539_v36 }
 0x33d   :  { %9635 = vmatpush3.bf16.msra.mxu1 %v10539_v36  ;;  %v10552_v36 = vld [vmem:[#allocation2 + $0x1c0] sm:$0xff]  }
 0x33e   :  { %9636 = vmatprep.subr.bf16.mxu1 %v10540_v37 }
 0x340   :  { %9621 = vmatmul.mubr.bf16.gmra.mrb[8].mxu1 %v13388_v54  ;;  %v3807_v54 = vsel %vm11759_vm7, %v12131_v23, 0  ;;  %v3811_v23 = vsel %vm11759_vm7, %v12146_v16, 0  ;;  %v10575_v16 = vld [vmem:[#allocation5 + $0x78] sm:$0xff]  }
 0x341   :  { %9637 = vmatpush3.bf16.msra.mxu1 %v10540_v37  ;;  %9624 = vmatprep.mubr.bf16.mxu1 %v13389_v26  ;;  %v10553_v37 = vld [vmem:[#allocation2 + $0x1c8] sm:$0xff]   ;;  %v3808_v26 = vsel %vm11759_vm7, %v12133_v21, 0  ;;  %v3812_v21 = vsel %vm11759_vm7, %v12151_v62, 0  ;;  %v12302_v62 = vld [vmem:[%s13282_s6 + $0x2] ss:$0 sm:$0xff] }
 0x342   :  { %9638 = vmatprep.subr.bf16.mxu1 %v10541_v17 }
 0x345   :  { %9639 = vmatpush3.bf16.msra.mxu1 %v10541_v17  ;;  %v3380_v17 = vsel %vm11693_vm1, %v12092_v1, 0  ;;  %v3383_v1 = vsel %vm11693_vm1, %v12104_v49, 0  ;;  %v10558_v49 = vld [vmem:[#allocation2 + $0x1f0] sm:$0xff]  }
 0x346   :  { %9640 = vmatprep.subr.bf16.mxu1 %v10542_v53 }
 0x348   :  { %9625 = vmatmul.mubr.bf16.gmra.mrb[12].mxu1 %v13390_v35  ;;  %v3809_v35 = vsel %vm11759_vm7, %v12137_v19, 0  ;;  %v3813_v19 = vsel %vm11759_vm7, %v12159_v39, 0  ;;  %v12307_v39 = vld [vmem:[%s13282_s6 + $0x3] ss:$0 sm:$0xff] }
 0x349   :  { %9641 = vmatpush3.bf16.msra.mxu1 %v10542_v53  ;;  %9644 = vmatprep.mubr.bf16.mxu1 %v3161_v9  ;;  %v3381_v53 = vsel %vm11693_vm1, %v12097_v50, 0  ;;  %v10556_v50 = vld [vmem:[#allocation2 + $0x1e0] sm:$0xff]   ;;  %v10557_v9 = vld [vmem:[#allocation2 + $0x1e8] sm:$0xff]  }
 0x34a   :  { %9642 = vmatprep.subr.bf16.mxu1 %v10543_v11 }
 0x34d   :  { %9643 = vmatpush3.bf16.msra.mxu1 %v10543_v11  ;;  %v10555_v11 = vld [vmem:[#allocation2 + $0x1d8] sm:$0xff]  }
 0x34e   :  { %9660 = vmatprep.subr.bf16.mxu1 %v10544_v28 }
 0x350   :  { %9645 = vmatmul.mubr.bf16.vlgmr.msra.gmra.mrb[0].mxu1 %v3162_v14  ;;  %v10563_v14 = vld [vmem:[#allocation2 + $0x218] sm:$0xff]  }
 0x351   :  { %9661 = vmatpush3.bf16.msra.mxu1 %v10544_v28  ;;  %9648 = vmatprep.mubr.bf16.mxu1 %v3163_v63  ;;  %v3386_v28 = vsel %vm11693_vm1, %v12121_v58, 0  ;;  %v3568_v58 = vrot.slane %v11838_v45, 2  ;;  %v10565_v63 = vld [vmem:[#allocation2 + $0x228] sm:$0xff]   ;;  %v10566_v45 = vld [vmem:[#allocation2 + $0x230] sm:$0xff]  }
 0x352   :  { %9662 = vmatprep.subr.bf16.mxu1 %v10545_v27 }
 0x355   :  { %9663 = vmatpush3.bf16.msra.mxu1 %v10545_v27  ;;  %v10561_v27 = vld [vmem:[#allocation2 + $0x208] sm:$0xff]  }
 0x356   :  { %9664 = vmatprep.subr.bf16.mxu1 %v10546_v34 }
 0x358   :  { %9649 = vmatmul.mubr.bf16.gmra.mrb[4].mxu1 %v3164_v44  ;;  %v10574_v44 = vld [vmem:[#allocation5 + $0x70] sm:$0xff]  }
 0x359   :  { %9665 = vmatpush3.bf16.msra.mxu1 %v10546_v34  ;;  %9652 = vmatprep.mubr.bf16.mxu1 %v3165_v30  ;;  %v10567_v34 = vld [vmem:[#allocation2 + $0x238] sm:$0xff]  }
 0x35a   :  { %9666 = vmatprep.subr.bf16.mxu1 %v10547_v8  ;;  %9768 = vmatprep.subr.bf16.mxu0 %v10574_v44 }
 0x35b   :  { %9769 = vmatpush3.bf16.msra.mxu0 %v10574_v44 }
 0x35c   :  { %9770 = vmatprep.subr.bf16.mxu0 %v10575_v16 }
 0x35d   :  { %9667 = vmatpush3.bf16.msra.mxu1 %v10547_v8  ;;  %v3810_v8 = vsel %vm11759_vm7, %v12139_v43, 0  ;;  %v3814_v43 = vsel %vm11759_vm7, %v12161_v2, 0 }
 0x35e   :  { %9668 = vmatprep.subr.bf16.mxu1 %v10548_v5 }
 0x35f   :  { %9771 = vmatpush3.bf16.msra.mxu0 %v10575_v16  ;;  %v10579_v16 = vld [vmem:[#allocation5 + $0x18] sm:$0xff]  }
 0x360   :  { %9653 = vmatmul.mubr.bf16.gmra.mrb[8].mxu1 %v3166_v55  ;;  %9788 = vmatprep.subr.bf16.mxu0 %v10576_v12 }
 0x361   :  { %9669 = vmatpush3.bf16.msra.mxu1 %v10548_v5  ;;  %9656 = vmatprep.mubr.bf16.mxu1 %v3167_v48 }
 0x362   :  { %9670 = vmatprep.subr.bf16.mxu1 %v10549_v42 }
 0x365   :  { %9671 = vmatpush3.bf16.msra.mxu1 %v10549_v42 }
 0x366   :  { %9672 = vmatprep.subr.bf16.mxu1 %v10550_v4 }
 0x368   :  { %9657 = vmatmul.mubr.bf16.gmra.mrb[12].mxu1 %v3168_v15 }
 0x369   :  { %9673 = vmatpush3.bf16.msra.mxu1 %v10550_v4  ;;  %9676 = vmatprep.mubr.bf16.mxu1 %v3379_v59 }
 0x36a   :  { %9674 = vmatprep.subr.bf16.mxu1 %v10551_v61 }
 0x36d   :  { %9675 = vmatpush3.bf16.msra.mxu1 %v10551_v61 }
 0x36e   :  { %9692 = vmatprep.subr.bf16.mxu1 %v10552_v36 }
 0x370   :  { %9677 = vmatmul.mubr.bf16.vlgmr.msra.gmra.mrb[0].mxu1 %v3380_v17 }
 0x371   :  { %9693 = vmatpush3.bf16.msra.mxu1 %v10552_v36  ;;  %9680 = vmatprep.mubr.bf16.mxu1 %v3381_v53 }
 0x372   :  { %9694 = vmatprep.subr.bf16.mxu1 %v10553_v37 }
 0x375   :  { %9695 = vmatpush3.bf16.msra.mxu1 %v10553_v37 }
 0x376   :  { %9696 = vmatprep.subr.bf16.mxu1 %v10554_v38 }
 0x378   :  { %9681 = vmatmul.mubr.bf16.gmra.mrb[4].mxu1 %v3382_v20 }
 0x379   :  { %9697 = vmatpush3.bf16.msra.mxu1 %v10554_v38  ;;  %9684 = vmatprep.mubr.bf16.mxu1 %v3383_v1 }
 0x37a   :  { %9698 = vmatprep.subr.bf16.mxu1 %v10555_v11 }
 0x37d   :  { %9699 = vmatpush3.bf16.msra.mxu1 %v10555_v11 }
 0x37e   :  { %9700 = vmatprep.subr.bf16.mxu1 %v10556_v50 }
 0x380   :  { %9685 = vmatmul.mubr.bf16.gmra.mrb[8].mxu1 %v3384_v41 }
 0x381   :  { %9701 = vmatpush3.bf16.msra.mxu1 %v10556_v50  ;;  %9688 = vmatprep.mubr.bf16.mxu1 %v3385_v56 }
 0x382   :  { %9702 = vmatprep.subr.bf16.mxu1 %v10557_v9 }
 0x385   :  { %9703 = vmatpush3.bf16.msra.mxu1 %v10557_v9 }
 0x386   :  { %9704 = vmatprep.subr.bf16.mxu1 %v10558_v49 }
 0x388   :  { %9689 = vmatmul.mubr.bf16.gmra.mrb[12].mxu1 %v3386_v28 }
 0x389   :  { %9705 = vmatpush3.bf16.msra.mxu1 %v10558_v49  ;;  %9708 = vmatprep.mubr.msk.bf16.mxu1 %vm1622_vm2, %v3565_v52 }
 0x38a   :  { %9706 = vmatprep.subr.bf16.mxu1 %v10559_v51 }
 0x38d   :  { %9707 = vmatpush3.bf16.msra.mxu1 %v10559_v51 }
 0x38e   :  { %9724 = vmatprep.subr.bf16.mxu1 %v10560_v7 }
 0x390   :  { %9709 = vmatmul.mubr.msk.bf16.vlgmr.msra.gmra.mrb[0].mxu1 %vm1622_vm2, %v3566_v46 }
 0x391   :  { %9725 = vmatpush3.bf16.msra.mxu1 %v10560_v7  ;;  %9712 = vmatprep.mubr.msk.bf16.mxu1 %vm1622_vm2, %v3567_v29 }
 0x392   :  { %9726 = vmatprep.subr.bf16.mxu1 %v10561_v27 }
 0x395   :  { %9727 = vmatpush3.bf16.msra.mxu1 %v10561_v27  ;;  %v10577_v27 = vld [vmem:[#allocation5 + $0x8] sm:$0xff]  }
 0x396   :  { %9728 = vmatprep.subr.bf16.mxu1 %v10562_v33 }
 0x398   :  { %9713 = vmatmul.mubr.msk.bf16.gmra.mrb[4].mxu1 %vm1622_vm2, %v3568_v58 }
 0x399   :  { %9729 = vmatpush3.bf16.msra.mxu1 %v10562_v33  ;;  %9716 = vmatprep.mubr.msk.bf16.mxu1 %vm1622_vm2, %v3569_v6 }
 0x39a   :  { %9730 = vmatprep.subr.bf16.mxu1 %v10563_v14 }
 0x39d   :  { %9731 = vmatpush3.bf16.msra.mxu1 %v10563_v14 }
 0x39e   :  { %9732 = vmatprep.subr.bf16.mxu1 %v10564_v13 }
 0x3a0   :  { %9717 = vmatmul.mubr.msk.bf16.gmra.mrb[8].mxu1 %vm1622_vm2, %v3570_v60 }
 0x3a1   :  { %9733 = vmatpush3.bf16.msra.mxu1 %v10564_v13  ;;  %9720 = vmatprep.mubr.msk.bf16.mxu1 %vm1622_vm2, %v3571_v57 }
 0x3a2   :  { %9734 = vmatprep.subr.bf16.mxu1 %v10565_v63 }
 0x3a5   :  { %9735 = vmatpush3.bf16.msra.mxu1 %v10565_v63 }
 0x3a6   :  { %9736 = vmatprep.subr.bf16.mxu1 %v10566_v45 }
 0x3a8   :  { %9721 = vmatmul.mubr.msk.bf16.gmra.mrb[12].mxu1 %vm1622_vm2, %v3572_v3  ;;  %v10578_v3 = vld [vmem:[#allocation5 + $0x10] sm:$0xff]  }
 0x3a9   :  { %9737 = vmatpush3.bf16.msra.mxu1 %v10566_v45  ;;  %9740 = vmatprep.mubr.bf16.mxu1 %v3807_v54 }
 0x3aa   :  { %9738 = vmatprep.subr.bf16.mxu1 %v10567_v34 }
 0x3ad   :  { %9739 = vmatpush3.bf16.msra.mxu1 %v10567_v34 }
 0x3b0   :  { %9741 = vmatmul.mubr.bf16.vlgmr.msra.gmra.mrb[0].mxu1 %v3808_v26 }
 0x3b1   :  { %9744 = vmatprep.mubr.bf16.mxu1 %v3809_v35 }
 0x3b8   :  { %9745 = vmatmul.mubr.bf16.gmra.mrb[4].mxu1 %v3810_v8 }
 0x3b9   :  { %9748 = vmatprep.mubr.bf16.mxu1 %v3811_v23 }
 0x3c0   :  { %9749 = vmatmul.mubr.bf16.gmra.mrb[8].mxu1 %v3812_v21 }
 0x3c1   :  { %9752 = vmatprep.mubr.bf16.mxu1 %v3813_v19 }
 0x3c8   :  { %9753 = vmatmul.mubr.bf16.gmra.mrb[12].mxu1 %v3814_v43 }
 0x483   :  { %v9742_v2 = vpop.f32.mrb[0].mxu1 }
 0x484   :  { %v3999_v30 = vmul.f32 %v9742_v2, %v12302_v62  ;;  %v3914_v5 = vpop.f32.mrb[1].mxu1  ;;  %v13403_v2 = vld [vmem:[#allocation15_spill] sm:$0xff] }
 0x485   :  { %v3997_v42 = vmul.f32 %v12302_v62, %v3914_v5  ;;  %v9743_v18 = vpop.f32.mrb[2].mxu1 }
 0x486   :  { %v4019_v55 = vadd.f32 %v12307_v39, %v3999_v30  ;;  %v4000_v40 = vmul.f32 %v9743_v18, %v12302_v62  ;;  %v3917_v48 = vpop.f32.mrb[3].mxu1 }
 0x487   :  { %v4017_v4 = vadd.f32 %v12307_v39, %v3997_v42  ;;  %v3998_v61 = vmul.f32 %v12302_v62, %v3917_v48 }
 0x488   :  { %v4020_v47 = vadd.f32 %v12307_v39, %v4000_v40  ;;  %v4035_v59 = vmax.f32 %v4019_v55, 0.0 }
 0x489   :  { %v4018_v15 = vadd.f32 %v12307_v39, %v3998_v61  ;;  %v4033_v37 = vmax.f32 %v4017_v4, 0.0 }
 0x48a   :  { %v4036_v36 = vmax.f32 %v4020_v47, 0.0  ;;  %v10580_v47 = vld [vmem:[#allocation5 + $0x20] sm:$0xff]  }
 0x48b   :  { %v4034_v17 = vmax.f32 %v4018_v15, 0.0  ;;  %v9746_v53 = vpop.f32.mrb[4].mxu1 }
 0x48c   :  { %v12317_v38 = vpack.c.bf16 %v4036_v36, %v4035_v59  ;;  %v4003_v11 = vmul.f32 %v9746_v53, %v12302_v62  ;;  %v3930_v20 = vpop.f32.mrb[5].mxu1 }
 0x48d   :  { %v12320_v1 = vpack.c.bf16 %v4034_v17, %v4033_v37  ;;  %v4001_v50 = vmul.f32 %v12302_v62, %v3930_v20  ;;  %v9747_v9 = vpop.f32.mrb[6].mxu1 }
 0x48e   :  { %v4023_v41 = vadd.f32 %v12307_v39, %v4003_v11  ;;  %v4004_v56 = vmul.f32 %v9747_v9, %v12302_v62  ;;  %v3933_v49 = vpop.f32.mrb[7].mxu1  ;;  %v4180_v46 = vrot.slane %v12317_v38, 6 }
 0x48f   :  { %v4021_v51 = vadd.f32 %v12307_v39, %v4001_v50  ;;  %v4002_v28 = vmul.f32 %v12302_v62, %v3933_v49  ;;  %v4179_v52 = vrot.slane %v12320_v1, 6  ;;  %v4059_v30 = vmul.bf16 %v13403_v2, %v12320_v1 }
 0x490   :  { %v4024_v7 = vadd.f32 %v12307_v39, %v4004_v56  ;;  %v4039_v58 = vmax.f32 %v4023_v41, 0.0  ;;  %v4060_v56 = vmul.bf16 %v13403_v2, %v12317_v38 }
 0x491   :  { %v4022_v29 = vadd.f32 %v12307_v39, %v4002_v28  ;;  %9772 = vmatprep.mubr.msk.bf16.mxu0 %vm11822_vm5, %v4179_v52  ;;  %v4037_v6 = vmax.f32 %v4021_v51, 0.0  ;;  %v12361_v37 = vshrl.u32 %v4059_v30, 16  ;;  %v12365_v20 = vshll.u32 %v4059_v30, 16  ;;  %v10581_v28 = vld [vmem:[#allocation5 + $0x28] sm:$0xff]  }
 0x492   :  { %v4040_v14 = vmax.f32 %v4024_v7, 0.0  ;;  %9773 = vmatmul.mubr.msk.bf16.vlgmr.msra.gmra.mrb[16].mxu0 %vm11822_vm5, %v4180_v46 }
 0x493   :  { %v4038_v13 = vmax.f32 %v4022_v29, 0.0  ;;  %9789 = vmatpush3.bf16.msra.mxu0 %v10576_v12  ;;  %v9750_v60 = vpop.f32.mrb[8].mxu1  ;;  %v4078_v7 = vrot.slane %v12361_v37, 5  ;;  %v4081_v29 = vrot.slane %v12365_v20, 6 }
 0x494   :  { %v12335_v63 = vpack.c.bf16 %v4040_v14, %v4039_v58  ;;  %v4007_v57 = vmul.f32 %v9750_v60, %v12302_v62  ;;  %v3946_v45 = vpop.f32.mrb[9].mxu1  ;;  %9790 = vmatprep.subr.bf16.mxu0 %v10577_v27  ;;  %v10582_v60 = vld [vmem:[#allocation5 + $0x30] sm:$0xff]  }
 0x495   :  { %v12338_v34 = vpack.c.bf16 %v4038_v13, %v4037_v6  ;;  %v4005_v54 = vmul.f32 %v12302_v62, %v3946_v45  ;;  %v9751_v26 = vpop.f32.mrb[10].mxu1  ;;  %v12385_v6 = vshrl.u32 %v4060_v56, 16 }
 0x496   :  { %v4027_v35 = vadd.f32 %v12307_v39, %v4007_v57  ;;  %v4008_v8 = vmul.f32 %v9751_v26, %v12302_v62  ;;  %v3949_v23 = vpop.f32.mrb[11].mxu1  ;;  %v4182_v44 = vrot.slane %v12335_v63, 6  ;;  %v4062_v58 = vmul.bf16 %v13403_v2, %v12335_v63 }
 0x497   :  { %v4025_v21 = vadd.f32 %v12307_v39, %v4005_v54  ;;  %v4006_v19 = vmul.f32 %v12302_v62, %v3949_v23  ;;  %9791 = vmatpush3.bf16.msra.mxu0 %v10577_v27  ;;  %v4181_v43 = vrot.slane %v12338_v34, 6  ;;  %v12389_v57 = vshll.u32 %v4060_v56, 16 }
 0x498   :  { %v4028_v10 = vadd.f32 %v12307_v39, %v4008_v8  ;;  %9792 = vmatprep.subr.bf16.mxu0 %v10578_v3  ;;  %v4043_v5 = vmax.f32 %v4027_v35, 0.0  ;;  %v4082_v35 = vor.u32 %v4081_v29, %v4078_v7  ;;  %v12399_v8 = vshrl.u32 %v4062_v58, 16 }
 0x499   :  { %v4026_v12 = vadd.f32 %v12307_v39, %v4006_v19  ;;  %9776 = vmatprep.mubr.msk.bf16.mxu0 %vm11822_vm5, %v4181_v43  ;;  %v4041_v18 = vmax.f32 %v4025_v21, 0.0  ;;  %v12401_v23 = vshll.u32 %v4062_v58, 16  ;;  %v4086_v43 = vrot.slane %v12385_v6, 5 }
 0x49a   :  { %v4044_v42 = vmax.f32 %v4028_v10, 0.0  ;;  %9777 = vmatmul.mubr.msk.bf16.gmra.mrb[20].mxu0 %vm11822_vm5, %v4182_v44  ;;  %v10583_v44 = vld [vmem:[#allocation5 + $0x38] sm:$0xff]  }
 0x49b   :  { %v4042_v55 = vmax.f32 %v4026_v12, 0.0  ;;  %9793 = vmatpush3.bf16.msra.mxu0 %v10578_v3  ;;  %v9754_v40 = vpop.f32.mrb[12].mxu1 }
 0x49c   :  { %v12355_v48 = vpack.c.bf16 %v4044_v42, %v4043_v5  ;;  %v4011_v4 = vmul.f32 %v9754_v40, %v12302_v62  ;;  %v3962_v61 = vpop.f32.mrb[13].mxu1  ;;  %9794 = vmatprep.subr.bf16.mxu0 %v10579_v16  ;;  %v4147_v40 = vsel %vm11269_vm6, 0, %v4082_v35 }
 0x49d   :  { %v12358_v15 = vpack.c.bf16 %v4042_v55, %v4041_v18  ;;  %v4009_v59 = vmul.f32 %v12302_v62, %v3962_v61  ;;  %v9755_v36 = vpop.f32.mrb[14].mxu1  ;;  %v13407_v18 = vld [vmem:[#allocation19_spill] sm:$0xff]  ;;  %v4105_v61 = vrot.slane %v12401_v23, 6 }
 0x49e   :  { %13404 = vst [vmem:[#allocation22_spill] sm:$0xff] %v12355_v48  ;;  %v4031_v17 = vadd.f32 %v12307_v39, %v4011_v4  ;;  %v4012_v53 = vmul.f32 %v9755_v36, %v12302_v62  ;;  %v3965_v11 = vpop.f32.mrb[15].mxu1  ;;  %v4184_v51 = vrot.slane %v12355_v48, 6  ;;  %v4064_v21 = vmul.bf16 %v13403_v2, %v12355_v48 }
 0x49f   :  { %v4029_v50 = vadd.f32 %v12307_v39, %v4009_v59  ;;  %v4010_v9 = vmul.f32 %v12302_v62, %v3965_v11  ;;  %9795 = vmatpush3.bf16.msra.mxu0 %v10579_v16  ;;  %v4183_v41 = vrot.slane %v12358_v15, 6  ;;  %v4061_v62 = vmul.bf16 %v13403_v2, %v12338_v34 }
 0x4a0   :  { %v4032_v49 = vadd.f32 %v12307_v39, %v4012_v53  ;;  %9796 = vmatprep.subr.bf16.mxu0 %v10580_v47  ;;  %v4047_v46 = vmax.f32 %v4031_v17, 0.0  ;;  %v4063_v45 = vmul.bf16 %v13403_v2, %v12358_v15  ;;  %v4089_v16 = vrot.slane %v12389_v57, 6  ;;  %v10584_v17 = vld [vmem:[#allocation5 + $0x80] sm:$0xff]  }
 0x4a1   :  { %v4030_v52 = vadd.f32 %v12307_v39, %v4010_v9  ;;  %9780 = vmatprep.mubr.msk.bf16.mxu0 %vm11822_vm5, %v4183_v41  ;;  %v4045_v14 = vmax.f32 %v4029_v50, 0.0  ;;  %v12395_v54 = vshrl.u32 %v4061_v62, 16  ;;  %v12397_v26 = vshll.u32 %v4061_v62, 16 }
 0x4a2   :  { %v4048_v27 = vmax.f32 %v4032_v49, 0.0  ;;  %9781 = vmatmul.mubr.msk.bf16.gmra.mrb[24].mxu0 %vm11822_vm5, %v4184_v51  ;;  %v12409_v12 = vshrl.u32 %v4063_v45, 16  ;;  %v12411_v30 = vshll.u32 %v4063_v45, 16  ;;  %v4067_v55 = vmul.bf16 %v13407_v18, %v12320_v1 }
 0x4a3   :  { %v4046_v39 = vmax.f32 %v4030_v52, 0.0  ;;  %9797 = vmatpush3.bf16.msra.mxu0 %v10580_v47  ;;  %v4094_v5 = vrot.slane %v12395_v54, 5  ;;  %v4097_v42 = vrot.slane %v12397_v26, 6  ;;  %v4102_v4 = vrot.slane %v12399_v8, 5 }
 0x4a4   :  { %v12387_v13 = vpack.c.bf16 %v4048_v27, %v4047_v46  ;;  %9798 = vmatprep.subr.bf16.mxu0 %v10581_v28  ;;  %v12425_v47 = vshrl.u32 %v4064_v21, 16  ;;  %v12427_v59 = vshll.u32 %v4064_v21, 16  ;;  %v4090_v33 = vor.u32 %v4089_v16, %v4086_v43  ;;  %v10585_v27 = vld [vmem:[#allocation5 + $0x88] sm:$0xff]  }
 0x4a5   :  { %v12393_v3 = vpack.c.bf16 %v4046_v39, %v4045_v14  ;;  %v4110_v53 = vrot.slane %v12409_v12, 5  ;;  %v4113_v11 = vrot.slane %v12411_v30, 6  ;;  %v4098_v50 = vor.u32 %v4097_v42, %v4094_v5  ;;  %v10586_v5 = vld [vmem:[#allocation5 + $0x90] sm:$0xff]  }
 0x4a6   :  { %13405 = vst [vmem:[#allocation24_spill] sm:$0xff] %v12387_v13  ;;  %v4186_v10 = vrot.slane %v12387_v13, 6  ;;  %v12433_v9 = vshrl.u32 %v4067_v55, 16  ;;  %v12435_v41 = vshll.u32 %v4067_v55, 16  ;;  %v4068_v56 = vmul.bf16 %v13407_v18, %v12317_v38 }
 0x4a7   :  { %13406 = vst [vmem:[#allocation23_spill] sm:$0xff] %v12393_v3  ;;  %9799 = vmatpush3.bf16.msra.mxu0 %v10581_v28  ;;  %v4185_v19 = vrot.slane %v12393_v3, 6  ;;  %v4065_v36 = vmul.bf16 %v13403_v2, %v12393_v3  ;;  %v4106_v49 = vor.u32 %v4105_v61, %v4102_v4  ;;  %v4118_v51 = vrot.slane %v12425_v47, 5 }
 0x4a8   :  { %9800 = vmatprep.subr.bf16.mxu0 %v10582_v60  ;;  %v4121_v28 = vrot.slane %v12427_v59, 6  ;;  %v4069_v62 = vmul.bf16 %v13407_v18, %v12338_v34  ;;  %v4148_v46 = vsel %vm11269_vm6, 0, %v4090_v33  ;;  %v4114_v29 = vor.u32 %v4113_v11, %v4110_v53 }
 0x4a9   :  { %9784 = vmatprep.mubr.msk.bf16.mxu0 %vm11822_vm5, %v4185_v19  ;;  %v12441_v52 = vshrl.u32 %v4065_v36, 16  ;;  %v12443_v7 = vshll.u32 %v4065_v36, 16  ;;  %v4066_v58 = vmul.bf16 %v13403_v2, %v12387_v13  ;;  %v4149_v14 = vsel %vm11269_vm6, 0, %v4098_v50 }
 0x4aa   :  { %9785 = vmatmul.mubr.msk.bf16.gmra.mrb[28].mxu0 %vm11822_vm5, %v4186_v10  ;;  %v12455_v45 = vshrl.u32 %v4068_v56, 16  ;;  %v4150_v35 = vsel %vm11269_vm6, 0, %v4106_v49  ;;  %v12459_v21 = vshll.u32 %v4068_v56, 16  ;;  %v4776_v19 = vrot.slane %v12361_v37, 7 }
 0x4ab   :  { %9801 = vmatpush3.bf16.msra.mxu0 %v10582_v60  ;;  %9804 = vmatprep.mubr.bf16.mxu0 %v4147_v40  ;;  %v4778_v43 = vrot.slane %v12385_v6, 7  ;;  %v12463_v2 = vor.u32 %v4121_v28, %v4118_v51  ;;  %v4126_v10 = vrot.slane %v12441_v52, 5  ;;  %v12467_v16 = vshrl.u32 %v4069_v62, 16 }
 0x4ac   :  { %9802 = vmatprep.subr.bf16.mxu0 %v10583_v44  ;;  %v4151_v42 = vsel %vm11269_vm6, 0, %v4114_v29  ;;  %v12471_v55 = vshrl.u32 %v4066_v58, 16  ;;  %v4070_v40 = vmul.bf16 %v13407_v18, %v12335_v63  ;;  %v12476_v4 = vor.u32 %v4776_v19, %v12365_v20 }
 0x4ad   :  { %v12478_v61 = vshll.u32 %v4066_v58, 16  ;;  %v4071_v36 = vmul.bf16 %v13407_v18, %v12358_v15  ;;  %v4780_v33 = vrot.slane %v12395_v54, 7  ;;  %v12486_v53 = vshll.u32 %v4069_v62, 16  ;;  %v10587_v62 = vld [vmem:[#allocation5 + $0x98] sm:$0xff]  }
 0x4ae   :  { %v4072_v11 = vmul.bf16 %v13407_v18, %v12355_v48  ;;  %v4073_v50 = vmul.bf16 %v13407_v18, %v12393_v3  ;;  %v4782_v56 = vrot.slane %v12399_v8, 7  ;;  %v4074_v51 = vmul.bf16 %v13407_v18, %v12387_v13 }
 0x4af   :  { %9803 = vmatpush3.bf16.msra.mxu0 %v10583_v44  ;;  %v4129_v44 = vrot.slane %v12443_v7, 6  ;;  %v12496_v28 = vor.u32 %v4780_v33, %v12397_v26  ;;  %v12499_v29 = vshll.u32 %v4070_v40, 16  ;;  %v12506_v19 = vshll.u32 %v4071_v36, 16 }
 0x4b0   :  { %9820 = vmatprep.subr.bf16.mxu0 %v10584_v17  ;;  %v12502_v58 = vor.u32 %v4782_v56, %v12401_v23  ;;  %v12515_v33 = vshll.u32 %v4073_v50, 16  ;;  %v12523_v39 = vshll.u32 %v4074_v51, 16  ;;  %v12532_v24 = vshrl.u32 %v4070_v40, 16 }
 0x4b1   :  { %v4130_v49 = vor.u32 %v4129_v44, %v4126_v10  ;;  %v5164_v10 = vrot.slane %v12435_v41, 1  ;;  %v12513_v44 = vshll.u32 %v4072_v11, 16  ;;  %v12540_v13 = vshrl.u32 %v4073_v50, 16 }
 0x4b2   :  { %9805 = vmatmul.mubr.bf16.vlgmr.msra.gmra.mrb[16].mxu0 %v4148_v46  ;;  %v4784_v46 = vrot.slane %v12409_v12, 7  ;;  %v5176_v3 = vrot.slane %v12515_v33, 1  ;;  %v5378_v48 = vrot.slane %v12389_v57, 2  ;;  %v5805_v31 = vrot.slane %v12455_v45, 2 }
 0x4b3   :  { %9821 = vmatpush3.bf16.msra.mxu0 %v10584_v17  ;;  %9808 = vmatprep.mubr.bf16.mxu0 %v4149_v14  ;;  %v12483_v17 = vor.u32 %v4778_v43, %v12389_v57  ;;  %v4786_v14 = vrot.slane %v12425_v47, 7  ;;  %v4790_v43 = vrot.slane %v12471_v55, 7  ;;  %v12529_v32 = vor.u32 %v5164_v10, %v12433_v9 }
 0x4b4   :  { %9822 = vmatprep.subr.bf16.mxu0 %v10585_v27  ;;  %v12509_v18 = vor.u32 %v4784_v46, %v12411_v30  ;;  %v5172_v10 = vrot.slane %v12506_v19, 1  ;;  %v5384_v57 = vrot.slane %v12401_v23, 2  ;;  %v4532_v23 = vrot.slane %v12459_v21, 7 }
 0x4b5   :  { %v12518_v56 = vor.u32 %v4786_v14, %v12427_v59  ;;  %v12526_v46 = vor.u32 %v4790_v43, %v12478_v61  ;;  %13408 = vst [vmem:[#allocation25_spill] sm:$0xff] %v12529_v32  ;;  %v12534_v14 = vshrl.u32 %v4071_v36, 16  ;;  %v5174_v36 = vrot.slane %v12513_v44, 1 }
 0x4b6   :  { %v4802_v0 = vsel %vm11596_vm11, 0, %v12496_v28  ;;  %v10604_v28 = vld [vmem:[#allocation5 + $0x120] sm:$0xff]  }
 0x4b7   :  { %9823 = vmatpush3.bf16.msra.mxu0 %v10585_v27  ;;  %v4788_v27 = vrot.slane %v12441_v52, 7  ;;  %v12557_v50 = vor.u32 %v5172_v10, %v12534_v14 }
 0x4b8   :  { %9824 = vmatprep.subr.bf16.mxu0 %v10586_v5 }
 0x4b9   :  { %v12521_v60 = vor.u32 %v4788_v27, %v12443_v7  ;;  %v5168_v27 = vrot.slane %v12486_v53, 1  ;;  %13412 = vst [vmem:[#allocation28_spill] sm:$0xff] %v12557_v50  ;;  %v5377_v50 = vrot.slane %v12385_v6, 1  ;;  %v5383_v6 = vrot.slane %v12399_v8, 1 }
 0x4ba   :  { %9809 = vmatmul.mubr.bf16.gmra.mrb[20].mxu0 %v4150_v35  ;;  %v5166_v35 = vrot.slane %v12459_v21, 1 }
 0x4bb   :  { %9825 = vmatpush3.bf16.msra.mxu0 %v10586_v5  ;;  %9812 = vmatprep.mubr.bf16.mxu0 %v4151_v42  ;;  %v5170_v5 = vrot.slane %v12499_v29, 1  ;;  %v12538_v42 = vshrl.u32 %v4072_v11, 16  ;;  %v12547_v32 = vor.u32 %v5168_v27, %v12467_v16  ;;  %v12554_v11 = vshrl.u32 %v4074_v51, 16 }
 0x4bc   :  { %9826 = vmatprep.subr.bf16.mxu0 %v10587_v62  ;;  %v12543_v43 = vor.u32 %v5166_v35, %v12455_v45  ;;  %v5178_v35 = vrot.slane %v12523_v39, 1  ;;  %v4152_v27 = vsel %vm11269_vm6, 0, %v12463_v2  ;;  %v12569_v51 = vor.u32 %v5176_v3, %v12540_v13 }
 0x4bd   :  { %13410 = vst [vmem:[#allocation17_spill] sm:$0xff] %v12547_v32  ;;  %v12550_v40 = vor.u32 %v5170_v5, %v12532_v24  ;;  %v10589_v5 = vld [vmem:[#allocation5 + $0xa8] sm:$0xff]   ;;  %v12566_v32 = vor.u32 %v5174_v36, %v12538_v42  ;;  %v4153_v2 = vsel %vm11269_vm6, 0, %v4130_v49  ;;  %v5380_v36 = vrot.slane %v12395_v54, 1 }
 0x4be   :  { %13409 = vst [vmem:[#allocation26_spill] sm:$0xff] %v12543_v43  ;;  %v5374_v43 = vrot.slane %v12361_v37, 1  ;;  %13414 = vst [vmem:[#allocation30_spill] sm:$0xff] %v12569_v51  ;;  %v12573_v10 = vor.u32 %v5178_v35, %v12554_v11  ;;  %v5375_v37 = vrot.slane %v12365_v20, 2  ;;  %v13416_v3 = vrot.slane %v12433_v9, 6 }
 0x4bf   :  { %13411 = vst [vmem:[#allocation27_spill] sm:$0xff] %v12550_v40  ;;  %9827 = vmatpush3.bf16.msra.mxu0 %v10587_v62  ;;  %v4134_v40 = vrot.slane %v12471_v55, 5  ;;  %13413 = vst [vmem:[#allocation29_spill] sm:$0xff] %v12566_v32  ;;  %v4137_v62 = vrot.slane %v12478_v61, 6  ;;  %v13417_v51 = vrot.slane %v12435_v41, 7  ;;  %v5381_v20 = vrot.slane %v12397_v26, 2 }
 0x4c0   :  { %9828 = vmatprep.subr.bf16.mxu0 %v10588_v25  ;;  %13415 = vst [vmem:[#allocation31_spill] sm:$0xff] %v12573_v10  ;;  %v12585_v10 = vor.u32 %v5375_v37, %v5374_v43  ;;  %v12589_v49 = vor.u32 %v5378_v48, %v5377_v50  ;;  %v5387_v54 = vrot.slane %v12411_v30, 2  ;;  %v5389_v43 = vrot.slane %v12425_v47, 1  ;;  %v10591_v47 = vld [vmem:[#allocation5 + $0xb8] sm:$0xff]  }
 0x4c1   :  { %v4525_v35 = vor.u32 %v13417_v51, %v13416_v3  ;;  %v12594_v32 = vor.u32 %v5381_v20, %v5380_v36  ;;  %v5390_v51 = vrot.slane %v12427_v59, 2  ;;  %v4529_v26 = vrot.slane %v12455_v45, 6  ;;  %v10592_v20 = vld [vmem:[#allocation5 + $0xc0] sm:$0xff]  }
 0x4c2   :  { %9813 = vmatmul.mubr.bf16.gmra.mrb[24].mxu0 %v4152_v27  ;;  %v10590_v27 = vld [vmem:[#allocation5 + $0xb0] sm:$0xff]   ;;  %v12599_v8 = vor.u32 %v5384_v57, %v5383_v6  ;;  %v5392_v48 = vrot.slane %v12441_v52, 1  ;;  %v5393_v30 = vrot.slane %v12443_v7, 2  ;;  %v4537_v59 = vrot.slane %v12467_v16, 6 }
 0x4c3   :  { %9829 = vmatpush3.bf16.msra.mxu0 %v10588_v25  ;;  %9816 = vmatprep.mubr.bf16.mxu0 %v4153_v2  ;;  %v5386_v25 = vrot.slane %v12409_v12, 1  ;;  %v4138_v2 = vor.u32 %v4137_v62, %v4134_v40  ;;  %v12605_v12 = vor.u32 %v5390_v51, %v5389_v43  ;;  %v5395_v40 = vrot.slane %v12471_v55, 1 }
 0x4c4   :  { %9830 = vmatprep.subr.bf16.mxu0 %v10589_v5  ;;  %v4540_v50 = vrot.slane %v12486_v53, 7  ;;  %v5396_v62 = vrot.slane %v12478_v61, 2  ;;  %v4590_v36 = vsel %vm11432_vm8, 0, %v4525_v35  ;;  %v4533_v55 = vor.u32 %v4532_v23, %v4529_v26  ;;  %v10593_v26 = vld [vmem:[#allocation5 + $0xc8] sm:$0xff]  }
 0x4c5   :  { %v12601_v37 = vor.u32 %v5387_v54, %v5386_v25  ;;  %v4154_v52 = vsel %vm11269_vm6, 0, %v4138_v2  ;;  %v5802_v3 = vrot.slane %v12433_v9, 2  ;;  %v5803_v61 = vrot.slane %v12435_v41, 3 }
 0x4c6   :  { %v12618_v7 = vor.u32 %v5396_v62, %v5395_v40  ;;  %v4541_v6 = vor.u32 %v4540_v50, %v4537_v59  ;;  %v5806_v57 = vrot.slane %v12459_v21, 3  ;;  %v5808_v25 = vrot.slane %v12467_v16, 2 }
 0x4c7   :  { %9831 = vmatpush3.bf16.msra.mxu0 %v10589_v5  ;;  %v12614_v5 = vor.u32 %v5393_v30, %v5392_v48  ;;  %v5809_v35 = vrot.slane %v12486_v53, 3  ;;  %v5811_v54 = vrot.slane %v12532_v24, 2  ;;  %v12628_v2 = vor.u32 %v5803_v61, %v5802_v3 }
 0x4c8   :  { %9832 = vmatprep.subr.bf16.mxu0 %v10590_v27  ;;  %v12630_v9 = vor.u32 %v5806_v57, %v5805_v31  ;;  %v5814_v43 = vrot.slane %v12534_v14, 2  ;;  %v5815_v41 = vrot.slane %v12506_v19, 3  ;;  %v5817_v16 = vrot.slane %v12538_v42, 2  ;;  %v10595_v31 = vld [vmem:[#allocation5 + $0xd8] sm:$0xff]  }
 0x4c9   :  { %v12634_v45 = vor.u32 %v5809_v35, %v5808_v25  ;;  %v5818_v53 = vrot.slane %v12513_v44, 3  ;;  %v4591_v51 = vsel %vm11432_vm8, 0, %v4533_v55  ;;  %v4545_v48 = vrot.slane %v12532_v24, 6 }
 0x4ca   :  { %9817 = vmatmul.mubr.bf16.gmra.mrb[28].mxu0 %v4154_v52  ;;  %v12643_v23 = vor.u32 %v5815_v41, %v5814_v43  ;;  %v5820_v30 = vrot.slane %v12540_v13, 2  ;;  %v4548_v40 = vrot.slane %v12499_v29, 7  ;;  %v5821_v50 = vrot.slane %v12515_v33, 3  ;;  %v10597_v41 = vld [vmem:[#allocation5 + $0xe8] sm:$0xff]  }
 0x4cb   :  { %9833 = vmatpush3.bf16.msra.mxu0 %v10590_v27  ;;  %9836 = vmatprep.mubr.bf16.mxu0 %v4590_v36  ;;  %v5812_v27 = vrot.slane %v12499_v29, 3  ;;  %v12648_v59 = vor.u32 %v5818_v53, %v5817_v16  ;;  %v4592_v62 = vsel %vm11432_vm8, 0, %v4541_v6  ;;  %v4556_v52 = vrot.slane %v12506_v19, 7  ;;  %v10594_v29 = vld [vmem:[#allocation5 + $0xd0] sm:$0xff]  }
 0x4cc   :  { %9834 = vmatprep.subr.bf16.mxu0 %v10591_v47  ;;  %v5823_v24 = vrot.slane %v12554_v11, 2  ;;  %v5824_v36 = vrot.slane %v12523_v39, 3  ;;  %v12656_v55 = vor.u32 %v5821_v50, %v5820_v30  ;;  %v4549_v3 = vor.u32 %v4548_v40, %v4545_v48  ;;  %v10601_v48 = vld [vmem:[#allocation5 + $0x108] sm:$0xff]   ;;  %v10603_v40 = vld [vmem:[#allocation5 + $0x118] sm:$0xff]  }
 0x4cd   :  { %v12636_v21 = vor.u32 %v5812_v27, %v5811_v54  ;;  %v4561_v6 = vrot.slane %v12538_v42, 6  ;;  %v4564_v57 = vrot.slane %v12513_v44, 7  ;;  %v4569_v25 = vrot.slane %v12540_v13, 6  ;;  %v10596_v54 = vld [vmem:[#allocation5 + $0xe0] sm:$0xff]   ;;  %v10605_v50 = vld [vmem:[#allocation5 + $0x128] sm:$0xff]  }
 0x4ce   :  { %v4593_v19 = vsel %vm11432_vm8, 0, %v4549_v3  ;;  %v4572_v35 = vrot.slane %v12515_v33, 7  ;;  %v4577_v42 = vrot.slane %v12554_v11, 6  ;;  %v4580_v16 = vrot.slane %v12523_v39, 7  ;;  %v10598_v33 = vld [vmem:[#allocation5 + $0xf0] sm:$0xff]   ;;  %v10600_v11 = vld [vmem:[#allocation5 + $0x100] sm:$0xff]  }
 0x4cf   :  { %9835 = vmatpush3.bf16.msra.mxu0 %v10591_v47  ;;  %v4553_v47 = vrot.slane %v12534_v14, 6  ;;  %v12658_v14 = vor.u32 %v5824_v36, %v5823_v24  ;;  %v4565_v27 = vor.u32 %v4564_v57, %v4561_v6  ;;  %v4800_v39 = vsel %vm11596_vm11, 0, %v12476_v4  ;;  %v10602_v4 = vld [vmem:[#allocation5 + $0x110] sm:$0xff]   ;;  %v13418_v3 = vld [vmem:[#allocation22_spill] sm:$0xff]  ;;  %v13420_v6 = vld [vmem:[#allocation24_spill] sm:$0xff] }
 0x4d0   :  { %9852 = vmatprep.subr.bf16.mxu0 %v10592_v20  ;;  %v4573_v43 = vor.u32 %v4572_v35, %v4569_v25  ;;  %v4581_v53 = vor.u32 %v4580_v16, %v4577_v42  ;;  %v4801_v30 = vsel %vm11596_vm11, 0, %v12483_v17  ;;  %v4804_v17 = vsel %vm11596_vm11, 0, %v12509_v18  ;;  %v10606_v18 = vld [vmem:[#allocation5 + $0x130] sm:$0xff]   ;;  %v10640_v35 = vld [vmem:[%s13283_s7] sm:$0xff]  }
 0x4d1   :  { %v4557_v61 = vor.u32 %v4556_v52, %v4553_v47  ;;  %v4595_v44 = vsel %vm11432_vm8, 0, %v4565_v27  ;;  %v4803_v47 = vsel %vm11596_vm11, 0, %v12502_v58  ;;  %v4806_v58 = vsel %vm11596_vm11, 0, %v12521_v60  ;;  %v10607_v52 = vld [vmem:[#allocation5 + $0x138] sm:$0xff]   ;;  %v10609_v60 = vld [vmem:[#allocation5 + $0x148] sm:$0xff]   ;;  %v10610_v36 = vld [vmem:[#allocation5 + $0x150] sm:$0xff]   ;;  %10044 = vmatprep.subr.bf16.mxu1 %v10640_v35 }
 0x4d2   :  { %9837 = vmatmul.mubr.bf16.vlgmr.msra.gmra.mrb[16].mxu0 %v4591_v51  ;;  %v4596_v13 = vsel %vm11432_vm8, 0, %v4573_v43  ;;  %v10599_v51 = vld [vmem:[#allocation5 + $0xf8] sm:$0xff]   ;;  %v4807_v24 = vsel %vm11596_vm11, 0, %v12526_v46  ;;  %v10612_v46 = vld [vmem:[#allocation5 + $0x160] sm:$0xff]   ;;  %v13421_v57 = vld [vmem:[#allocation25_spill] sm:$0xff]  ;;  %10045 = vmatpush3.bf16.msra.mxu1 %v10640_v35  ;;  %vm6331_vm6 = vcmask 1042434  }
 0x4d3   :  { %9853 = vmatpush3.bf16.msra.mxu0 %v10592_v20  ;;  %9840 = vmatprep.mubr.bf16.mxu0 %v4592_v62  ;;  %v4594_v20 = vsel %vm11432_vm8, 0, %v4557_v61  ;;  %v4805_v62 = vsel %vm11596_vm11, 0, %v12518_v56  ;;  %v10608_v56 = vld [vmem:[#allocation5 + $0x140] sm:$0xff]   ;;  %v5188_v25 = vsel %vm11656_vm14, %v13421_v57, 0  ;;  %v10642_v43 = vld [vmem:[%s13283_s7 + $0x10] sm:$0xff]   ;;  %v10631_v57 = vld [vmem:[#allocation5 + $0x1f8] sm:$0xff]  }
 0x4d4   :  { %9854 = vmatprep.subr.bf16.mxu0 %v10593_v26  ;;  %v13419_v61 = vld [vmem:[#allocation23_spill] sm:$0xff]  ;;  %v13424_v16 = vld [vmem:[#allocation17_spill] sm:$0xff]  ;;  %v10633_v35 = vld [vmem:[#allocation5 + $0x208] sm:$0xff]   ;;  %vm6343_vm11 = vcmask 1046534  }
 0x4d5   :  { %v10616_v27 = vld [vmem:[#allocation5 + $0x180] sm:$0xff]  }
 0x4d7   :  { %9855 = vmatpush3.bf16.msra.mxu0 %v10593_v26  ;;  %v4597_v26 = vsel %vm11432_vm8, 0, %v4581_v53  ;;  %v10618_v53 = vld [vmem:[#allocation5 + $0x190] sm:$0xff]   ;;  %vm6334_vm8 = vcmask 1043459  }
 0x4d8   :  { %9856 = vmatprep.subr.bf16.mxu0 %v10594_v29 }
 0x4da   :  { %9841 = vmatmul.mubr.bf16.gmra.mrb[20].mxu0 %v4593_v19  ;;  %v10615_v19 = vld [vmem:[#allocation5 + $0x178] sm:$0xff]  }
 0x4db   :  { %9857 = vmatpush3.bf16.msra.mxu0 %v10594_v29  ;;  %9844 = vmatprep.mubr.bf16.mxu0 %v4594_v20  ;;  %v10613_v29 = vld [vmem:[#allocation5 + $0x168] sm:$0xff]   ;;  %v5413_v20 = vsel %vm11693_vm1, %v12618_v7, 0  ;;  %v5595_v7 = vrot.slane %v12335_v63, 2 }
 0x4dc   :  { %9858 = vmatprep.subr.bf16.mxu0 %v10595_v31 }
 0x4df   :  { %9859 = vmatpush3.bf16.msra.mxu0 %v10595_v31  ;;  %v10614_v31 = vld [vmem:[#allocation5 + $0x170] sm:$0xff]  }
 0x4e0   :  { %9860 = vmatprep.subr.bf16.mxu0 %v10596_v54 }
 0x4e2   :  { %9845 = vmatmul.mubr.bf16.gmra.mrb[24].mxu0 %v4595_v44  ;;  %v13423_v44 = vld [vmem:[#allocation26_spill] sm:$0xff] }
 0x4e3   :  { %9861 = vmatpush3.bf16.msra.mxu0 %v10596_v54  ;;  %9848 = vmatprep.mubr.bf16.mxu0 %v4596_v13  ;;  %v10641_v54 = vld [vmem:[%s13283_s7 + $0x8] sm:$0xff]   ;;  %v5189_v42 = vsel %vm11656_vm14, %v13423_v44, 0  ;;  %v5190_v13 = vsel %vm11656_vm14, %v13424_v16, 0  ;;  %v5598_v44 = vrot.slane %v13419_v61, 2 }
 0x4e4   :  { %9862 = vmatprep.subr.bf16.mxu0 %v10597_v41  ;;  %10046 = vmatprep.subr.bf16.mxu1 %v10641_v54 }
 0x4e5   :  { %10047 = vmatpush3.bf16.msra.mxu1 %v10641_v54  ;;  %v5594_v54 = vrot.slane %v12338_v34, 2 }
 0x4e6   :  { %10048 = vmatprep.subr.bf16.mxu1 %v10642_v43 }
 0x4e7   :  { %9863 = vmatpush3.bf16.msra.mxu0 %v10597_v41  ;;  %v10617_v41 = vld [vmem:[#allocation5 + $0x188] sm:$0xff]  }
 0x4e8   :  { %9864 = vmatprep.subr.bf16.mxu0 %v10598_v33 }
 0x4e9   :  { %10049 = vmatpush3.bf16.msra.mxu1 %v10642_v43  ;;  %v5596_v43 = vrot.slane %v12358_v15, 2 }
 0x4ea   :  { %9849 = vmatmul.mubr.bf16.gmra.mrb[28].mxu0 %v4597_v26  ;;  %v10619_v26 = vld [vmem:[#allocation5 + $0x198] sm:$0xff]  }
 0x4eb   :  { %9865 = vmatpush3.bf16.msra.mxu0 %v10598_v33  ;;  %9868 = vmatprep.mubr.bf16.mxu0 %v4800_v39  ;;  %v10643_v33 = vld [vmem:[%s13283_s7 + $0x18] sm:$0xff]   ;;  %v13425_v39 = vld [vmem:[#allocation27_spill] sm:$0xff] }
 0x4ec   :  { %9866 = vmatprep.subr.bf16.mxu0 %v10599_v51  ;;  %10050 = vmatprep.subr.bf16.mxu1 %v10643_v33 }
 0x4ed   :  { %10051 = vmatpush3.bf16.msra.mxu1 %v10643_v33  ;;  %v12828_v33 = vld [vmem:[%s13282_s6 + $0x5] ss:$0 sm:$0xff] }
 0x4ef   :  { %9867 = vmatpush3.bf16.msra.mxu0 %v10599_v51  ;;  %v10644_v51 = vld [vmem:[%s13283_s7 + $0x20] sm:$0xff]  }
 0x4f0   :  { %9884 = vmatprep.subr.bf16.mxu0 %v10600_v11  ;;  %10052 = vmatprep.subr.bf16.mxu1 %v10644_v51 }
 0x4f1   :  { %10053 = vmatpush3.bf16.msra.mxu1 %v10644_v51 }
 0x4f2   :  { %9869 = vmatmul.mubr.bf16.vlgmr.msra.gmra.mrb[16].mxu0 %v4801_v30 }
 0x4f3   :  { %9885 = vmatpush3.bf16.msra.mxu0 %v10600_v11  ;;  %9872 = vmatprep.mubr.bf16.mxu0 %v4802_v0  ;;  %v5191_v11 = vsel %vm11656_vm14, %v13425_v39, 0  ;;  %v10620_v0 = vld [vmem:[#allocation5 + $0x1a0] sm:$0xff]  }
 0x4f4   :  { %9886 = vmatprep.subr.bf16.mxu0 %v10601_v48 }
 0x4f7   :  { %9887 = vmatpush3.bf16.msra.mxu0 %v10601_v48  ;;  %v13426_v48 = vld [vmem:[#allocation28_spill] sm:$0xff] }
 0x4f8   :  { %9888 = vmatprep.subr.bf16.mxu0 %v10602_v4  ;;  %v5192_v30 = vsel %vm11656_vm14, %v13426_v48, 0 }
 0x4fa   :  { %9873 = vmatmul.mubr.bf16.gmra.mrb[20].mxu0 %v4803_v47 }
 0x4fb   :  { %9889 = vmatpush3.bf16.msra.mxu0 %v10602_v4  ;;  %9876 = vmatprep.mubr.bf16.mxu0 %v4804_v17  ;;  %v10621_v4 = vld [vmem:[#allocation5 + $0x1a8] sm:$0xff]   ;;  %v13428_v17 = vld [vmem:[#allocation30_spill] sm:$0xff] }
 0x4fc   :  { %9890 = vmatprep.subr.bf16.mxu0 %v10603_v40 }
 0x4ff   :  { %9891 = vmatpush3.bf16.msra.mxu0 %v10603_v40  ;;  %v13427_v40 = vld [vmem:[#allocation29_spill] sm:$0xff] }
 0x500   :  { %9892 = vmatprep.subr.bf16.mxu0 %v10604_v28  ;;  %v5193_v47 = vsel %vm11656_vm14, %v13427_v40, 0 }
 0x502   :  { %9877 = vmatmul.mubr.bf16.gmra.mrb[24].mxu0 %v4805_v62  ;;  %v10623_v62 = vld [vmem:[#allocation5 + $0x1b8] sm:$0xff]  }
 0x503   :  { %9893 = vmatpush3.bf16.msra.mxu0 %v10604_v28  ;;  %9880 = vmatprep.mubr.bf16.mxu0 %v4806_v58  ;;  %v5194_v28 = vsel %vm11656_vm14, %v13428_v17, 0  ;;  %v13429_v58 = vld [vmem:[#allocation31_spill] sm:$0xff] }
 0x504   :  { %9894 = vmatprep.subr.bf16.mxu0 %v10605_v50 }
 0x507   :  { %9895 = vmatpush3.bf16.msra.mxu0 %v10605_v50  ;;  %v10622_v50 = vld [vmem:[#allocation5 + $0x1b0] sm:$0xff]  }
 0x508   :  { %9896 = vmatprep.subr.bf16.mxu0 %v10606_v18 }
 0x50a   :  { %9881 = vmatmul.mubr.bf16.gmra.mrb[28].mxu0 %v4807_v24  ;;  %v5406_v24 = vsel %vm11693_vm1, %v12585_v10, 0  ;;  %v10626_v10 = vld [vmem:[#allocation5 + $0x1d0] sm:$0xff]  }
 0x50b   :  { %9897 = vmatpush3.bf16.msra.mxu0 %v10606_v18  ;;  %9900 = vmatprep.mubr.bf16.mxu0 %v12320_v1  ;;  %v5195_v18 = vsel %vm11656_vm14, %v13429_v58, 0  ;;  %vm8254_vm14 = vcmask 31744  }
 0x50c   :  { %9898 = vmatprep.subr.bf16.mxu0 %v10607_v52 }
 0x50f   :  { %9899 = vmatpush3.bf16.msra.mxu0 %v10607_v52 }
 0x510   :  { %9916 = vmatprep.subr.bf16.mxu0 %v10608_v56 }
 0x512   :  { %9901 = vmatmul.mubr.bf16.vlgmr.msra.gmra.mrb[16].mxu0 %v12317_v38 }
 0x513   :  { %9917 = vmatpush3.bf16.msra.mxu0 %v10608_v56  ;;  %9904 = vmatprep.mubr.bf16.mxu0 %v12338_v34  ;;  %v10624_v56 = vld [vmem:[#allocation5 + $0x1c0] sm:$0xff]   ;;  %v5597_v34 = vrot.slane %v13418_v3, 2 }
 0x514   :  { %9918 = vmatprep.subr.bf16.mxu0 %v10609_v60 }
 0x517   :  { %9919 = vmatpush3.bf16.msra.mxu0 %v10609_v60  ;;  %v10625_v60 = vld [vmem:[#allocation5 + $0x1c8] sm:$0xff]  }
 0x518   :  { %9920 = vmatprep.subr.bf16.mxu0 %v10610_v36 }
 0x51a   :  { %9905 = vmatmul.mubr.bf16.gmra.mrb[20].mxu0 %v12335_v63  ;;  %v10638_v63 = vld [vmem:[#allocation5 + $0x230] sm:$0xff]  }
 0x51b   :  { %9921 = vmatpush3.bf16.msra.mxu0 %v10610_v36  ;;  %9908 = vmatprep.mubr.bf16.mxu0 %v12358_v15  ;;  %v5407_v36 = vsel %vm11693_vm1, %v12589_v49, 0  ;;  %v5410_v49 = vsel %vm11693_vm1, %v12601_v37, 0  ;;  %v10630_v37 = vld [vmem:[#allocation5 + $0x1f0] sm:$0xff]   ;;  %v5599_v15 = vrot.slane %v13420_v6, 2 }
 0x51c   :  { %9922 = vmatprep.subr.bf16.mxu0 %v10611_v22 }
 0x51f   :  { %9923 = vmatpush3.bf16.msra.mxu0 %v10611_v22  ;;  %v5408_v22 = vsel %vm11693_vm1, %v12594_v32, 0  ;;  %v10628_v32 = vld [vmem:[#allocation5 + $0x1e0] sm:$0xff]  }
 0x520   :  { %9924 = vmatprep.subr.bf16.mxu0 %v10612_v46 }
 0x522   :  { %9909 = vmatmul.mubr.bf16.gmra.mrb[24].mxu0 %v13418_v3  ;;  %v5834_v3 = vsel %vm11759_vm7, %v12628_v2, 0  ;;  %v5838_v2 = vsel %vm11759_vm7, %v12643_v23, 0  ;;  %v10645_v23 = vld [vmem:[%s13283_s7 + $0x28] sm:$0xff]  }
 0x523   :  { %9925 = vmatpush3.bf16.msra.mxu0 %v10612_v46  ;;  %9912 = vmatprep.mubr.bf16.mxu0 %v13419_v61  ;;  %v10627_v46 = vld [vmem:[#allocation5 + $0x1d8] sm:$0xff]   ;;  %v5835_v61 = vsel %vm11759_vm7, %v12630_v9, 0  ;;  %v5839_v9 = vsel %vm11759_vm7, %v12648_v59, 0  ;;  %v10646_v59 = vld [vmem:[%s13283_s7 + $0x30] sm:$0xff]  }
 0x524   :  { %9926 = vmatprep.subr.bf16.mxu0 %v10613_v29  ;;  %10054 = vmatprep.subr.bf16.mxu1 %v10645_v23 }
 0x525   :  { %10055 = vmatpush3.bf16.msra.mxu1 %v10645_v23 }
 0x526   :  { %10056 = vmatprep.subr.bf16.mxu1 %v10646_v59 }
 0x527   :  { %9927 = vmatpush3.bf16.msra.mxu0 %v10613_v29  ;;  %v5409_v29 = vsel %vm11693_vm1, %v12599_v8, 0  ;;  %v5412_v8 = vsel %vm11693_vm1, %v12614_v5, 0  ;;  %v5593_v5 = vrot.slane %v12317_v38, 2  ;;  %v10636_v38 = vld [vmem:[#allocation5 + $0x220] sm:$0xff]  }
 0x528   :  { %9928 = vmatprep.subr.bf16.mxu0 %v10614_v31 }
 0x529   :  { %10057 = vmatpush3.bf16.msra.mxu1 %v10646_v59 }
 0x52a   :  { %9913 = vmatmul.mubr.bf16.gmra.mrb[28].mxu0 %v13420_v6  ;;  %v5836_v6 = vsel %vm11759_vm7, %v12634_v45, 0  ;;  %v5840_v45 = vsel %vm11759_vm7, %v12656_v55, 0  ;;  %v10647_v55 = vld [vmem:[%s13283_s7 + $0x38] sm:$0xff]  }
 0x52b   :  { %9929 = vmatpush3.bf16.msra.mxu0 %v10614_v31  ;;  %9932 = vmatprep.mubr.bf16.mxu0 %v5188_v25  ;;  %v10629_v31 = vld [vmem:[#allocation5 + $0x1e8] sm:$0xff]   ;;  %v5592_v25 = vrot.slane %v12320_v1, 2  ;;  %v10634_v1 = vld [vmem:[#allocation5 + $0x210] sm:$0xff]  }
 0x52c   :  { %9930 = vmatprep.subr.bf16.mxu0 %v10615_v19  ;;  %10058 = vmatprep.subr.bf16.mxu1 %v10647_v55 }
 0x52d   :  { %10059 = vmatpush3.bf16.msra.mxu1 %v10647_v55 }
 0x52f   :  { %9931 = vmatpush3.bf16.msra.mxu0 %v10615_v19  ;;  %v5411_v19 = vsel %vm11693_vm1, %v12605_v12, 0  ;;  %v10632_v12 = vld [vmem:[#allocation5 + $0x200] sm:$0xff]  }
 0x530   :  { %9948 = vmatprep.subr.bf16.mxu0 %v10616_v27 }
 0x532   :  { %9933 = vmatmul.mubr.bf16.vlgmr.msra.gmra.mrb[16].mxu0 %v5189_v42  ;;  %v10639_v42 = vld [vmem:[#allocation5 + $0x238] sm:$0xff]  }
 0x533   :  { %9949 = vmatpush3.bf16.msra.mxu0 %v10616_v27  ;;  %9936 = vmatprep.mubr.bf16.mxu0 %v5190_v13  ;;  %v10635_v27 = vld [vmem:[#allocation5 + $0x218] sm:$0xff]   ;;  %v5837_v13 = vsel %vm11759_vm7, %v12636_v21, 0  ;;  %v5841_v21 = vsel %vm11759_vm7, %v12658_v14, 0  ;;  %v12823_v14 = vld [vmem:[%s13282_s6 + $0x4] ss:$0 sm:$0xff] }
 0x534   :  { %9950 = vmatprep.subr.bf16.mxu0 %v10617_v41 }
 0x537   :  { %9951 = vmatpush3.bf16.msra.mxu0 %v10617_v41  ;;  %v10637_v41 = vld [vmem:[#allocation5 + $0x228] sm:$0xff]  }
 0x538   :  { %9952 = vmatprep.subr.bf16.mxu0 %v10618_v53 }
 0x53a   :  { %9937 = vmatmul.mubr.bf16.gmra.mrb[20].mxu0 %v5191_v11 }
 0x53b   :  { %9953 = vmatpush3.bf16.msra.mxu0 %v10618_v53  ;;  %9940 = vmatprep.mubr.bf16.mxu0 %v5192_v30 }
 0x53c   :  { %9954 = vmatprep.subr.bf16.mxu0 %v10619_v26 }
 0x53f   :  { %9955 = vmatpush3.bf16.msra.mxu0 %v10619_v26 }
 0x540   :  { %9956 = vmatprep.subr.bf16.mxu0 %v10620_v0 }
 0x542   :  { %9941 = vmatmul.mubr.bf16.gmra.mrb[24].mxu0 %v5193_v47 }
 0x543   :  { %9957 = vmatpush3.bf16.msra.mxu0 %v10620_v0  ;;  %9944 = vmatprep.mubr.bf16.mxu0 %v5194_v28 }
 0x544   :  { %9958 = vmatprep.subr.bf16.mxu0 %v10621_v4 }
 0x547   :  { %9959 = vmatpush3.bf16.msra.mxu0 %v10621_v4 }
 0x548   :  { %9960 = vmatprep.subr.bf16.mxu0 %v10622_v50 }
 0x54a   :  { %9945 = vmatmul.mubr.bf16.gmra.mrb[28].mxu0 %v5195_v18 }
 0x54b   :  { %9961 = vmatpush3.bf16.msra.mxu0 %v10622_v50  ;;  %9964 = vmatprep.mubr.bf16.mxu0 %v5406_v24 }
 0x54c   :  { %9962 = vmatprep.subr.bf16.mxu0 %v10623_v62 }
 0x54f   :  { %9963 = vmatpush3.bf16.msra.mxu0 %v10623_v62 }
 0x550   :  { %9980 = vmatprep.subr.bf16.mxu0 %v10624_v56 }
 0x552   :  { %9965 = vmatmul.mubr.bf16.vlgmr.msra.gmra.mrb[16].mxu0 %v5407_v36 }
 0x553   :  { %9981 = vmatpush3.bf16.msra.mxu0 %v10624_v56  ;;  %9968 = vmatprep.mubr.bf16.mxu0 %v5408_v22 }
 0x554   :  { %9982 = vmatprep.subr.bf16.mxu0 %v10625_v60 }
 0x557   :  { %9983 = vmatpush3.bf16.msra.mxu0 %v10625_v60 }
 0x558   :  { %9984 = vmatprep.subr.bf16.mxu0 %v10626_v10 }
 0x55a   :  { %9969 = vmatmul.mubr.bf16.gmra.mrb[20].mxu0 %v5409_v29 }
 0x55b   :  { %9985 = vmatpush3.bf16.msra.mxu0 %v10626_v10  ;;  %9972 = vmatprep.mubr.bf16.mxu0 %v5410_v49 }
 0x55c   :  { %9986 = vmatprep.subr.bf16.mxu0 %v10627_v46 }
 0x55f   :  { %9987 = vmatpush3.bf16.msra.mxu0 %v10627_v46 }
 0x560   :  { %9988 = vmatprep.subr.bf16.mxu0 %v10628_v32 }
 0x562   :  { %9973 = vmatmul.mubr.bf16.gmra.mrb[24].mxu0 %v5411_v19 }
 0x563   :  { %9989 = vmatpush3.bf16.msra.mxu0 %v10628_v32  ;;  %9976 = vmatprep.mubr.bf16.mxu0 %v5412_v8 }
 0x564   :  { %9990 = vmatprep.subr.bf16.mxu0 %v10629_v31 }
 0x567   :  { %9991 = vmatpush3.bf16.msra.mxu0 %v10629_v31 }
 0x568   :  { %9992 = vmatprep.subr.bf16.mxu0 %v10630_v37 }
 0x56a   :  { %9977 = vmatmul.mubr.bf16.gmra.mrb[28].mxu0 %v5413_v20 }
 0x56b   :  { %9993 = vmatpush3.bf16.msra.mxu0 %v10630_v37  ;;  %9996 = vmatprep.mubr.msk.bf16.mxu0 %vm1622_vm2, %v5592_v25 }
 0x56c   :  { %9994 = vmatprep.subr.bf16.mxu0 %v10631_v57 }
 0x56f   :  { %9995 = vmatpush3.bf16.msra.mxu0 %v10631_v57 }
 0x570   :  { %10012 = vmatprep.subr.bf16.mxu0 %v10632_v12 }
 0x572   :  { %9997 = vmatmul.mubr.msk.bf16.vlgmr.msra.gmra.mrb[16].mxu0 %vm1622_vm2, %v5593_v5 }
 0x573   :  { %10013 = vmatpush3.bf16.msra.mxu0 %v10632_v12  ;;  %10000 = vmatprep.mubr.msk.bf16.mxu0 %vm1622_vm2, %v5594_v54 }
 0x574   :  { %10014 = vmatprep.subr.bf16.mxu0 %v10633_v35 }
 0x577   :  { %10015 = vmatpush3.bf16.msra.mxu0 %v10633_v35 }
 0x578   :  { %10016 = vmatprep.subr.bf16.mxu0 %v10634_v1 }
 0x57a   :  { %10001 = vmatmul.mubr.msk.bf16.gmra.mrb[20].mxu0 %vm1622_vm2, %v5595_v7 }
 0x57b   :  { %10017 = vmatpush3.bf16.msra.mxu0 %v10634_v1  ;;  %10004 = vmatprep.mubr.msk.bf16.mxu0 %vm1622_vm2, %v5596_v43 }
 0x57c   :  { %10018 = vmatprep.subr.bf16.mxu0 %v10635_v27 }
 0x57f   :  { %10019 = vmatpush3.bf16.msra.mxu0 %v10635_v27 }
 0x580   :  { %10020 = vmatprep.subr.bf16.mxu0 %v10636_v38 }
 0x582   :  { %10005 = vmatmul.mubr.msk.bf16.gmra.mrb[24].mxu0 %vm1622_vm2, %v5597_v34 }
 0x583   :  { %10021 = vmatpush3.bf16.msra.mxu0 %v10636_v38  ;;  %10008 = vmatprep.mubr.msk.bf16.mxu0 %vm1622_vm2, %v5598_v44 }
 0x584   :  { %10022 = vmatprep.subr.bf16.mxu0 %v10637_v41 }
 0x587   :  { %10023 = vmatpush3.bf16.msra.mxu0 %v10637_v41 }
 0x588   :  { %10024 = vmatprep.subr.bf16.mxu0 %v10638_v63 }
 0x58a   :  { %10009 = vmatmul.mubr.msk.bf16.gmra.mrb[28].mxu0 %vm1622_vm2, %v5599_v15 }
 0x58b   :  { %10025 = vmatpush3.bf16.msra.mxu0 %v10638_v63  ;;  %10028 = vmatprep.mubr.bf16.mxu0 %v5834_v3 }
 0x58c   :  { %10026 = vmatprep.subr.bf16.mxu0 %v10639_v42 }
 0x58f   :  { %10027 = vmatpush3.bf16.msra.mxu0 %v10639_v42 }
 0x592   :  { %10029 = vmatmul.mubr.bf16.vlgmr.msra.gmra.mrb[16].mxu0 %v5835_v61 }
 0x593   :  { %10032 = vmatprep.mubr.bf16.mxu0 %v5836_v6 }
 0x59a   :  { %10033 = vmatmul.mubr.bf16.gmra.mrb[20].mxu0 %v5837_v13 }
 0x59b   :  { %10036 = vmatprep.mubr.bf16.mxu0 %v5838_v2 }
 0x5a2   :  { %10037 = vmatmul.mubr.bf16.gmra.mrb[24].mxu0 %v5839_v9 }
 0x5a3   :  { %10040 = vmatprep.mubr.bf16.mxu0 %v5840_v45 }
 0x5aa   :  { %10041 = vmatmul.mubr.bf16.gmra.mrb[28].mxu0 %v5841_v21 }
 0x665   :  { %v10030_v53 = vpop.f32.mrb[16].mxu0 }
 0x666   :  { %v6026_v51 = vmul.f32 %v10030_v53, %v12823_v14  ;;  %v5941_v26 = vpop.f32.mrb[17].mxu0 }
 0x667   :  { %v6024_v39 = vmul.f32 %v12823_v14, %v5941_v26  ;;  %v10031_v11 = vpop.f32.mrb[18].mxu0 }
 0x668   :  { %v6046_v48 = vadd.f32 %v12828_v33, %v6026_v51  ;;  %v6027_v30 = vmul.f32 %v10031_v11, %v12823_v14  ;;  %v5944_v0 = vpop.f32.mrb[19].mxu0 }
 0x669   :  { %v6044_v4 = vadd.f32 %v12828_v33, %v6024_v39  ;;  %v6025_v40 = vmul.f32 %v12823_v14, %v5944_v0 }
 0x66a   :  { %v6047_v47 = vadd.f32 %v12828_v33, %v6027_v30  ;;  %v6062_v28 = vmax.f32 %v6046_v48, 0.0 }
 0x66b   :  { %v6045_v17 = vadd.f32 %v12828_v33, %v6025_v40  ;;  %v6060_v62 = vmax.f32 %v6044_v4, 0.0 }
 0x66c   :  { %v6063_v50 = vmax.f32 %v6047_v47, 0.0  ;;  %v10648_v47 = vld [vmem:[#allocation7] ss:$12 sps:$4 sm:$0xff]  }
 0x66d   :  { %v6061_v58 = vmax.f32 %v6045_v17, 0.0  ;;  %v10034_v18 = vpop.f32.mrb[20].mxu0  ;;  %v10650_v17 = vld [vmem:[#allocation7 + $0x4] ss:$12 sps:$4 sm:$0xff]  }
 0x66e   :  { %v6077_v52 = vpack.c.bf16 %v6063_v50, %v6062_v28  ;;  %v6030_v24 = vmul.f32 %v10034_v18, %v12823_v14  ;;  %v5957_v56 = vpop.f32.mrb[21].mxu0  ;;  %v10653_v28 = vld [vmem:[#allocation7 + $0x1c] ss:$12 sps:$4 sm:$0xff]   ;;  %7928 = vmatprep.subr.bf16.mxu1 %v10650_v17  ;;  %v10656_v50 = vld [vmem:[#allocation7 + $0x34] ss:$12 sps:$4 sm:$0xff]  }
 0x66f   :  { %v6028_v60 = vmul.f32 %v12823_v14, %v5957_v56  ;;  %v10035_v36 = vpop.f32.mrb[22].mxu0  ;;  %v6076_v22 = vpack.c.bf16 %v6061_v58, %v6060_v62  ;;  %v10675_v62 = vld [vmem:[#allocation7 + $0xc8] ss:$12 sps:$4 sm:$0xff]   ;;  %v10680_v18 = vld [vmem:[#allocation7 + $0xe0] ss:$12 sps:$4 sm:$0xff]  }
 0x670   :  { %v6050_v10 = vadd.f32 %v12828_v33, %v6030_v24  ;;  %v6031_v46 = vmul.f32 %v10035_v36, %v12823_v14  ;;  %v5960_v29 = vpop.f32.mrb[23].mxu0  ;;  %v10676_v58 = vld [vmem:[#allocation7 + $0x8] ss:$12 sps:$4 sm:$0xff]   ;;  %9218 = vmatprep.subr.bf16.mxu0 %v10675_v62  ;;  %v10681_v24 = vld [vmem:[#allocation7 + $0x20] ss:$12 sps:$4 sm:$0xff]  }
 0x671   :  { %v6048_v49 = vadd.f32 %v12828_v33, %v6028_v60  ;;  %v6029_v32 = vmul.f32 %v12823_v14, %v5960_v29  ;;  %10060 = vmatprep.mubr.bf16.mxu1 %v6076_v22  ;;  %9219 = vmatpush3.bf16.msra.mxu0 %v10676_v58  ;;  %v10685_v56 = vld [vmem:[#allocation7 + $0xf8] ss:$12 sps:$4 sm:$0xff]   ;;  %v10657_v60 = vld [vmem:[#allocation7 + $0x48] ss:$12 sps:$4 sm:$0xff]  }
 0x672   :  { %v6051_v31 = vadd.f32 %v12828_v33, %v6031_v46  ;;  %10061 = vmatmul.mubr.bf16.vlgmr.msra.gmra.mrb[16].mxu1 %v6077_v52  ;;  %v6066_v8 = vmax.f32 %v6050_v10, 0.0  ;;  %v10659_v52 = vld [vmem:[#allocation7 + $0x4c] ss:$12 sps:$4 sm:$0xff]   ;;  %9220 = vmatprep.subr.bf16.mxu0 %v10680_v18  ;;  %v10662_v36 = vld [vmem:[#allocation7 + $0x64] ss:$12 sps:$4 sm:$0xff]  }
 0x673   :  { %v6049_v19 = vadd.f32 %v12828_v33, %v6029_v32  ;;  %v6064_v57 = vmax.f32 %v6048_v49, 0.0  ;;  %7929 = vmatpush1.bf16.msra.mxu1 %v10648_v47  ;;  %v10686_v22 = vld [vmem:[#allocation7 + $0x38] ss:$12 sps:$4 sm:$0xff]   ;;  %v10690_v10 = vld [vmem:[#allocation7 + $0x110] ss:$12 sps:$4 sm:$0xff]  }
 0x674   :  { %v6067_v37 = vmax.f32 %v6051_v31, 0.0  ;;  %7930 = vmatprep.subr.bf16.mxu1 %v10653_v28  ;;  %v10660_v46 = vld [vmem:[#allocation7 + $0x60] ss:$12 sps:$4 sm:$0xff]   ;;  %v10665_v29 = vld [vmem:[#allocation7 + $0x7c] ss:$12 sps:$4 sm:$0xff]  }
 0x675   :  { %v6065_v20 = vmax.f32 %v6049_v19, 0.0  ;;  %v10038_v25 = vpop.f32.mrb[24].mxu0  ;;  %9221 = vmatpush3.bf16.msra.mxu0 %v10681_v24  ;;  %v10691_v49 = vld [vmem:[#allocation7 + $0x50] ss:$12 sps:$4 sm:$0xff]   ;;  %v10695_v32 = vld [vmem:[#allocation7 + $0x128] ss:$12 sps:$4 sm:$0xff]  }
 0x676   :  { %v6034_v12 = vmul.f32 %v10038_v25, %v12823_v14  ;;  %v5973_v5 = vpop.f32.mrb[25].mxu0  ;;  %v6079_v35 = vpack.c.bf16 %v6067_v37, %v6066_v8  ;;  %9222 = vmatprep.subr.bf16.mxu0 %v10685_v56  ;;  %v10663_v31 = vld [vmem:[#allocation7 + $0x78] ss:$12 sps:$4 sm:$0xff]   ;;  %v10668_v19 = vld [vmem:[#allocation7 + $0x94] ss:$12 sps:$4 sm:$0xff]  }
 0x677   :  { %v6032_v54 = vmul.f32 %v12823_v14, %v5973_v5  ;;  %v10039_v1 = vpop.f32.mrb[26].mxu0  ;;  %v6078_v7 = vpack.c.bf16 %v6065_v20, %v6064_v57  ;;  %v10696_v8 = vld [vmem:[#allocation7 + $0x68] ss:$12 sps:$4 sm:$0xff]   ;;  %v10700_v37 = vld [vmem:[#allocation7 + $0x140] ss:$12 sps:$4 sm:$0xff]  }
 0x678   :  { %v6054_v27 = vadd.f32 %v12828_v33, %v6034_v12  ;;  %v6035_v43 = vmul.f32 %v10039_v1, %v12823_v14  ;;  %v5976_v38 = vpop.f32.mrb[27].mxu0  ;;  %v10666_v57 = vld [vmem:[#allocation7 + $0x90] ss:$12 sps:$4 sm:$0xff]   ;;  %v10671_v20 = vld [vmem:[#allocation7 + $0xac] ss:$12 sps:$4 sm:$0xff]  }
 0x679   :  { %v6052_v34 = vadd.f32 %v12828_v33, %v6032_v54  ;;  %v6033_v41 = vmul.f32 %v12823_v14, %v5976_v38  ;;  %10064 = vmatprep.mubr.bf16.mxu1 %v6078_v7  ;;  %9223 = vmatpush3.bf16.msra.mxu0 %v10686_v22  ;;  %v10701_v25 = vld [vmem:[#allocation7 + $0x80] ss:$12 sps:$4 sm:$0xff]   ;;  %v10705_v12 = vld [vmem:[#allocation7 + $0x158] ss:$12 sps:$4 sm:$0xff]   ;;  %v10669_v5 = vld [vmem:[#allocation7 + $0xa8] ss:$12 sps:$4 sm:$0xff]  }
 0x67a   :  { %v6055_v44 = vadd.f32 %v12828_v33, %v6035_v43  ;;  %10065 = vmatmul.mubr.bf16.gmra.mrb[20].mxu1 %v6079_v35  ;;  %v6070_v15 = vmax.f32 %v6054_v27, 0.0  ;;  %9224 = vmatprep.subr.bf16.mxu0 %v10690_v10  ;;  %v10674_v35 = vld [vmem:[#allocation7 + $0xc4] ss:$12 sps:$4 sm:$0xff]   ;;  %v10672_v7 = vld [vmem:[#allocation7 + $0xc0] ss:$12 sps:$4 sm:$0xff]  }
 0x67b   :  { %v6053_v63 = vadd.f32 %v12828_v33, %v6033_v41  ;;  %v6068_v16 = vmax.f32 %v6052_v34, 0.0  ;;  %v10706_v54 = vld [vmem:[#allocation7 + $0x98] ss:$12 sps:$4 sm:$0xff]   ;;  %v10710_v1 = vld [vmem:[#allocation7 + $0x170] ss:$12 sps:$4 sm:$0xff]  }
 0x67c   :  { %v6071_v42 = vmax.f32 %v6055_v44, 0.0  ;;  %v10679_v27 = vld [vmem:[#allocation7 + $0xdc] ss:$12 sps:$4 sm:$0xff]   ;;  %v10677_v38 = vld [vmem:[#allocation7 + $0xd8] ss:$12 sps:$4 sm:$0xff]  }
 0x67d   :  { %v6069_v3 = vmax.f32 %v6053_v63, 0.0  ;;  %v10042_v61 = vpop.f32.mrb[28].mxu0  ;;  %9225 = vmatpush3.bf16.msra.mxu0 %v10691_v49  ;;  %v10711_v43 = vld [vmem:[#allocation7 + $0xb0] ss:$12 sps:$4 sm:$0xff]   ;;  %v10684_v34 = vld [vmem:[#allocation7 + $0xf4] ss:$12 sps:$4 sm:$0xff]  }
 0x67e   :  { %v6038_v6 = vmul.f32 %v10042_v61, %v12823_v14  ;;  %v5989_v13 = vpop.f32.mrb[29].mxu0  ;;  %v6081_v2 = vpack.c.bf16 %v6071_v42, %v6070_v15  ;;  %9226 = vmatprep.subr.bf16.mxu0 %v10695_v32  ;;  %v10682_v41 = vld [vmem:[#allocation7 + $0xf0] ss:$12 sps:$4 sm:$0xff]   ;;  %v10689_v44 = vld [vmem:[#allocation7 + $0x10c] ss:$12 sps:$4 sm:$0xff]  }
 0x67f   :  { %v6036_v9 = vmul.f32 %v12823_v14, %v5989_v13  ;;  %v10043_v45 = vpop.f32.mrb[30].mxu0  ;;  %v6080_v21 = vpack.c.bf16 %v6069_v3, %v6068_v16  ;;  %v10687_v63 = vld [vmem:[#allocation7 + $0x108] ss:$12 sps:$4 sm:$0xff]   ;;  %v10694_v15 = vld [vmem:[#allocation7 + $0x124] ss:$12 sps:$4 sm:$0xff]  }
 0x680   :  { %v6058_v23 = vadd.f32 %v12828_v33, %v6038_v6  ;;  %v6039_v59 = vmul.f32 %v10043_v45, %v12823_v14  ;;  %v5992_v55 = vpop.f32.mrb[31].mxu0  ;;  %v10692_v42 = vld [vmem:[#allocation7 + $0x120] ss:$12 sps:$4 sm:$0xff]   ;;  %v10699_v16 = vld [vmem:[#allocation7 + $0x13c] ss:$12 sps:$4 sm:$0xff]  }
 0x681   :  { %v6056_v53 = vadd.f32 %v12828_v33, %v6036_v9  ;;  %v6037_v51 = vmul.f32 %v12823_v14, %v5992_v55  ;;  %10068 = vmatprep.mubr.bf16.mxu1 %v6080_v21  ;;  %v10651_v14 = vld [vmem:[#allocation7 + $0x18] ss:$12 sps:$4 sm:$0xff]   ;;  %9227 = vmatpush3.bf16.msra.mxu0 %v10696_v8  ;;  %v10704_v61 = vld [vmem:[#allocation7 + $0x154] ss:$12 sps:$4 sm:$0xff]   ;;  %v10702_v6 = vld [vmem:[#allocation7 + $0x150] ss:$12 sps:$4 sm:$0xff]  }
 0x682   :  { %v6059_v26 = vadd.f32 %v12828_v33, %v6039_v59  ;;  %10069 = vmatmul.mubr.bf16.gmra.mrb[24].mxu1 %v6081_v2  ;;  %v6074_v11 = vmax.f32 %v6058_v23, 0.0  ;;  %9228 = vmatprep.subr.bf16.mxu0 %v10700_v37  ;;  %v10697_v3 = vld [vmem:[#allocation7 + $0x138] ss:$12 sps:$4 sm:$0xff]   ;;  %v10707_v2 = vld [vmem:[#allocation7 + $0x168] ss:$12 sps:$4 sm:$0xff]  }
 0x683   :  { %v6057_v39 = vadd.f32 %v12828_v33, %v6037_v51  ;;  %v6072_v30 = vmax.f32 %v6056_v53, 0.0  ;;  %7931 = vmatpush1.bf16.msra.mxu1 %v10651_v14  ;;  %v10654_v33 = vld [vmem:[#allocation7 + $0x30] ss:$12 sps:$4 sm:$0xff]   ;;  %v10709_v13 = vld [vmem:[#allocation7 + $0x16c] ss:$12 sps:$4 sm:$0xff]  }
 0x684   :  { %v6075_v48 = vmax.f32 %v6059_v26, 0.0  ;;  %7932 = vmatprep.subr.bf16.mxu1 %v10656_v50  ;;  %v12865_v9 = vld [vmem:[%s13284_s8] ss:$0 sm:$0xff]  ;;  %v12870_v21 = vld [vmem:[%s13284_s8 + $0x1] ss:$0 sm:$0xff] }
 0x685   :  { %v6073_v0 = vmax.f32 %v6057_v39, 0.0  ;;  %9229 = vmatpush3.bf16.msra.mxu0 %v10701_v25 }
 0x686   :  { %v6083_v4 = vpack.c.bf16 %v6075_v48, %v6074_v11  ;;  %9230 = vmatprep.subr.bf16.mxu0 %v10705_v12 }
 0x687   :  { %v6082_v40 = vpack.c.bf16 %v6073_v0, %v6072_v30  ;;  %7933 = vmatpush1.bf16.msra.mxu1 %v10654_v33 }
 0x688   :  { %7934 = vmatprep.subr.bf16.mxu1 %v10659_v52 }
 0x689   :  { %10072 = vmatprep.mubr.bf16.mxu1 %v6082_v40  ;;  %9231 = vmatpush3.bf16.msra.mxu0 %v10706_v54 }
 0x68a   :  { %10073 = vmatmul.mubr.bf16.gmra.mrb[28].mxu1 %v6083_v4  ;;  %9232 = vmatprep.subr.bf16.mxu0 %v10710_v1 }
 0x68b   :  { %7935 = vmatpush1.bf16.msra.mxu1 %v10657_v60 }
 0x68c   :  { %7936 = vmatprep.subr.bf16.mxu1 %v10662_v36 }
 0x68d   :  { %9233 = vmatpush3.bf16.msra.mxu0 %v10711_v43 }
 0x68f   :  { %7937 = vmatpush1.bf16.msra.mxu1 %v10660_v46 }
 0x690   :  { %7938 = vmatprep.subr.bf16.mxu1 %v10665_v29 }
 0x693   :  { %7939 = vmatpush1.bf16.msra.mxu1 %v10663_v31 }
 0x694   :  { %7940 = vmatprep.subr.bf16.mxu1 %v10668_v19 }
 0x697   :  { %7941 = vmatpush1.bf16.msra.mxu1 %v10666_v57 }
 0x698   :  { %7942 = vmatprep.subr.bf16.mxu1 %v10671_v20 }
 0x69b   :  { %7943 = vmatpush1.bf16.msra.mxu1 %v10669_v5 }
 0x69c   :  { %7944 = vmatprep.subr.bf16.mxu1 %v10674_v35 }
 0x69f   :  { %7945 = vmatpush1.bf16.msra.mxu1 %v10672_v7 }
 0x6a0   :  { %7946 = vmatprep.subr.bf16.mxu1 %v10679_v27 }
 0x6a3   :  { %7947 = vmatpush1.bf16.msra.mxu1 %v10677_v38 }
 0x6a4   :  { %7948 = vmatprep.subr.bf16.mxu1 %v10684_v34 }
 0x6a7   :  { %7949 = vmatpush1.bf16.msra.mxu1 %v10682_v41 }
 0x6a8   :  { %7950 = vmatprep.subr.bf16.mxu1 %v10689_v44 }
 0x6ab   :  { %7951 = vmatpush1.bf16.msra.mxu1 %v10687_v63 }
 0x6ac   :  { %7952 = vmatprep.subr.bf16.mxu1 %v10694_v15 }
 0x6af   :  { %7953 = vmatpush1.bf16.msra.mxu1 %v10692_v42 }
 0x6b0   :  { %7954 = vmatprep.subr.bf16.mxu1 %v10699_v16 }
 0x6b3   :  { %7955 = vmatpush1.bf16.msra.mxu1 %v10697_v3 }
 0x6b4   :  { %7956 = vmatprep.subr.bf16.mxu1 %v10704_v61 }
 0x6b7   :  { %7957 = vmatpush1.bf16.msra.mxu1 %v10702_v6 }
 0x6b8   :  { %7958 = vmatprep.subr.bf16.mxu1 %v10709_v13 }
 0x6bb   :  { %7959 = vmatpush1.bf16.msra.mxu1 %v10707_v2 }
 0x745   :  { %v10062_v45 = vpop.f32.mrb[16].mxu1 }
 0x746   :  { %v6252_v23 = vmul.f32 %v10062_v45, %v12865_v9  ;;  %v6182_v59 = vpop.f32.mrb[17].mxu1 }
 0x747   :  { %v6250_v55 = vmul.f32 %v12865_v9, %v6182_v59  ;;  %v10063_v53 = vpop.f32.mrb[18].mxu1 }
 0x748   :  { %v6273_v51 = vadd.f32 %v12870_v21, %v6252_v23  ;;  %v6253_v26 = vmul.f32 %v10063_v53, %v12865_v9  ;;  %v6185_v39 = vpop.f32.mrb[19].mxu1 }
 0x749   :  { %v6271_v11 = vadd.f32 %v12870_v21, %v6250_v55  ;;  %v6251_v48 = vmul.f32 %v12865_v9, %v6185_v39 }
 0x74a   :  { %v6274_v30 = vadd.f32 %v12870_v21, %v6253_v26  ;;  %v6289_v4 = vmax.f32 %v6273_v51, 0.0 }
 0x74b   :  { %v6272_v0 = vadd.f32 %v12870_v21, %v6251_v48  ;;  %v6287_v47 = vmax.f32 %v6271_v11, 0.0 }
 0x74c   :  { %v6290_v40 = vmax.f32 %v6274_v30, 0.0 }
 0x74d   :  { %v6288_v17 = vmax.f32 %v6272_v0, 0.0  ;;  %v10066_v28 = vpop.f32.mrb[20].mxu1 }
 0x74e   :  { %v6304_v14 = vpack.c.bf16 %v6290_v40, %v6289_v4  ;;  %v6256_v50 = vmul.f32 %v10066_v28, %v12865_v9  ;;  %v6198_v62 = vpop.f32.mrb[21].mxu1 }
 0x74f   :  { %v6303_v58 = vpack.c.bf16 %v6288_v17, %v6287_v47  ;;  %v6254_v33 = vmul.f32 %v12865_v9, %v6198_v62  ;;  %v10067_v18 = vpop.f32.mrb[22].mxu1 }
 0x750   :  { %v12882_v52 = vunpack.c.l.b16 %v6304_v14  ;;  %v12884_v24 = vunpack.c.h.b16 %v6304_v14  ;;  %v6277_v56 = vadd.f32 %v12870_v21, %v6256_v50  ;;  %v6257_v60 = vmul.f32 %v10067_v18, %v12865_v9  ;;  %v6201_v36 = vpop.f32.mrb[23].mxu1 }
 0x751   :  { %v12888_v22 = vunpack.c.l.b16 %v6303_v58  ;;  %v12890_v10 = vunpack.c.h.b16 %v6303_v58  ;;  %v6275_v46 = vadd.f32 %v12870_v21, %v6254_v33  ;;  %v6255_v29 = vmul.f32 %v12865_v9, %v6201_v36 }
 0x752   :  { %v6293_v49 = vmax.f32 %v6277_v56, 0.0  ;;  %v6278_v32 = vadd.f32 %v12870_v21, %v6257_v60  ;;  %v6382_v31 = vrot.slane %v12882_v52, 2  ;;  %v6446_v19 = vrot.slane %v12882_v52, 6 }
 0x753   :  { %v6291_v8 = vmax.f32 %v6275_v46, 0.0  ;;  %v6276_v37 = vadd.f32 %v12870_v21, %v6255_v29  ;;  %v6381_v57 = vrot.slane %v12888_v22, 3  ;;  %v6349_v20 = vrot.slane %v12888_v22, 1 }
 0x754   :  { %v6294_v25 = vmax.f32 %v6278_v32, 0.0  ;;  %v6445_v12 = vrot.slane %v12888_v22, 7  ;;  %v6413_v5 = vrot.slane %v12888_v22, 5  ;;  %v6414_v35 = vrot.slane %v12882_v52, 4 }
 0x755   :  { %v6292_v54 = vmax.f32 %v6276_v37, 0.0  ;;  %v10070_v1 = vpop.f32.mrb[24].mxu1  ;;  %v6383_v7 = vsel %vm6328_vm4, %v6382_v31, %v6381_v57  ;;  %v6350_v27 = vsel %vm6328_vm4, %v12882_v52, %v6349_v20  ;;  %v6517_v43 = vrot.slane %v12890_v10, 3 }
 0x756   :  { %v6306_v38 = vpack.c.bf16 %v6294_v25, %v6293_v49  ;;  %v6260_v34 = vmul.f32 %v10070_v1, %v12865_v9  ;;  %v6214_v41 = vpop.f32.mrb[25].mxu1  ;;  %v6447_v44 = vsel %vm6328_vm4, %v6446_v19, %v6445_v12  ;;  %v6415_v63 = vsel %vm6328_vm4, %v6414_v35, %v6413_v5 }
 0x757   :  { %v6305_v15 = vpack.c.bf16 %v6292_v54, %v6291_v8  ;;  %v6258_v42 = vmul.f32 %v12865_v9, %v6214_v41  ;;  %v10071_v16 = vpop.f32.mrb[26].mxu1  ;;  %v6518_v3 = vrot.slane %v12884_v24, 2  ;;  %v6485_v61 = vrot.slane %v12890_v10, 1 }
 0x758   :  { %v12913_v6 = vunpack.c.l.b16 %v6306_v38  ;;  %v12915_v13 = vunpack.c.h.b16 %v6306_v38  ;;  %v6281_v2 = vadd.f32 %v12870_v21, %v6260_v34  ;;  %v6261_v45 = vmul.f32 %v10071_v16, %v12865_v9  ;;  %v6217_v23 = vpop.f32.mrb[27].mxu1 }
 0x759   :  { %v12919_v59 = vunpack.c.l.b16 %v6305_v15  ;;  %v12921_v55 = vunpack.c.h.b16 %v6305_v15  ;;  %v6279_v53 = vadd.f32 %v12870_v21, %v6258_v42  ;;  %v6259_v51 = vmul.f32 %v12865_v9, %v6217_v23  ;;  %v10714_v23 = vld [vmem:[#allocation7 + $0x184] ss:$12 sps:$4 sm:$0xff]  }
 0x75a   :  { %v6297_v26 = vmax.f32 %v6281_v2, 0.0  ;;  %v6282_v39 = vadd.f32 %v12870_v21, %v6261_v45  ;;  %v6353_v11 = vrot.slane %v12913_v6, 6  ;;  %v6450_v48 = vrot.slane %v12913_v6, 4  ;;  %7969 = vmatprep.subr.bf16.mxu1 %v10714_v23 }
 0x75b   :  { %v6295_v30 = vmax.f32 %v6279_v53, 0.0  ;;  %v6280_v0 = vadd.f32 %v12870_v21, %v6259_v51  ;;  %v6384_v4 = vrot.slane %v12919_v59, 1  ;;  %v6351_v40 = vrot.slane %v12919_v59, 7 }
 0x75c   :  { %v6298_v47 = vmax.f32 %v6282_v39, 0.0  ;;  %v6448_v17 = vrot.slane %v12919_v59, 5  ;;  %v6416_v28 = vrot.slane %v12919_v59, 3  ;;  %v6418_v14 = vrot.slane %v12913_v6, 2 }
 0x75d   :  { %v6296_v50 = vmax.f32 %v6280_v0, 0.0  ;;  %v10074_v62 = vpop.f32.mrb[28].mxu1  ;;  %v6385_v58 = vsel %vm6331_vm6, %v6384_v4, %v6383_v7  ;;  %v6352_v33 = vsel %vm6331_vm6, %v6351_v40, %v6350_v27  ;;  %v6519_v18 = vsel %vm6328_vm4, %v6518_v3, %v6517_v43 }
 0x75e   :  { %v6308_v56 = vpack.c.bf16 %v6298_v47, %v6297_v26  ;;  %v6264_v60 = vmul.f32 %v10074_v62, %v12865_v9  ;;  %v6230_v36 = vpop.f32.mrb[29].mxu1  ;;  %v6386_v46 = vsel %vm6334_vm8, %v12913_v6, %v6385_v58  ;;  %v6354_v29 = vsel %vm6334_vm8, %v6353_v11, %v6352_v33  ;;  %v10715_v11 = vld [vmem:[#allocation7 + $0x3c8] ss:$12 sps:$4 sm:$0xff]  }
 0x75f   :  { %v6307_v49 = vpack.c.bf16 %v6296_v50, %v6295_v30  ;;  %v6262_v32 = vmul.f32 %v12865_v9, %v6230_v36  ;;  %v10075_v31 = vpop.f32.mrb[30].mxu1  ;;  %v6449_v19 = vsel %vm6331_vm6, %v6448_v17, %v6447_v44  ;;  %v6417_v8 = vsel %vm6331_vm6, %v6416_v28, %v6415_v63  ;;  %9262 = vmatprep.subr.bf16.mxu0 %v10715_v11 }
 0x760   :  { %v12944_v37 = vunpack.c.l.b16 %v6308_v56  ;;  %v12946_v57 = vunpack.c.h.b16 %v6308_v56  ;;  %v6285_v20 = vadd.f32 %v12870_v21, %v6264_v60  ;;  %v6265_v25 = vmul.f32 %v10075_v31, %v12865_v9  ;;  %v6233_v12 = vpop.f32.mrb[31].mxu1 }
 0x761   :  { %v12950_v5 = vunpack.c.l.b16 %v6307_v49  ;;  %v12952_v35 = vunpack.c.h.b16 %v6307_v49  ;;  %v6283_v54 = vadd.f32 %v12870_v21, %v6262_v32  ;;  %v6263_v1 = vmul.f32 %v12865_v9, %v6233_v12 }
 0x762   :  { %v6301_v7 = vmax.f32 %v6285_v20, 0.0  ;;  %v6286_v27 = vadd.f32 %v12870_v21, %v6265_v25  ;;  %v6389_v43 = vrot.slane %v12944_v37, 6  ;;  %v6357_v38 = vrot.slane %v12944_v37, 4 }
 0x763   :  { %v6299_v34 = vmax.f32 %v6283_v54, 0.0  ;;  %v6284_v41 = vadd.f32 %v12870_v21, %v6263_v1  ;;  %v6387_v44 = vrot.slane %v12950_v5, 7  ;;  %v6355_v63 = vrot.slane %v12950_v5, 5 }
 0x764   :  { %v6302_v15 = vmax.f32 %v6286_v27, 0.0  ;;  %v6451_v42 = vsel %vm6334_vm8, %v6450_v48, %v6449_v19  ;;  %v6452_v9 = vrot.slane %v12950_v5, 3  ;;  %v6454_v16 = vrot.slane %v12944_v37, 2 }
 0x765   :  { %v6300_v3 = vmax.f32 %v6284_v41, 0.0  ;;  %v6388_v2 = vsel %vm6337_vm9, %v6387_v44, %v6386_v46  ;;  %v6356_v45 = vsel %vm6337_vm9, %v6355_v63, %v6354_v29  ;;  %v6419_v21 = vsel %vm6334_vm8, %v6418_v14, %v6417_v8 }
 0x766   :  { %v6310_v53 = vpack.c.bf16 %v6302_v15, %v6301_v7  ;;  %v6390_v51 = vsel %vm6340_vm10, %v6389_v43, %v6388_v2  ;;  %v6358_v26 = vsel %vm6340_vm10, %v6357_v38, %v6356_v45  ;;  %v6453_v39 = vsel %vm6337_vm9, %v6452_v9, %v6451_v42 }
 0x767   :  { %v6309_v48 = vpack.c.bf16 %v6300_v3, %v6299_v34  ;;  %v6455_v30 = vsel %vm6340_vm10, %v6454_v16, %v6453_v39  ;;  %v6420_v0 = vrot.slane %v12950_v5, 1  ;;  %v6520_v4 = vrot.slane %v12921_v55, 1 }
 0x768   :  { %v12974_v40 = vunpack.c.l.b16 %v6310_v53  ;;  %v12976_v47 = vunpack.c.h.b16 %v6310_v53  ;;  %v6523_v17 = vrot.slane %v12952_v35, 7  ;;  %v6525_v28 = vrot.slane %v12946_v57, 6 }
 0x769   :  { %v12980_v14 = vunpack.c.l.b16 %v6309_v48  ;;  %v12982_v50 = vunpack.c.h.b16 %v6309_v48  ;;  %v6421_v62 = vsel %vm6337_vm9, %v6420_v0, %v6419_v21  ;;  %v6521_v58 = vsel %vm6331_vm6, %v6520_v4, %v6519_v18 }
 0x76a   :  { %v6393_v33 = vrot.slane %v12974_v40, 4  ;;  %v6361_v56 = vrot.slane %v12974_v40, 2  ;;  %v6422_v60 = vsel %vm6340_vm10, %v12944_v37, %v6421_v62  ;;  %v6425_v36 = vrot.slane %v12974_v40, 6 }
 0x76b   :  { %v6391_v46 = vrot.slane %v12980_v14, 5  ;;  %v6359_v29 = vrot.slane %v12980_v14, 3  ;;  %v6456_v49 = vrot.slane %v12980_v14, 1  ;;  %v6423_v32 = vrot.slane %v12980_v14, 7 }
 0x76c   :  { %v6522_v18 = vsel %vm6334_vm8, %v12915_v13, %v6521_v58  ;;  %v6527_v31 = vrot.slane %v12982_v50, 5  ;;  %v6529_v19 = vrot.slane %v12976_v47, 4  ;;  %v6486_v8 = vsel %vm6328_vm4, %v12884_v24, %v6485_v61 }
 0x76d   :  { %v6392_v20 = vsel %vm6343_vm11, %v6391_v46, %v6390_v51  ;;  %v6360_v25 = vsel %vm6343_vm11, %v6359_v29, %v6358_v26  ;;  %v6457_v12 = vsel %vm6343_vm11, %v6456_v49, %v6455_v30  ;;  %v6424_v54 = vsel %vm6343_vm11, %v6423_v32, %v6422_v60 }
 0x76e   :  { %v6394_v1 = vsel %vm6346_vm12, %v6393_v33, %v6392_v20  ;;  %v6362_v7 = vsel %vm6346_vm12, %v6361_v56, %v6360_v25  ;;  %v6458_v27 = vsel %vm6346_vm12, %v12974_v40, %v6457_v12  ;;  %v6426_v43 = vsel %vm6346_vm12, %v6425_v36, %v6424_v54 }
 0x76f   :  { %v6395_v38 = vpack.c.b16 %v6394_v1, %v6394_v1  ;;  %v6363_v34 = vpack.c.b16 %v6362_v7, %v6362_v7  ;;  %v6459_v61 = vpack.c.b16 %v6458_v27, %v6458_v27  ;;  %v6427_v41 = vpack.c.b16 %v6426_v43, %v6426_v43 }
 0x770   :  { %v6524_v44 = vsel %vm6337_vm9, %v6523_v17, %v6522_v18  ;;  %v6487_v63 = vrot.slane %v12921_v55, 7  ;;  %v6489_v15 = vrot.slane %v12915_v13, 6  ;;  %v6491_v42 = vrot.slane %v12952_v35, 5 }
 0x771   :  { %6396 = vrot.lane.b32.xlu1 %v6395_v38, %s11006_s15  ;;  %6364 = vrot.lane.b32.xlu0 %v6363_v34, %s11006_s15  ;;  %v6526_v9 = vsel %vm6340_vm10, %v6525_v28, %v6524_v44  ;;  %v6493_v16 = vrot.slane %v12946_v57, 4  ;;  %v6495_v3 = vrot.slane %v12982_v50, 3  ;;  %v6497_v2 = vrot.slane %v12976_v47, 2 }
 0x772   :  { %v6528_v45 = vsel %vm6343_vm11, %v6527_v31, %v6526_v9  ;;  %v6488_v21 = vsel %vm6331_vm6, %v6487_v63, %v6486_v8  ;;  %v6581_v23 = vrot.slane %v12890_v10, 7  ;;  %v6582_v53 = vrot.slane %v12884_v24, 6 }
 0x773   :  { %v6530_v51 = vsel %vm6346_vm12, %v6529_v19, %v6528_v45  ;;  %v6490_v26 = vsel %vm6334_vm8, %v6489_v15, %v6488_v21  ;;  %v6584_v39 = vrot.slane %v12921_v55, 5  ;;  %v6586_v11 = vrot.slane %v12915_v13, 4 }
 0x774   :  { %v6531_v48 = vpack.c.b16 %v6530_v51, %v6530_v51  ;;  %v6492_v30 = vsel %vm6337_vm9, %v6491_v42, %v6490_v26  ;;  %v6583_v0 = vsel %vm6328_vm4, %v6582_v53, %v6581_v23  ;;  %v6588_v4 = vrot.slane %v12952_v35, 3 }
 0x775   :  { %6460 = vrot.lane.b32.xlu1 %v6459_v61, %s11006_s15  ;;  %6428 = vrot.lane.b32.xlu0 %v6427_v41, %s11006_s15  ;;  %v6494_v17 = vsel %vm6340_vm10, %v6493_v16, %v6492_v30  ;;  %v6585_v28 = vsel %vm6331_vm6, %v6584_v39, %v6583_v0  ;;  %v6590_v62 = vrot.slane %v12946_v57, 2  ;;  %v6592_v58 = vrot.slane %v12982_v50, 1 }
 0x776   :  { %v6496_v33 = vsel %vm6343_vm11, %v6495_v3, %v6494_v17  ;;  %v6587_v56 = vsel %vm6334_vm8, %v6586_v11, %v6585_v28  ;;  %v6549_v60 = vrot.slane %v12890_v10, 5  ;;  %v6550_v36 = vrot.slane %v12884_v24, 4 }
 0x777   :  { %v6498_v46 = vsel %vm6346_vm12, %v6497_v2, %v6496_v33  ;;  %v6589_v29 = vsel %vm6337_vm9, %v6588_v4, %v6587_v56  ;;  %v6552_v49 = vrot.slane %v12921_v55, 3  ;;  %v6554_v32 = vrot.slane %v12915_v13, 2 }
 0x778   :  { %v6499_v18 = vpack.c.b16 %v6498_v46, %v6498_v46  ;;  %v6591_v31 = vsel %vm6340_vm10, %v6590_v62, %v6589_v29  ;;  %v6551_v19 = vsel %vm6328_vm4, %v6550_v36, %v6549_v60  ;;  %v6556_v8 = vrot.slane %v12952_v35, 1 }
 0x779   :  { %6532 = vrot.lane.b32.xlu1 %v6531_v48, %s11006_s15  ;;  %v6593_v20 = vsel %vm6343_vm11, %v6592_v58, %v6591_v31  ;;  %v6553_v25 = vsel %vm6331_vm6, %v6552_v49, %v6551_v19  ;;  %v6559_v12 = vrot.slane %v12982_v50, 7  ;;  %v6327_v7 = vrot.slane %v12882_v52, 7 }
 0x77a   :  { %6500 = vrot.lane.b32.xlu0 %v6499_v18, %s11006_s15  ;;  %v6594_v54 = vsel %vm6346_vm12, %v12976_v47, %v6593_v20  ;;  %v6555_v1 = vsel %vm6334_vm8, %v6554_v32, %v6553_v25  ;;  %v6330_v27 = vrot.slane %v12919_v59, 6  ;;  %v6336_v34 = vrot.slane %v12950_v5, 4 }
 0x77b   :  { %v6595_v43 = vpack.c.b16 %v6594_v54, %v6594_v54  ;;  %v6557_v38 = vsel %vm6337_vm9, %v6556_v8, %v6555_v1  ;;  %v6561_v41 = vrot.slane %v12976_v47, 6  ;;  %v6329_v44 = vsel %vm6328_vm4, %v6327_v7, %v12888_v22 }
 0x77c   :  { %v6558_v61 = vsel %vm6340_vm10, %v12946_v57, %v6557_v38  ;;  %v6333_v63 = vrot.slane %v12913_v6, 5  ;;  %v6332_v42 = vsel %vm6331_vm6, %v6330_v27, %v6329_v44  ;;  %v6339_v9 = vrot.slane %v12944_v37, 3 }
 0x77d   :  { %6596 = vrot.lane.b32.xlu1 %v6595_v43, %s11006_s15  ;;  %v6560_v15 = vsel %vm6343_vm11, %v6559_v12, %v6558_v61  ;;  %v6342_v16 = vrot.slane %v12980_v14, 2  ;;  %v6366_v45 = vrot.slane %v12888_v22, 2  ;;  %v6367_v21 = vrot.slane %v12882_v52, 1 }
 0x77e   :  { %v6562_v3 = vsel %vm6346_vm12, %v6561_v41, %v6560_v15  ;;  %v6335_v2 = vsel %vm6334_vm8, %v6333_v63, %v6332_v42  ;;  %v6370_v51 = vrot.slane %v12913_v6, 7  ;;  %v6372_v26 = vrot.slane %v12950_v5, 6 }
 0x77f   :  { %v6563_v23 = vpack.c.b16 %v6562_v3, %v6562_v3  ;;  %v6338_v53 = vsel %vm6337_vm9, %v6336_v34, %v6335_v2  ;;  %v6345_v11 = vrot.slane %v12974_v40, 1  ;;  %v6368_v48 = vsel %vm6328_vm4, %v6367_v21, %v6366_v45 }
 0x780   :  { %v6341_v39 = vsel %vm6340_vm10, %v6339_v9, %v6338_v53  ;;  %v6374_v30 = vrot.slane %v12944_v37, 5  ;;  %v6369_v4 = vsel %vm6331_vm6, %v12919_v59, %v6368_v48  ;;  %v6376_v17 = vrot.slane %v12980_v14, 4 }
 0x781   :  { %6564 = vrot.lane.b32.xlu0 %v6563_v23, %s11006_s15  ;;  %v6344_v0 = vsel %vm6343_vm11, %v6342_v16, %v6341_v39  ;;  %v6398_v28 = vrot.slane %v12888_v22, 4  ;;  %v6371_v58 = vsel %vm6334_vm8, %v6370_v51, %v6369_v4  ;;  %v6399_v33 = vrot.slane %v12882_v52, 3 }
 0x782   :  { %v13091_v62 = vsel %vm6346_vm12, %v6345_v11, %v6344_v0  ;;  %v6401_v56 = vrot.slane %v12919_v59, 2  ;;  %v6373_v60 = vsel %vm6337_vm9, %v6372_v26, %v6371_v58  ;;  %v6378_v36 = vrot.slane %v12974_v40, 3 }
 0x783   :  { %v6403_v46 = vrot.slane %v12913_v6, 1  ;;  %v6375_v29 = vsel %vm6340_vm10, %v6374_v30, %v6373_v60  ;;  %v6400_v49 = vsel %vm6328_vm4, %v6399_v33, %v6398_v28  ;;  %v6406_v32 = vrot.slane %v12944_v37, 7 }
 0x784   :  { %v6408_v18 = vrot.slane %v12980_v14, 6  ;;  %v6377_v31 = vsel %vm6343_vm11, %v6376_v17, %v6375_v29  ;;  %v6402_v19 = vsel %vm6331_vm6, %v6401_v56, %v6400_v49  ;;  %v6430_v8 = vrot.slane %v12888_v22, 6 }
 0x785   :  { %v6431_v20 = vrot.slane %v12882_v52, 5  ;;  %v13108_v25 = vsel %vm6346_vm12, %v6378_v36, %v6377_v31  ;;  %v6404_v12 = vsel %vm6334_vm8, %v6403_v46, %v6402_v19  ;;  %v6410_v54 = vrot.slane %v12974_v40, 5 }
 0x786   :  { %v6433_v1 = vrot.slane %v12919_v59, 4  ;;  %v6405_v7 = vsel %vm6337_vm9, %v12950_v5, %v6404_v12  ;;  %v6435_v43 = vrot.slane %v12913_v6, 3  ;;  %v6437_v22 = vrot.slane %v12950_v5, 2 }
 0x787   :  { %v6432_v27 = vsel %vm6328_vm4, %v6431_v20, %v6430_v8  ;;  %v6407_v52 = vsel %vm6340_vm10, %v6406_v32, %v6405_v7  ;;  %v6439_v34 = vrot.slane %v12944_v37, 1  ;;  %v6442_v61 = vrot.slane %v12974_v40, 7 }
 0x788   :  { %v6434_v38 = vsel %vm6331_vm6, %v6433_v1, %v6432_v27  ;;  %v6409_v41 = vsel %vm6343_vm11, %v6408_v18, %v6407_v52  ;;  %v6470_v44 = vrot.slane %v12884_v24, 7  ;;  %v6472_v63 = vrot.slane %v12921_v55, 6 }
 0x789   :  { %v6436_v59 = vsel %vm6334_vm8, %v6435_v43, %v6434_v38  ;;  %v13127_v6 = vsel %vm6346_vm12, %v6410_v54, %v6409_v41  ;;  %v6476_v15 = vrot.slane %v12952_v35, 4  ;;  %v6474_v40 = vrot.slane %v12915_v13, 5 }
 0x78a   :  { %v6438_v5 = vsel %vm6337_vm9, %v6437_v22, %v6436_v59  ;;  %v6471_v37 = vsel %vm6328_vm4, %v6470_v44, %v12890_v10  ;;  %v6478_v3 = vrot.slane %v12946_v57, 3  ;;  %v6480_v2 = vrot.slane %v12982_v50, 2 }
 0x78b   :  { %v6440_v42 = vsel %vm6340_vm10, %v6439_v34, %v6438_v5  ;;  %v6473_v16 = vsel %vm6331_vm6, %v6472_v63, %v6471_v37  ;;  %v6502_v23 = vrot.slane %v12890_v10, 2  ;;  %v6503_v53 = vrot.slane %v12884_v24, 1  ;;  %v10716_v37 = vld [vmem:[#allocation7 + $0x308] ss:$12 sps:$4 sm:$0xff]  }
 0x78c   :  { %v6441_v9 = vsel %vm6343_vm11, %v12980_v14, %v6440_v42  ;;  %v6475_v21 = vsel %vm6334_vm8, %v6474_v40, %v6473_v16  ;;  %v6506_v26 = vrot.slane %v12915_v13, 7  ;;  %v6508_v14 = vrot.slane %v12952_v35, 6  ;;  %v10712_v42 = vld [vmem:[#allocation7 + $0x180] ss:$12 sps:$4 sm:$0xff]   ;;  %v10719_v16 = vld [vmem:[#allocation7 + $0x19c] ss:$12 sps:$4 sm:$0xff]  }
 0x78d   :  { %v13141_v45 = vsel %vm6346_vm12, %v6442_v61, %v6441_v9  ;;  %v6477_v51 = vsel %vm6337_vm9, %v6476_v15, %v6475_v21  ;;  %v6482_v11 = vrot.slane %v12976_v47, 1  ;;  %v6504_v48 = vsel %vm6328_vm4, %v6503_v53, %v6502_v23  ;;  %v10717_v21 = vld [vmem:[#allocation7 + $0x198] ss:$12 sps:$4 sm:$0xff]   ;;  %v10721_v23 = vld [vmem:[#allocation7 + $0x320] ss:$12 sps:$4 sm:$0xff]  }
 0x78e   :  { %v6479_v39 = vsel %vm6340_vm10, %v6478_v3, %v6477_v51  ;;  %v6510_v30 = vrot.slane %v12946_v57, 5  ;;  %v6505_v4 = vsel %vm6331_vm6, %v12921_v55, %v6504_v48  ;;  %v6512_v17 = vrot.slane %v12982_v50, 4  ;;  %v10720_v3 = vld [vmem:[#allocation7 + $0x3e0] ss:$12 sps:$4 sm:$0xff]  }
 0x78f   :  { %v6481_v0 = vsel %vm6343_vm11, %v6480_v2, %v6479_v39  ;;  %v6534_v28 = vrot.slane %v12890_v10, 4  ;;  %v6507_v33 = vsel %vm6334_vm8, %v6506_v26, %v6505_v4  ;;  %v6535_v56 = vrot.slane %v12884_v24, 3  ;;  %v10724_v26 = vld [vmem:[#allocation7 + $0x1b4] ss:$12 sps:$4 sm:$0xff]   ;;  %v10722_v39 = vld [vmem:[#allocation7 + $0x1b0] ss:$12 sps:$4 sm:$0xff]  }
 0x790   :  { %v13159_v58 = vsel %vm6346_vm12, %v6482_v11, %v6481_v0  ;;  %v6537_v60 = vrot.slane %v12921_v55, 2  ;;  %v6509_v36 = vsel %vm6337_vm9, %v6508_v14, %v6507_v33  ;;  %v6514_v46 = vrot.slane %v12976_v47, 3  ;;  %v10725_v14 = vld [vmem:[#allocation7 + $0x3f8] ss:$12 sps:$4 sm:$0xff]   ;;  %v10730_v0 = vld [vmem:[#allocation7 + $0x410] ss:$12 sps:$4 sm:$0xff]  }
 0x791   :  { %v6539_v29 = vrot.slane %v12915_v13, 1  ;;  %v6511_v49 = vsel %vm6340_vm10, %v6510_v30, %v6509_v36  ;;  %v6536_v32 = vsel %vm6328_vm4, %v6535_v56, %v6534_v28  ;;  %v6542_v18 = vrot.slane %v12946_v57, 7  ;;  %v10726_v11 = vld [vmem:[#allocation7 + $0x338] ss:$12 sps:$4 sm:$0xff]   ;;  %v10727_v33 = vld [vmem:[#allocation7 + $0x1c8] ss:$12 sps:$4 sm:$0xff]  }
 0x792   :  { %v6544_v31 = vrot.slane %v12982_v50, 6  ;;  %v6513_v19 = vsel %vm6343_vm11, %v6512_v17, %v6511_v49  ;;  %v6538_v8 = vsel %vm6331_vm6, %v6537_v60, %v6536_v32  ;;  %v6566_v20 = vrot.slane %v12890_v10, 6  ;;  %v10729_v30 = vld [vmem:[#allocation7 + $0x1cc] ss:$12 sps:$4 sm:$0xff]   ;;  %v10731_v56 = vld [vmem:[#allocation7 + $0x350] ss:$12 sps:$4 sm:$0xff]  }
 0x793   :  { %v6567_v12 = vrot.slane %v12884_v24, 5  ;;  %v6515_v54 = vsel %vm6346_vm12, %v6514_v46, %v6513_v19  ;;  %v6540_v1 = vsel %vm6334_vm8, %v6539_v29, %v6538_v8  ;;  %v6569_v7 = vrot.slane %v12921_v55, 4  ;;  %v10734_v60 = vld [vmem:[#allocation7 + $0x1e4] ss:$12 sps:$4 sm:$0xff]   ;;  %v10735_v36 = vld [vmem:[#allocation7 + $0x428] ss:$12 sps:$4 sm:$0xff]  }
 0x794   :  { %v6541_v27 = vsel %vm6337_vm9, %v12952_v35, %v6540_v1  ;;  %v6571_v22 = vrot.slane %v12915_v13, 3  ;;  %v6573_v52 = vrot.slane %v12952_v35, 2  ;;  %v6546_v10 = vrot.slane %v12976_v47, 5  ;;  %v10732_v32 = vld [vmem:[#allocation7 + $0x1e0] ss:$12 sps:$4 sm:$0xff]  }
 0x795   :  { %v6568_v43 = vsel %vm6328_vm4, %v6567_v12, %v6566_v20  ;;  %v6543_v38 = vsel %vm6340_vm10, %v6542_v18, %v6541_v27  ;;  %v6575_v55 = vrot.slane %v12946_v57, 1  ;;  %v6578_v41 = vrot.slane %v12976_v47, 7  ;;  %v10736_v18 = vld [vmem:[#allocation7 + $0x368] ss:$12 sps:$4 sm:$0xff]   ;;  %v10740_v8 = vld [vmem:[#allocation7 + $0x440] ss:$12 sps:$4 sm:$0xff]  }
 0x796   :  { %v6570_v24 = vsel %vm6331_vm6, %v6569_v7, %v6568_v43  ;;  %v6545_v34 = vsel %vm6343_vm11, %v6544_v31, %v6543_v38  ;;  %v6348_v5 = vpack.c.b16 %v13091_v62, %v13091_v62  ;;  %v6380_v57 = vpack.c.b16 %v13108_v25, %v13108_v25  ;;  %v10739_v19 = vld [vmem:[#allocation7 + $0x1fc] ss:$12 sps:$4 sm:$0xff]   ;;  %v10737_v20 = vld [vmem:[#allocation7 + $0x1f8] ss:$12 sps:$4 sm:$0xff]   ;;  %v10741_v12 = vld [vmem:[#allocation7 + $0x380] ss:$12 sps:$4 sm:$0xff]  }
 0x797   :  { %v6572_v61 = vsel %vm6334_vm8, %v6571_v22, %v6570_v24  ;;  %v13191_v59 = vsel %vm6346_vm12, %v6546_v10, %v6545_v34  ;;  %v6444_v62 = vpack.c.b16 %v13141_v45, %v13141_v45  ;;  %v10745_v1 = vld [vmem:[#allocation7 + $0x458] ss:$12 sps:$4 sm:$0xff]   ;;  %v10742_v7 = vld [vmem:[#allocation7 + $0x210] ss:$12 sps:$4 sm:$0xff]   ;;  %v6484_v24 = vpack.c.b16 %v13159_v58, %v13159_v58  ;;  %v10752_v34 = vld [vmem:[#allocation7 + $0x240] ss:$12 sps:$4 sm:$0xff]  }
 0x798   :  { %v6574_v13 = vsel %vm6337_vm9, %v6573_v52, %v6572_v61  ;;  %v6548_v29 = vpack.c.b16 %v13191_v59, %v13191_v59  ;;  %v10746_v27 = vld [vmem:[#allocation7 + $0x398] ss:$12 sps:$4 sm:$0xff]   ;;  %v10750_v22 = vld [vmem:[#allocation7 + $0x470] ss:$12 sps:$4 sm:$0xff]   ;;  %v10747_v52 = vld [vmem:[#allocation7 + $0x228] ss:$12 sps:$4 sm:$0xff]  }
 0x799   :  { %v6576_v35 = vsel %vm6340_vm10, %v6575_v55, %v6574_v13  ;;  %v10749_v43 = vld [vmem:[#allocation7 + $0x22c] ss:$12 sps:$4 sm:$0xff]   ;;  %v10751_v38 = vld [vmem:[#allocation7 + $0x3b0] ss:$12 sps:$4 sm:$0xff]   ;;  %v10760_v59 = vld [vmem:[#allocation7 + $0x274] ss:$12 sps:$4 sm:$0xff]  }
 0x79a   :  { %v6577_v44 = vsel %vm6343_vm11, %v12982_v50, %v6576_v35  ;;  %v6412_v50 = vpack.c.b16 %v13127_v6, %v13127_v6  ;;  %v6516_v6 = vpack.c.b16 %v6515_v54, %v6515_v54  ;;  %v10744_v54 = vld [vmem:[#allocation7 + $0x214] ss:$12 sps:$4 sm:$0xff]   ;;  %v10754_v10 = vld [vmem:[#allocation7 + $0x244] ss:$12 sps:$4 sm:$0xff]   ;;  %v10757_v61 = vld [vmem:[#allocation7 + $0x25c] ss:$12 sps:$4 sm:$0xff]  }
 0x79b   :  { %v6579_v63 = vsel %vm6346_vm12, %v6578_v41, %v6577_v44  ;;  %v10755_v41 = vld [vmem:[#allocation7 + $0x258] ss:$12 sps:$4 sm:$0xff]   ;;  %v10758_v13 = vld [vmem:[#allocation7 + $0x270] ss:$12 sps:$4 sm:$0xff]   ;;  %v10761_v58 = vld [vmem:[#allocation7 + $0x288] ss:$12 sps:$4 sm:$0xff]  }
 0x79c   :  { %v6580_v17 = vpack.c.b16 %v6579_v63, %v6579_v63  ;;  %v10763_v35 = vld [vmem:[#allocation7 + $0x28c] ss:$12 sps:$4 sm:$0xff]   ;;  %v10766_v44 = vld [vmem:[#allocation7 + $0x2a4] ss:$12 sps:$4 sm:$0xff]  }
 0x79d   :  { %v10764_v63 = vld [vmem:[#allocation7 + $0x2a0] ss:$12 sps:$4 sm:$0xff]  }
 0x7e3   :  { %v6397_v47 = vpop.permute.xlu1 %6396  ;;  %v6365_v15 = vpop.permute.xlu0 %6364 }
 0x7e4   :  { %v6601_v40 = vsel %vm6598_vm13, %v6348_v5, %v6365_v15  ;;  %v6605_v9 = vsel %vm6598_vm13, %v6380_v57, %v6397_v47  ;;  %v10769_v5 = vld [vmem:[#allocation7 + $0x2bc] ss:$12 sps:$4 sm:$0xff]   ;;  %v10767_v57 = vld [vmem:[#allocation7 + $0x2b8] ss:$12 sps:$4 sm:$0xff]   ;;  %v10772_v47 = vld [vmem:[#allocation7 + $0x2d4] ss:$12 sps:$4 sm:$0xff]  }
 0x7e5   :  { %7960 = vmatprep.mubr.bf16.mxu1 %v6605_v9  ;;  %8124 = vmatprep.mubr.bf16.mxu0 %v6605_v9  ;;  %v10770_v15 = vld [vmem:[#allocation7 + $0x2d0] ss:$12 sps:$4 sm:$0xff]   ;;  %v10776_v9 = vld [vmem:[#allocation7 + $0x300] ss:$12 sps:$4 sm:$0xff]  }
 0x7e6   :  { %7961 = vmatmul.mubr.bf16.vlgmr.msra.gmra.mrb[32].mxu1 %v6601_v40  ;;  %8125 = vmatmul.mubr.bf16.vlgmr.msra.gmra.mrb[32].mxu0 %v6601_v40  ;;  %v10778_v40 = vld [vmem:[#allocation7 + $0x304] ss:$12 sps:$4 sm:$0xff]  }
 0x7e7   :  { %7970 = vmatpush1.bf16.msra.mxu1 %v10712_v42  ;;  %9263 = vmatpush3.bf16.msra.mxu0 %v10716_v37  ;;  %v6461_v25 = vpop.permute.xlu1 %6460  ;;  %v6429_v2 = vpop.permute.xlu0 %6428  ;;  %v10775_v42 = vld [vmem:[#allocation7 + $0x2ec] ss:$12 sps:$4 sm:$0xff]   ;;  %v10773_v37 = vld [vmem:[#allocation7 + $0x2e8] ss:$12 sps:$4 sm:$0xff]  }
 0x7e8   :  { %v13209_v53 = vsel %vm6598_vm13, %v6412_v50, %v6429_v2  ;;  %7971 = vmatprep.subr.bf16.mxu1 %v10719_v16  ;;  %v13212_v51 = vsel %vm6598_vm13, %v6444_v62, %v6461_v25  ;;  %9264 = vmatprep.subr.bf16.mxu0 %v10720_v3  ;;  %v10781_v16 = vld [vmem:[#allocation7 + $0x31c] ss:$12 sps:$4 sm:$0xff]   ;;  %v10779_v3 = vld [vmem:[#allocation7 + $0x318] ss:$12 sps:$4 sm:$0xff]   ;;  %v10784_v50 = vld [vmem:[#allocation7 + $0x334] ss:$12 sps:$4 sm:$0xff]  }
 0x7e9   :  { %8001 = vmatprep.mubr.bf16.mxu1 %v13212_v51  ;;  %v10782_v62 = vld [vmem:[#allocation7 + $0x330] ss:$12 sps:$4 sm:$0xff]   ;;  %v10787_v25 = vld [vmem:[#allocation7 + $0x34c] ss:$12 sps:$4 sm:$0xff]   ;;  %v10785_v2 = vld [vmem:[#allocation7 + $0x348] ss:$12 sps:$4 sm:$0xff]  }
 0x7eb   :  { %7972 = vmatpush1.bf16.msra.mxu1 %v10717_v21  ;;  %9265 = vmatpush3.bf16.msra.mxu0 %v10721_v23  ;;  %v6533_v45 = vpop.permute.xlu1 %6532  ;;  %v10790_v21 = vld [vmem:[#allocation7 + $0x364] ss:$12 sps:$4 sm:$0xff]   ;;  %v10788_v23 = vld [vmem:[#allocation7 + $0x360] ss:$12 sps:$4 sm:$0xff]  }
 0x7ec   :  { %7973 = vmatprep.subr.bf16.mxu1 %v10724_v26  ;;  %9266 = vmatprep.subr.bf16.mxu0 %v10725_v14  ;;  %v13216_v48 = vsel %vm6598_vm13, %v6516_v6, %v6533_v45  ;;  %v6501_v4 = vpop.permute.xlu0 %6500  ;;  %v10793_v26 = vld [vmem:[#allocation7 + $0x37c] ss:$12 sps:$4 sm:$0xff]   ;;  %v10791_v14 = vld [vmem:[#allocation7 + $0x378] ss:$12 sps:$4 sm:$0xff]   ;;  %v10796_v6 = vld [vmem:[#allocation7 + $0x394] ss:$12 sps:$4 sm:$0xff]  }
 0x7ed   :  { %8204 = vmatprep.mubr.bf16.mxu0 %v13216_v48  ;;  %v13230_v55 = vsel %vm6598_vm13, %v6484_v24, %v6501_v4  ;;  %v10794_v45 = vld [vmem:[#allocation7 + $0x390] ss:$12 sps:$4 sm:$0xff]   ;;  %v10803_v4 = vld [vmem:[#allocation7 + $0x3d8] ss:$12 sps:$4 sm:$0xff]  }
 0x7ee   :  { %v10839_v24 = vld [vmem:[#allocation7 + $0x4f8] ss:$12 sps:$4 sm:$0xff]  }
 0x7ef   :  { %7974 = vmatpush1.bf16.msra.mxu1 %v10722_v39  ;;  %9267 = vmatpush3.bf16.msra.mxu0 %v10726_v11  ;;  %v6597_v28 = vpop.permute.xlu1 %6596  ;;  %v10799_v39 = vld [vmem:[#allocation7 + $0x3ac] ss:$12 sps:$4 sm:$0xff]   ;;  %v10797_v11 = vld [vmem:[#allocation7 + $0x3a8] ss:$12 sps:$4 sm:$0xff]  }
 0x7f0   :  { %7975 = vmatprep.subr.bf16.mxu1 %v10729_v30  ;;  %9268 = vmatprep.subr.bf16.mxu0 %v10730_v0  ;;  %v13220_v46 = vsel %vm6598_vm13, %v6580_v17, %v6597_v28  ;;  %v10800_v30 = vld [vmem:[#allocation7 + $0x3c0] ss:$12 sps:$4 sm:$0xff]   ;;  %v10805_v0 = vld [vmem:[#allocation7 + $0x3dc] ss:$12 sps:$4 sm:$0xff]  }
 0x7f1   :  { %v10808_v17 = vld [vmem:[#allocation7 + $0x3f4] ss:$12 sps:$4 sm:$0xff]   ;;  %v10806_v28 = vld [vmem:[#allocation7 + $0x3f0] ss:$12 sps:$4 sm:$0xff]  }
 0x7f3   :  { %v6565_v49 = vpop.permute.xlu0 %6564  ;;  %7976 = vmatpush1.bf16.msra.mxu1 %v10727_v33  ;;  %9269 = vmatpush3.bf16.msra.mxu0 %v10731_v56  ;;  %v10811_v33 = vld [vmem:[#allocation7 + $0x40c] ss:$12 sps:$4 sm:$0xff]   ;;  %v10809_v56 = vld [vmem:[#allocation7 + $0x408] ss:$12 sps:$4 sm:$0xff]  }
 0x7f4   :  { %v13225_v31 = vsel %vm6598_vm13, %v6548_v29, %v6565_v49  ;;  %7977 = vmatprep.subr.bf16.mxu1 %v10734_v60  ;;  %9270 = vmatprep.subr.bf16.mxu0 %v10735_v36  ;;  %v10814_v60 = vld [vmem:[#allocation7 + $0x424] ss:$12 sps:$4 sm:$0xff]   ;;  %v10812_v36 = vld [vmem:[#allocation7 + $0x420] ss:$12 sps:$4 sm:$0xff]   ;;  %v10817_v29 = vld [vmem:[#allocation7 + $0x43c] ss:$12 sps:$4 sm:$0xff]  }
 0x7f5   :  { %v10815_v49 = vld [vmem:[#allocation7 + $0x438] ss:$12 sps:$4 sm:$0xff]  }
 0x7f7   :  { %7978 = vmatpush1.bf16.msra.mxu1 %v10732_v32  ;;  %9271 = vmatpush3.bf16.msra.mxu0 %v10736_v18  ;;  %v10820_v32 = vld [vmem:[#allocation7 + $0x454] ss:$12 sps:$4 sm:$0xff]   ;;  %v10818_v18 = vld [vmem:[#allocation7 + $0x450] ss:$12 sps:$4 sm:$0xff]  }
 0x7f8   :  { %7979 = vmatprep.subr.bf16.mxu1 %v10739_v19  ;;  %9272 = vmatprep.subr.bf16.mxu0 %v10740_v8  ;;  %v10823_v19 = vld [vmem:[#allocation7 + $0x46c] ss:$12 sps:$4 sm:$0xff]   ;;  %v10821_v8 = vld [vmem:[#allocation7 + $0x468] ss:$12 sps:$4 sm:$0xff]  }
 0x7fb   :  { %7980 = vmatpush1.bf16.msra.mxu1 %v10737_v20  ;;  %9273 = vmatpush3.bf16.msra.mxu0 %v10741_v12  ;;  %v10826_v20 = vld [vmem:[#allocation7 + $0x484] ss:$12 sps:$4 sm:$0xff]   ;;  %v10824_v12 = vld [vmem:[#allocation7 + $0x480] ss:$12 sps:$4 sm:$0xff]  }
 0x7fc   :  { %7981 = vmatprep.subr.bf16.mxu1 %v10744_v54  ;;  %9274 = vmatprep.subr.bf16.mxu0 %v10745_v1  ;;  %v10829_v54 = vld [vmem:[#allocation7 + $0x49c] ss:$12 sps:$4 sm:$0xff]   ;;  %v10827_v1 = vld [vmem:[#allocation7 + $0x498] ss:$12 sps:$4 sm:$0xff]  }
 0x7ff   :  { %7982 = vmatpush1.bf16.msra.mxu1 %v10742_v7  ;;  %9275 = vmatpush3.bf16.msra.mxu0 %v10746_v27  ;;  %v10832_v7 = vld [vmem:[#allocation7 + $0x4b4] ss:$12 sps:$4 sm:$0xff]   ;;  %v10830_v27 = vld [vmem:[#allocation7 + $0x4b0] ss:$12 sps:$4 sm:$0xff]  }
 0x800   :  { %7983 = vmatprep.subr.bf16.mxu1 %v10749_v43  ;;  %9276 = vmatprep.subr.bf16.mxu0 %v10750_v22  ;;  %v10835_v43 = vld [vmem:[#allocation7 + $0x4cc] ss:$12 sps:$4 sm:$0xff]   ;;  %v10833_v22 = vld [vmem:[#allocation7 + $0x4c8] ss:$12 sps:$4 sm:$0xff]  }
 0x803   :  { %7984 = vmatpush1.bf16.msra.mxu1 %v10747_v52  ;;  %9277 = vmatpush3.bf16.msra.mxu0 %v10751_v38  ;;  %v10838_v52 = vld [vmem:[#allocation7 + $0x4e4] ss:$12 sps:$4 sm:$0xff]   ;;  %v10836_v38 = vld [vmem:[#allocation7 + $0x4e0] ss:$12 sps:$4 sm:$0xff]  }
 0x804   :  { %7985 = vmatprep.subr.bf16.mxu1 %v10754_v10  ;;  %v10841_v10 = vld [vmem:[#allocation7 + $0x4fc] ss:$12 sps:$4 sm:$0xff]  }
 0x806   :  { %8205 = vmatmul.mubr.bf16.vlgmr.msra.gmra.mrb[36].mxu0 %v13230_v55 }
 0x807   :  { %7986 = vmatpush1.bf16.msra.mxu1 %v10752_v34  ;;  %v10844_v34 = vld [vmem:[#allocation7 + $0x514] ss:$12 sps:$4 sm:$0xff]  }
 0x808   :  { %7987 = vmatprep.subr.bf16.mxu1 %v10757_v61  ;;  %v10842_v61 = vld [vmem:[#allocation7 + $0x510] ss:$12 sps:$4 sm:$0xff]  }
 0x80b   :  { %7988 = vmatpush1.bf16.msra.mxu1 %v10755_v41  ;;  %v10845_v41 = vld [vmem:[#allocation7 + $0x528] ss:$12 sps:$4 sm:$0xff]  }
 0x80c   :  { %7989 = vmatprep.subr.bf16.mxu1 %v10760_v59  ;;  %v10850_v59 = vld [vmem:[#allocation7 + $0x544] ss:$12 sps:$4 sm:$0xff]  }
 0x80f   :  { %7990 = vmatpush1.bf16.msra.mxu1 %v10758_v13  ;;  %v10848_v13 = vld [vmem:[#allocation7 + $0x540] ss:$12 sps:$4 sm:$0xff]  }
 0x810   :  { %7991 = vmatprep.subr.bf16.mxu1 %v10763_v35  ;;  %v10853_v35 = vld [vmem:[#allocation7 + $0x55c] ss:$12 sps:$4 sm:$0xff]  }
 0x813   :  { %7992 = vmatpush1.bf16.msra.mxu1 %v10761_v58  ;;  %v10851_v58 = vld [vmem:[#allocation7 + $0x558] ss:$12 sps:$4 sm:$0xff]  }
 0x814   :  { %7993 = vmatprep.subr.bf16.mxu1 %v10766_v44  ;;  %v10856_v44 = vld [vmem:[#allocation7 + $0x574] ss:$12 sps:$4 sm:$0xff]  }
 0x817   :  { %7994 = vmatpush1.bf16.msra.mxu1 %v10764_v63  ;;  %v10854_v63 = vld [vmem:[#allocation7 + $0x570] ss:$12 sps:$4 sm:$0xff]  }
 0x818   :  { %7995 = vmatprep.subr.bf16.mxu1 %v10769_v5  ;;  %v10859_v5 = vld [vmem:[#allocation7 + $0x58c] ss:$12 sps:$4 sm:$0xff]  }
 0x81b   :  { %7996 = vmatpush1.bf16.msra.mxu1 %v10767_v57  ;;  %v10857_v57 = vld [vmem:[#allocation7 + $0x588] ss:$12 sps:$4 sm:$0xff]  }
 0x81c   :  { %7997 = vmatprep.subr.bf16.mxu1 %v10772_v47  ;;  %v10862_v47 = vld [vmem:[#allocation7 + $0x5a4] ss:$12 sps:$4 sm:$0xff]  }
 0x81f   :  { %7998 = vmatpush1.bf16.msra.mxu1 %v10770_v15  ;;  %v10860_v15 = vld [vmem:[#allocation7 + $0x5a0] ss:$12 sps:$4 sm:$0xff]  }
 0x820   :  { %7999 = vmatprep.subr.bf16.mxu1 %v10775_v42  ;;  %v10865_v42 = vld [vmem:[#allocation7 + $0x5bc] ss:$12 sps:$4 sm:$0xff]  }
 0x823   :  { %8000 = vmatpush1.bf16.msra.mxu1 %v10773_v37  ;;  %v10863_v37 = vld [vmem:[#allocation7 + $0x5b8] ss:$12 sps:$4 sm:$0xff]  }
 0x824   :  { %8010 = vmatprep.subr.bf16.mxu1 %v10778_v40  ;;  %v10868_v40 = vld [vmem:[#allocation7 + $0x5d4] ss:$12 sps:$4 sm:$0xff]  }
 0x826   :  { %8002 = vmatmul.mubr.bf16.vlgmr.msra.gmra.mrb[32].mxu1 %v13209_v53 }
 0x827   :  { %8011 = vmatpush1.bf16.msra.mxu1 %v10776_v9  ;;  %8042 = vmatprep.mubr.bf16.mxu1 %v13216_v48  ;;  %v10802_v48 = vld [vmem:[#allocation7 + $0x3c4] ss:$12 sps:$4 sm:$0xff]  }
 0x828   :  { %8012 = vmatprep.subr.bf16.mxu1 %v10781_v16  ;;  %v10866_v9 = vld [vmem:[#allocation7 + $0x5d0] ss:$12 sps:$4 sm:$0xff]   ;;  %v10871_v16 = vld [vmem:[#allocation7 + $0x5ec] ss:$12 sps:$4 sm:$0xff]  }
 0x82b   :  { %8013 = vmatpush1.bf16.msra.mxu1 %v10779_v3  ;;  %v10869_v3 = vld [vmem:[#allocation7 + $0x5e8] ss:$12 sps:$4 sm:$0xff]  }
 0x82c   :  { %8014 = vmatprep.subr.bf16.mxu1 %v10784_v50  ;;  %v10872_v50 = vld [vmem:[#allocation7 + $0x248] ss:$12 sps:$4 sm:$0xff]  }
 0x82f   :  { %8015 = vmatpush1.bf16.msra.mxu1 %v10782_v62  ;;  %v10873_v62 = vld [vmem:[#allocation7 + $0x188] ss:$12 sps:$4 sm:$0xff]  }
 0x830   :  { %8016 = vmatprep.subr.bf16.mxu1 %v10787_v25  ;;  %v10874_v25 = vld [vmem:[#allocation7 + $0x260] ss:$12 sps:$4 sm:$0xff]  }
 0x833   :  { %8017 = vmatpush1.bf16.msra.mxu1 %v10785_v2  ;;  %v10875_v2 = vld [vmem:[#allocation7 + $0x1a0] ss:$12 sps:$4 sm:$0xff]  }
 0x834   :  { %8018 = vmatprep.subr.bf16.mxu1 %v10790_v21  ;;  %v10876_v21 = vld [vmem:[#allocation7 + $0x278] ss:$12 sps:$4 sm:$0xff]  }
 0x837   :  { %8019 = vmatpush1.bf16.msra.mxu1 %v10788_v23  ;;  %v10877_v23 = vld [vmem:[#allocation7 + $0x1b8] ss:$12 sps:$4 sm:$0xff]  }
 0x838   :  { %8020 = vmatprep.subr.bf16.mxu1 %v10793_v26  ;;  %v10878_v26 = vld [vmem:[#allocation7 + $0x290] ss:$12 sps:$4 sm:$0xff]  }
 0x83b   :  { %8021 = vmatpush1.bf16.msra.mxu1 %v10791_v14  ;;  %v10879_v14 = vld [vmem:[#allocation7 + $0x1d0] ss:$12 sps:$4 sm:$0xff]  }
 0x83c   :  { %8022 = vmatprep.subr.bf16.mxu1 %v10796_v6  ;;  %v10880_v6 = vld [vmem:[#allocation7 + $0x2a8] ss:$12 sps:$4 sm:$0xff]  }
 0x83f   :  { %8023 = vmatpush1.bf16.msra.mxu1 %v10794_v45  ;;  %v10881_v45 = vld [vmem:[#allocation7 + $0x1e8] ss:$12 sps:$4 sm:$0xff]  }
 0x840   :  { %8024 = vmatprep.subr.bf16.mxu1 %v10799_v39  ;;  %v10882_v39 = vld [vmem:[#allocation7 + $0x2c0] ss:$12 sps:$4 sm:$0xff]  }
 0x843   :  { %8025 = vmatpush1.bf16.msra.mxu1 %v10797_v11  ;;  %v10883_v11 = vld [vmem:[#allocation7 + $0x200] ss:$12 sps:$4 sm:$0xff]  }
 0x844   :  { %8026 = vmatprep.subr.bf16.mxu1 %v10802_v48  ;;  %v10884_v48 = vld [vmem:[#allocation7 + $0x2d8] ss:$12 sps:$4 sm:$0xff]  }
 0x847   :  { %8027 = vmatpush1.bf16.msra.mxu1 %v10800_v30 }
 0x848   :  { %8028 = vmatprep.subr.bf16.mxu1 %v10805_v0 }
 0x84b   :  { %8029 = vmatpush1.bf16.msra.mxu1 %v10803_v4 }
 0x84c   :  { %8030 = vmatprep.subr.bf16.mxu1 %v10808_v17  ;;  %v10885_v17 = vld [vmem:[#allocation7 + $0x218] ss:$12 sps:$4 sm:$0xff]  }
 0x84f   :  { %8031 = vmatpush1.bf16.msra.mxu1 %v10806_v28 }
 0x850   :  { %8032 = vmatprep.subr.bf16.mxu1 %v10811_v33  ;;  %v10886_v33 = vld [vmem:[#allocation7 + $0x2f0] ss:$12 sps:$4 sm:$0xff]  }
 0x853   :  { %8033 = vmatpush1.bf16.msra.mxu1 %v10809_v56  ;;  %v10887_v56 = vld [vmem:[#allocation7 + $0x230] ss:$12 sps:$4 sm:$0xff]  }
 0x854   :  { %8034 = vmatprep.subr.bf16.mxu1 %v10814_v60  ;;  %v10888_v60 = vld [vmem:[#allocation7 + $0x548] ss:$12 sps:$4 sm:$0xff]  }
 0x857   :  { %8035 = vmatpush1.bf16.msra.mxu1 %v10812_v36  ;;  %v10889_v36 = vld [vmem:[#allocation7 + $0x488] ss:$12 sps:$4 sm:$0xff]  }
 0x858   :  { %8036 = vmatprep.subr.bf16.mxu1 %v10817_v29  ;;  %v10890_v29 = vld [vmem:[#allocation7 + $0x560] ss:$12 sps:$4 sm:$0xff]  }
 0x85b   :  { %8037 = vmatpush1.bf16.msra.mxu1 %v10815_v49  ;;  %v10891_v49 = vld [vmem:[#allocation7 + $0x4a0] ss:$12 sps:$4 sm:$0xff]  }
 0x85c   :  { %8038 = vmatprep.subr.bf16.mxu1 %v10820_v32  ;;  %v10892_v32 = vld [vmem:[#allocation7 + $0x578] ss:$12 sps:$4 sm:$0xff]  }
 0x85f   :  { %8039 = vmatpush1.bf16.msra.mxu1 %v10818_v18  ;;  %v10893_v18 = vld [vmem:[#allocation7 + $0x4b8] ss:$12 sps:$4 sm:$0xff]  }
 0x860   :  { %8040 = vmatprep.subr.bf16.mxu1 %v10823_v19  ;;  %v10894_v19 = vld [vmem:[#allocation7 + $0x590] ss:$12 sps:$4 sm:$0xff]  }
 0x863   :  { %8041 = vmatpush1.bf16.msra.mxu1 %v10821_v8  ;;  %v10895_v8 = vld [vmem:[#allocation7 + $0x4d0] ss:$12 sps:$4 sm:$0xff]  }
 0x864   :  { %8051 = vmatprep.subr.bf16.mxu1 %v10826_v20  ;;  %v10896_v20 = vld [vmem:[#allocation7 + $0x5a8] ss:$12 sps:$4 sm:$0xff]  }
 0x866   :  { %8043 = vmatmul.mubr.bf16.vlgmr.msra.gmra.mrb[32].mxu1 %v13230_v55  ;;  %v10847_v55 = vld [vmem:[#allocation7 + $0x52c] ss:$12 sps:$4 sm:$0xff]  }
 0x867   :  { %8052 = vmatpush1.bf16.msra.mxu1 %v10824_v12  ;;  %8083 = vmatprep.mubr.bf16.mxu1 %v13220_v46  ;;  %v10897_v12 = vld [vmem:[#allocation7 + $0x4e8] ss:$12 sps:$4 sm:$0xff]  }
 0x868   :  { %8053 = vmatprep.subr.bf16.mxu1 %v10829_v54  ;;  %v10898_v54 = vld [vmem:[#allocation7 + $0x5c0] ss:$12 sps:$4 sm:$0xff]  }
 0x86b   :  { %8054 = vmatpush1.bf16.msra.mxu1 %v10827_v1  ;;  %v10900_v1 = vld [vmem:[#allocation7 + $0x5d8] ss:$12 sps:$4 sm:$0xff]  }
 0x86c   :  { %8055 = vmatprep.subr.bf16.mxu1 %v10832_v7 }
 0x86f   :  { %8056 = vmatpush1.bf16.msra.mxu1 %v10830_v27 }
 0x870   :  { %8057 = vmatprep.subr.bf16.mxu1 %v10835_v43 }
 0x873   :  { %8058 = vmatpush1.bf16.msra.mxu1 %v10833_v22  ;;  %v10901_v22 = vld [vmem:[#allocation7 + $0x518] ss:$12 sps:$4 sm:$0xff]  }
 0x874   :  { %8059 = vmatprep.subr.bf16.mxu1 %v10838_v52 }
 0x877   :  { %8060 = vmatpush1.bf16.msra.mxu1 %v10836_v38  ;;  %v10902_v38 = vld [vmem:[#allocation7 + $0x5f0] ss:$12 sps:$4 sm:$0xff]  }
 0x878   :  { %8061 = vmatprep.subr.bf16.mxu1 %v10841_v10  ;;  %v10903_v10 = vld [vmem:[#allocation7 + $0x530] ss:$12 sps:$4 sm:$0xff]  }
 0x87b   :  { %8062 = vmatpush1.bf16.msra.mxu1 %v10839_v24  ;;  %v6887_v24 = vld [vmem:[%s13286_s10] sm:$0x7] }
 0x87c   :  { %8063 = vmatprep.subr.bf16.mxu1 %v10844_v34  ;;  %v13432_v34 = vld [vmem:[#allocation14_spill] sm:$0xff] }
 0x87f   :  { %8064 = vmatpush1.bf16.msra.mxu1 %v10842_v61  ;;  %v6892_v61 = vrot.slane %v6887_v24, %v13432_v34 }
 0x880   :  { %8065 = vmatprep.subr.bf16.mxu1 %v10847_v55 }
 0x883   :  { %8066 = vmatpush1.bf16.msra.mxu1 %v10845_v41 }
 0x884   :  { %8067 = vmatprep.subr.bf16.mxu1 %v10850_v59 }
 0x887   :  { %8068 = vmatpush1.bf16.msra.mxu1 %v10848_v13 }
 0x888   :  { %8069 = vmatprep.subr.bf16.mxu1 %v10853_v35 }
 0x88b   :  { %8070 = vmatpush1.bf16.msra.mxu1 %v10851_v58 }
 0x88c   :  { %8071 = vmatprep.subr.bf16.mxu1 %v10856_v44  ;;  %v13433_v44 = vld [vmem:[#allocation12_spill] sm:$0xff] }
 0x88f   :  { %8072 = vmatpush1.bf16.msra.mxu1 %v10854_v63  ;;  %v13434_v63 = vsub.s32 2, %v13433_v44 }
 0x890   :  { %8073 = vmatprep.subr.bf16.mxu1 %v10859_v5 }
 0x891   :  { %v6900_v5 = vrot.slane %v6887_v24, %v13434_v63 }
 0x893   :  { %8074 = vmatpush1.bf16.msra.mxu1 %v10857_v57 }
 0x894   :  { %8075 = vmatprep.subr.bf16.mxu1 %v10862_v47 }
 0x897   :  { %8076 = vmatpush1.bf16.msra.mxu1 %v10860_v15 }
 0x898   :  { %8077 = vmatprep.subr.bf16.mxu1 %v10865_v42 }
 0x89b   :  { %8078 = vmatpush1.bf16.msra.mxu1 %v10863_v37 }
 0x89c   :  { %8079 = vmatprep.subr.bf16.mxu1 %v10868_v40 }
 0x89f   :  { %8080 = vmatpush1.bf16.msra.mxu1 %v10866_v9 }
 0x8a0   :  { %8081 = vmatprep.subr.bf16.mxu1 %v10871_v16  ;;  %v13435_v16 = vld [vmem:[#allocation13_spill] sm:$0xff] }
 0x8a3   :  { %8082 = vmatpush1.bf16.msra.mxu1 %v10869_v3  ;;  %v6896_v3 = vrot.slane %v6887_v24, %v13435_v16 }
 0x8a4   :  { %9240 = vmatprep.subr.bf16.mxu1 %v10872_v50 }
 0x8a6   :  { %8084 = vmatmul.mubr.bf16.vlgmr.msra.gmra.mrb[32].mxu1 %v13225_v31 }
 0x8a7   :  { %9241 = vmatpush3.bf16.msra.mxu1 %v10873_v62  ;;  %8164 = vmatprep.mubr.bf16.mxu1 %v13212_v51 }
 0x8a8   :  { %9242 = vmatprep.subr.bf16.mxu1 %v10874_v25  ;;  %v8266_v25 = vld [vmem:[%s13287_s11] ss:$2 sm:$0x3] }
 0x8ab   :  { %9243 = vmatpush3.bf16.msra.mxu1 %v10875_v2 }
 0x8ac   :  { %9244 = vmatprep.subr.bf16.mxu1 %v10876_v21 }
 0x8af   :  { %9245 = vmatpush3.bf16.msra.mxu1 %v10877_v23 }
 0x8b0   :  { %9246 = vmatprep.subr.bf16.mxu1 %v10878_v26 }
 0x8b3   :  { %9247 = vmatpush3.bf16.msra.mxu1 %v10879_v14 }
 0x8b4   :  { %9248 = vmatprep.subr.bf16.mxu1 %v10880_v6  ;;  %v8271_v6 = vrot.slane %v8266_v25, %v13432_v34 }
 0x8b7   :  { %9249 = vmatpush3.bf16.msra.mxu1 %v10881_v45 }
 0x8b8   :  { %9250 = vmatprep.subr.bf16.mxu1 %v10882_v39  ;;  %v8275_v39 = vrot.slane %v8266_v25, %v13435_v16 }
 0x8b9   :  { %v9234_v51 = vpop.f32.mrb[32].mxu0 }
 0x8ba   :  { %v9235_v30 = vpop.f32.mrb[33].mxu0 }
 0x8bb   :  { %v13239_v0 = vadd.f32 %v9235_v30, %v9234_v51  ;;  %9251 = vmatpush3.bf16.msra.mxu1 %v10883_v11  ;;  %v9237_v4 = vpop.f32.mrb[34].mxu0 }
 0x8bc   :  { %v9238_v28 = vpop.f32.mrb[35].mxu0  ;;  %9252 = vmatprep.subr.bf16.mxu1 %v10884_v48 }
 0x8bd   :  { %v8127_v47 = vadd.f32 %v13239_v0, %v6900_v5 }
 0x8bf   :  { %9253 = vmatpush3.bf16.msra.mxu1 %v10885_v17 }
 0x8c0   :  { %9254 = vmatprep.subr.bf16.mxu1 %v10886_v33 }
 0x8c3   :  { %9255 = vmatpush3.bf16.msra.mxu1 %v10887_v56  ;;  %v8832_v56 = vld [vmem:[%s13287_s11 + $0x1] ss:$0 sm:$0xff]  ;;  %s10976_s11 = scalar_lea.vmem %s8305_s4, 128 }
 0x8c4   :  { %9284 = vmatprep.subr.bf16.mxu1 %v10888_v60  ;;  %p10977_p10 = scmp.ne.s32.totalorder %s8305_s4, %s10976_s11  ;;  %p10982_p12 = scmp.lt.s32.totalorder %s10976_s11, %s10976_s11 }
 0x8c6   :  { %8165 = vmatmul.mubr.bf16.vlgmr.msra.gmra.mrb[36].mxu1 %v13209_v53  ;;  %v10899_v53 = vld [vmem:[#allocation7 + $0x500] ss:$12 sps:$4 sm:$0xff]   ;;  %p10983_p13 = por %p10982_p12, %p10981_p11 }
 0x8c7   :  { %9285 = vmatpush3.bf16.msra.mxu1 %v10889_v36  ;;  %8244 = vmatprep.mubr.bf16.mxu1 %v13220_v46 }
 0x8c8   :  { %9286 = vmatprep.subr.bf16.mxu1 %v10890_v29  ;;  %p10984_p0 = pnand %p10983_p13, %p10977_p10 }
 0x8cb   :  { %9287 = vmatpush3.bf16.msra.mxu1 %v10891_v49 }
 0x8cc   :  { %9288 = vmatprep.subr.bf16.mxu1 %v10892_v32 }
 0x8cf   :  { %9289 = vmatpush3.bf16.msra.mxu1 %v10893_v18 }
 0x8d0   :  { %9290 = vmatprep.subr.bf16.mxu1 %v10894_v19 }
 0x8d3   :  { %9291 = vmatpush3.bf16.msra.mxu1 %v10895_v8 }
 0x8d4   :  { %9292 = vmatprep.subr.bf16.mxu1 %v10896_v20 }
 0x8d7   :  { %9293 = vmatpush3.bf16.msra.mxu1 %v10897_v12 }
 0x8d8   :  { %9294 = vmatprep.subr.bf16.mxu1 %v10898_v54 }
 0x8d9   :  { %v9278_v46 = vpop.f32.mrb[36].mxu0 }
 0x8da   :  { %v9279_v7 = vpop.f32.mrb[37].mxu0 }
 0x8db   :  { %v9280_v27 = vadd.f32 %v9279_v7, %v9278_v46  ;;  %v9281_v43 = vpop.f32.mrb[38].mxu0  ;;  %9295 = vmatpush3.bf16.msra.mxu1 %v10899_v53 }
 0x8dc   :  { %v9282_v52 = vpop.f32.mrb[39].mxu0  ;;  %9296 = vmatprep.subr.bf16.mxu1 %v10900_v1 }
 0x8df   :  { %9297 = vmatpush3.bf16.msra.mxu1 %v10901_v22 }
 0x8e0   :  { %9298 = vmatprep.subr.bf16.mxu1 %v10902_v38 }
 0x8e3   :  { %9299 = vmatpush3.bf16.msra.mxu1 %v10903_v10 }
 0x8e6   :  { %8245 = vmatmul.mubr.bf16.vlgmr.msra.gmra.mrb[40].mxu1 %v13225_v31 }
 0x979   :  { %v8085_v55 = vpop.f32.mrb[32].mxu1 }
 0x97a   :  { %v10076_v41 = vadd.f32 %v8085_v55, %v6892_v61  ;;  %v8087_v59 = vpop.f32.mrb[33].mxu1 }
 0x97b   :  { %v8089_v13 = vpop.f32.mrb[34].mxu1  ;;  %v10077_v50 = vadd.f32 %v8087_v59, %v6896_v3 }
 0x97c   :  { %v8090_v35 = vpop.f32.mrb[35].mxu1  ;;  %v8255_v58 = vsel %vm8254_vm14, %v10076_v41, -inf }
 0x97d   :  { %8256 = vmax.xlane.f32.xlu1 %v8255_v58  ;;  %v8252_v14 = vmax.f32 %v10077_v50, 0.0 }
 0x97f   :  { %v8278_v48 = vmul.f32 %v8271_v6, %v8252_v14 }
 0x999   :  { %v9256_v57 = vpop.f32.mrb[36].mxu1 }
 0x99a   :  { %v9257_v31 = vpop.f32.mrb[37].mxu1 }
 0x99b   :  { %v9258_v15 = vadd.f32 %v9257_v31, %v9256_v57  ;;  %v9259_v42 = vpop.f32.mrb[38].mxu1 }
 0x99c   :  { %v9260_v37 = vpop.f32.mrb[39].mxu1 }
 0x99d   :  { %v8167_v40 = vadd.f32 %v9258_v15, %v8127_v47 }
 0x99f   :  { %v8207_v9 = vadd.f32 %v9280_v27, %v8167_v40 }
 0x9b9   :  { %v9300_v62 = vpop.f32.mrb[40].mxu1 }
 0x9ba   :  { %v9301_v2 = vpop.f32.mrb[41].mxu1 }
 0x9bb   :  { %v9302_v21 = vadd.f32 %v9301_v2, %v9300_v62  ;;  %v9303_v23 = vpop.f32.mrb[42].mxu1 }
 0x9bc   :  { %v9304_v26 = vpop.f32.mrb[43].mxu1 }
 0x9bd   :  { %v8247_v45 = vadd.f32 %v9302_v21, %v8207_v9 }
 0x9bf   :  { %v8253_v11 = vmax.f32 %v8247_v45, 0.0 }
 0x9c1   :  { %v8279_v51 = vmul.f32 %v8275_v39, %v8253_v11 }
 0x9c3   :  { %v8280_v30 = vadd.f32 %v8279_v51, %v8278_v48 }
 0x9c5   :  { %8281 = vadd.xlane.f32.xlu0 %v8280_v30 }
 0xa0a   :  { %v8257_v0 = vpop.xlane.xlu1 %8256 }
 0xa0b   :  { %v8258_v4 = vsub.f32 %v10076_v41, %v8257_v0 }
 0xa0d   :  { %v8259_v17 = vmul.f32 1.442695, %v8258_v4 }
 0xa0f   :  { %10904 = vpow2.f32 %v8259_v17 }
 0xa19   :  { %v10905_v28 = vpop.eup %10904 }
 0xa1a   :  { %v8261_v33 = vsel %vm8254_vm14, %v10905_v28, 0.0 }
 0xa1b   :  { %8262 = vadd.xlane.f32.xlu0 %v8261_v33 }
 0xa52   :  { %v8282_v60 = vpop.xlane.xlu0 %8281 }
 0xa53   :  { %v8288_v36 = vadd.f32 %v8832_v56, %v8282_v60 }
 0xa55   :  { %10906 = vtanh.f32 %v8288_v36 }
 0xa5f   :  { %v10907_v29 = vpop.eup %10906 }
 0xa60   :  { %8291 = vrot.lane.b32.xlu1 %v10907_v29, %s11007_s16 }
 0xaa8   :  { %v8263_v49 = vpop.xlane.xlu0 %8262 }
 0xaa9   :  { %10908 = vrcp.f32 %v8263_v49 }
 0xab3   :  { %v10909_v32 = vpop.eup %10908 }
 0xab4   :  { %v8265_v18 = vmul.f32 %v10909_v32, %v10905_v28 }
 0xad2   :  { %v8292_v19 = vpop.permute.xlu1 %8291 }
 0xad3   :  { %v8294_v8 = vsel %vm8254_vm14, %v8265_v18, %v8292_v19 }
 0xad4   :  { %v8296_v20 = vsel %vm8295_vm15, %v8294_v8, 0.0 }
 0xad5   :  { %8297 = vst [vmem:[#allocation8] sm:$0xff] %v8296_v20 }
 0xad6   :  { %10987 = shalt.err (!%p10984_p0)
}
 0xad7   :  { %s10988_s25 = scalar_lea.hbm %s13288_s12, 128 }
 0xad8   :  { %p10989_p1 = scmp.ne.s32.totalorder %s13288_s12, %s10988_s25  ;;  %p10992_p2 = scmp.lt.u32.totalorder %s10988_s25, %s13288_s12 }
 0xada   :  { %p10994_p3 = pnand %p10992_p2, %p10989_p1 }
 0xadc   :  { %10997 = shalt.err (!%p10994_p3)
}
 0xadd   :  { %8307 = dma.vmem_to_hbm [thread:$0]  %s8305_s4, 128, %s13288_s12, [#allocation4]  }
 0xade   :  { %11002 = dma.done.wait [#allocation4], 128  }
 0xadf   :  { %11003 = vsyncadd [#allocation4], 4294967168 }
 0xae0   :  { %8311 = vsyncpa [#allocation3], 1 }
 0xae1   :  { %8312 = vsyncpa [#allocation6], 1 }
 0xae2   :  { %8313 = vsyncpa [#allocation4], 1 }

</bundles_post_ra>
